<compile_context>
chip_gen: v7x
topology: tpu7x:2x2x1
jax: 0.10.0
libtpu: 0.0.40
codegen_flags: <defaults>
</compile_context>

<pallas_src>
import jax
import jax.numpy as jnp
from jax.experimental import pallas as pl
from jax.experimental.pallas import tpu as pltpu

GN_GROUPS = 32
GN_EPS = 1e-5


def self_attn_kernel(x_ref, gnw_ref, gnb_ref, wqkv_ref, bqkv_ref,
                     wp_ref, bp_ref, gamma_ref, o_ref):
    # x_ref   : (bt, C, HW)  batch tile, spatial axis flattened (lane-dense)
    # gnw/gnb : (C, 1)       GroupNorm affine params
    # wqkv    : (3C, C)      stacked [Wq; Wk; Wv] 1x1-conv weights
    # bqkv    : (3C, 1)      stacked q/k/v biases
    # wp, bp  : (C, C), (C, 1)  output projection
    # gamma   : (1,) f32 in SMEM (scalar residual offset)
    # o_ref   : (bt, C, HW)
    x = x_ref[...]                                   # (bt, C, HW) f32
    bt, C, HW = x.shape
    G = GN_GROUPS
    Cg = C // G
    inv_n = 1.0 / (Cg * HW)

    # ---- GroupNorm(32, C): single pass (sum & sum-of-squares), fused affine ----
    # E[x^2] - mean^2 form: fine in f32 for roughly zero-mean activations.
    xsum = jnp.sum(x, axis=2, keepdims=True)                              # (bt, C, 1)
    xss = jnp.sum(x * x, axis=2, keepdims=True)                           # (bt, C, 1)
    gsum = jnp.sum(xsum.reshape(bt, G, Cg), axis=2, keepdims=True)        # (bt, G, 1)
    gss = jnp.sum(xss.reshape(bt, G, Cg), axis=2, keepdims=True)          # (bt, G, 1)
    mean = gsum * inv_n
    var = gss * inv_n - mean * mean
    rstd = jax.lax.rsqrt(var + GN_EPS)
    mean_c = jnp.broadcast_to(mean, (bt, G, Cg)).reshape(bt, C, 1)
    rstd_c = jnp.broadcast_to(rstd, (bt, G, Cg)).reshape(bt, C, 1)
    scale_c = rstd_c * gnw_ref[...]                                       # (bt, C, 1)
    shift_c = gnb_ref[...] - mean_c * scale_c                             # (bt, C, 1)
    h16 = (x * scale_c + shift_c).astype(jnp.bfloat16)                    # (bt, C, HW)

    # ---- VMEM-resident params, hoisted out of the batch-tile loop ----
    wqkv16 = wqkv_ref[...].astype(jnp.bfloat16)      # (3C, C)
    bqkv = bqkv_ref[...]                             # (3C, 1) f32
    wp = wp_ref[...]                                 # (C, C)  f32
    bp = bp_ref[...]                                 # (C, 1)  f32
    gamma = gamma_ref[0]
    qscale = float(C) ** -0.5                        # fold C**-0.5 into q (C*HW vals, not HW*HW)

    # Static unroll over the (small, wrapper-capped) batch tile.
    # TODO(synk): for large bt, move this loop back onto a grid axis instead of unrolling.
    for b in range(bt):
        # fused q/k/v 1x1 convs: one MXU matmul, weights stay resident across the tile
        qkv = jnp.dot(wqkv16, h16[b], preferred_element_type=jnp.float32) + bqkv  # (3C, HW)
        q16 = (qkv[0:C] * qscale).astype(jnp.bfloat16)
        k16 = qkv[C:2 * C].astype(jnp.bfloat16)
        v16 = qkv[2 * C:3 * C].astype(jnp.bfloat16)

        # scores s[i, j] = sum_c q[c, i] * k[c, j]   (bf16 operands, f32 accumulation)
        s = jax.lax.dot_general(q16, k16, (((0,), (0,)), ((), ())),
                                preferred_element_type=jnp.float32)       # (HW, HW)
        s = s - jnp.max(s, axis=-1, keepdims=True)
        e16 = jnp.exp(s).astype(jnp.bfloat16)                             # exp in f32, store bf16

        # One MXU matmul yields both the unnormalized P@V product (rows 0..C-1) and the
        # softmax denominator (ones row -> row C), already lane-dense as a (1, HW) row.
        v_ext = jnp.concatenate([v16, jnp.ones((1, HW), jnp.bfloat16)], axis=0)  # (C+1, HW)
        pv_ext = jax.lax.dot_general(v_ext, e16, (((1,), (1,)), ((), ())),
                                     preferred_element_type=jnp.float32)         # (C+1, HW)
        inv_denom = pl.reciprocal(pv_ext[C:C + 1], approx=True)                  # (1, HW)
        pv = pv_ext[0:C] * inv_denom                                             # (C, HW)

        # output 1x1 projection back to (C, HW); small, keep f32 operands for accuracy
        hp = jnp.dot(wp, pv, preferred_element_type=jnp.float32) + bp            # (C, HW)

        o_ref[b] = gamma + hp + x[b]

    # TODO(synk): for large H*W, tile the key axis flash-attention style (online softmax)
    # so the (HW, HW) score/exp buffers never materialize whole in VMEM; at HW=256 they
    # are only ~384 KiB per element and fit comfortably on all generations.


def _pick_batch_tile(batch, max_bt=4):
    """Largest divisor of `batch` that is <= max_bt (keeps the in-kernel unroll small)."""
    bt = 1
    for cand in range(1, max_bt + 1):
        if cand <= batch and batch % cand == 0:
            bt = cand
    return bt


def self_attention_block(x, gn_w, gn_b, wq, bq, wk, bk, wv, bv, wp, bp, gamma):
    """x: (B, C, H, W) f32; 1x1-conv weights (C, C); biases (C,); gamma (1,)."""
    B, C, H, W = x.shape
    assert C % GN_GROUPS == 0, "GroupNorm(32, C) requires C % 32 == 0"
    HW = H * W
    bt = _pick_batch_tile(B)

    x3 = x.reshape(B, C, HW)                               # free reshape, lane-dense last dim
    wqkv = jnp.concatenate([wq, wk, wv], axis=0)           # (3C, C), batch-independent, tiny
    bqkv = jnp.concatenate([bq, bk, bv], axis=0).reshape(3 * C, 1)
    gn_w2, gn_b2, bp2 = gn_w.reshape(C, 1), gn_b.reshape(C, 1), bp.reshape(C, 1)
    gamma1 = gamma.reshape(1).astype(jnp.float32)

    out3 = pl.pallas_call(
        self_attn_kernel,
        out_shape=jax.ShapeDtypeStruct((B, C, HW), jnp.float32),
        grid_spec=pltpu.PrefetchScalarGridSpec(
            num_scalar_prefetch=0,
            grid=(B // bt,),
            in_specs=[
                pl.BlockSpec((bt, C, HW), lambda i: (i, 0, 0)),      # x batch tile
                pl.BlockSpec((C, 1), lambda i: (0, 0)),              # GroupNorm weight
                pl.BlockSpec((C, 1), lambda i: (0, 0)),              # GroupNorm bias
                pl.BlockSpec((3 * C, C), lambda i: (0, 0)),          # stacked Wq/Wk/Wv
                pl.BlockSpec((3 * C, 1), lambda i: (0, 0)),          # stacked q/k/v biases
                pl.BlockSpec((C, C), lambda i: (0, 0)),              # Wproj
                pl.BlockSpec((C, 1), lambda i: (0, 0)),              # bproj
                pl.BlockSpec(memory_space=pltpu.MemorySpace.SMEM),   # gamma scalar
            ],
            out_specs=pl.BlockSpec((bt, C, HW), lambda i: (i, 0, 0)),
        ),
        compiler_params=pltpu.CompilerParams(
            dimension_semantics=("parallel",),
        ),
    )(x3, gn_w2, gn_b2, wqkv, bqkv, wp, bp2, gamma1)
    return out3.reshape(B, C, H, W)


def _reference(x, gn_w, gn_b, wq, bq, wk, bk, wv, bv, wp, bp, gamma):
    # Pure-JAX mirror of the PyTorch forward.
    B, C, H, W = x.shape
    G = GN_GROUPS
    PREC = jax.lax.Precision.HIGHEST

    xg = x.reshape(B, G, (C // G) * H * W)
    mean = xg.mean(axis=2, keepdims=True)
    var = ((xg - mean) ** 2).mean(axis=2, keepdims=True)
    h = ((xg - mean) / jnp.sqrt(var + GN_EPS)).reshape(B, C, H, W)
    h = h * gn_w[None, :, None, None] + gn_b[None, :, None, None]

    def conv1x1(t, w, b):
        return jnp.einsum("oc,bchw->bohw", w, t, precision=PREC) + b[None, :, None, None]

    q = conv1x1(h, wq, bq)
    k = conv1x1(h, wk, bk)
    v = conv1x1(h, wv, bv)
    qf = q.transpose(0, 2, 3, 1).reshape(B, H * W, C)
    kf = k.reshape(B, C, H * W)
    att = jnp.einsum("bic,bcj->bij", qf, kf, precision=PREC) * (C ** -0.5)
    att = jax.nn.softmax(att, axis=-1)
    vf = v.transpose(0, 2, 3, 1).reshape(B, H * W, C)
    hf = jnp.einsum("bij,bjc->bic", att, vf, precision=PREC)
    h2 = hf.reshape(B, H, W, C).transpose(0, 3, 1, 2)
    h2 = conv1x1(h2, wp, bp)
    return gamma.reshape(()) + h2 + x


if __name__ == "__main__":
    key = jax.random.PRNGKey(0)
    keys = jax.random.split(key, 12)

    # Small shapes consistent with the module: GroupNorm(32, C) needs C % 32 == 0;
    # H*W = 256 keeps the spatial (lane) axis a multiple of 128.
    B, C, H, W = 2, 32, 16, 16
    x = jax.random.normal(keys[0], (B, C, H, W), dtype=jnp.float32)

    bound = 1.0 / (C ** 0.5)   # Conv2d default kaiming-uniform-style bound (fan_in = C*1*1)

    def u(k, shape):
        return jax.random.uniform(k, shape, minval=-bound, maxval=bound, dtype=jnp.float32)

    wq, bq = u(keys[1], (C, C)), u(keys[2], (C,))
    wk, bk = u(keys[3], (C, C)), u(keys[4], (C,))
    wv, bv = u(keys[5], (C, C)), u(keys[6], (C,))
    wp, bp = u(keys[7], (C, C)), u(keys[8], (C,))
    gn_w = 1.0 + 0.1 * jax.random.normal(keys[9], (C,), dtype=jnp.float32)
    gn_b = 0.1 * jax.random.normal(keys[10], (C,), dtype=jnp.float32)
    # PyTorch initializes gamma to 0; use a nonzero value so the residual-offset path is exercised.
    gamma = 0.05 * jax.random.normal(keys[11], (1,), dtype=jnp.float32)

    out = self_attention_block(x, gn_w, gn_b, wq, bq, wk, bk, wv, bv, wp, bp, gamma)
    out = jax.block_until_ready(out)

    ref = _reference(x, gn_w, gn_b, wq, bq, wk, bk, wv, bv, wp, bp, gamma)
    assert out.shape == (B, C, H, W)
    # Tolerance allows for bf16 MXU operands (f32 accumulation) vs the f32 HIGHEST reference.
    assert jnp.allclose(out, ref, rtol=2e-3, atol=2e-3), "mismatch vs reference"

    print("KERNEL_OK")
</pallas_src>

<mosaic_0001>
module attributes {stable_mosaic.version = 11 : i64} {
  func.func @self_attn_kernel(%arg0: i32, %arg1: memref<2x32x256xf32, #tpu.memory_space<vmem>>, %arg2: memref<32x1xf32, #tpu.memory_space<vmem>>, %arg3: memref<32x1xf32, #tpu.memory_space<vmem>>, %arg4: memref<96x32xf32, #tpu.memory_space<vmem>>, %arg5: memref<96x1xf32, #tpu.memory_space<vmem>>, %arg6: memref<32x32xf32, #tpu.memory_space<vmem>>, %arg7: memref<32x1xf32, #tpu.memory_space<vmem>>, %arg8: memref<1xf32, #tpu.memory_space<smem>>, %arg9: memref<2x32x256xf32, #tpu.memory_space<vmem>>) attributes {dimension_semantics = [#tpu.dimension_semantics<parallel>], iteration_bounds = array<i64: 1>, scalar_prefetch = 0 : i64, scratch_operands = 0 : i64, tpu.core_type = #tpu.core_type<tc>, window_params = [{transform_indices = @transform_0, window_bounds = array<i64: 2, 32, 256>}, {pipeline_mode = #tpu.pipeline_mode<synchronous>, transform_indices = @transform_1, window_bounds = array<i64: 32, 1>}, {pipeline_mode = #tpu.pipeline_mode<synchronous>, transform_indices = @transform_2, window_bounds = array<i64: 32, 1>}, {pipeline_mode = #tpu.pipeline_mode<synchronous>, transform_indices = @transform_3, window_bounds = array<i64: 96, 32>}, {pipeline_mode = #tpu.pipeline_mode<synchronous>, transform_indices = @transform_4, window_bounds = array<i64: 96, 1>}, {pipeline_mode = #tpu.pipeline_mode<synchronous>, transform_indices = @transform_5, window_bounds = array<i64: 32, 32>}, {pipeline_mode = #tpu.pipeline_mode<synchronous>, transform_indices = @transform_6, window_bounds = array<i64: 32, 1>}, {transform_indices = @transform_7, window_bounds = array<i64: 1>}, {transform_indices = @transform_8, window_bounds = array<i64: 2, 32, 256>}]} {
    %c0 = arith.constant 0 : index
    %c0_0 = arith.constant 0 : index
    %c0_1 = arith.constant 0 : index
    %0 = vector.load %arg1[%c0, %c0_0, %c0_1] : memref<2x32x256xf32, #tpu.memory_space<vmem>>, vector<2x32x256xf32>
    %cst = arith.constant dense<0.000000e+00> : vector<2x32xf32>
    %1 = vector.multi_reduction <add>, %0, %cst [2] : vector<2x32x256xf32> to vector<2x32xf32>
    %2 = vector.shape_cast %1 : vector<2x32xf32> to vector<2x32x1xf32>
    %3 = arith.mulf %0, %0 : vector<2x32x256xf32>
    %cst_2 = arith.constant dense<0.000000e+00> : vector<2x32xf32>
    %4 = vector.multi_reduction <add>, %3, %cst_2 [2] : vector<2x32x256xf32> to vector<2x32xf32>
    %5 = vector.shape_cast %4 : vector<2x32xf32> to vector<2x32x1xf32>
    %cst_3 = arith.constant dense<0.000000e+00> : vector<2x32xf32>
    %6 = vector.multi_reduction <add>, %2, %cst_3 [2] : vector<2x32x1xf32> to vector<2x32xf32>
    %7 = vector.shape_cast %6 : vector<2x32xf32> to vector<2x32x1xf32>
    %cst_4 = arith.constant dense<0.000000e+00> : vector<2x32xf32>
    %8 = vector.multi_reduction <add>, %5, %cst_4 [2] : vector<2x32x1xf32> to vector<2x32xf32>
    %9 = vector.shape_cast %8 : vector<2x32xf32> to vector<2x32x1xf32>
    %cst_5 = arith.constant 3.906250e-03 : f32
    %10 = vector.broadcast %cst_5 : f32 to vector<2x32x1xf32>
    %11 = arith.mulf %7, %10 : vector<2x32x1xf32>
    %cst_6 = arith.constant 3.906250e-03 : f32
    %12 = vector.broadcast %cst_6 : f32 to vector<2x32x1xf32>
    %13 = arith.mulf %9, %12 : vector<2x32x1xf32>
    %14 = arith.mulf %11, %11 : vector<2x32x1xf32>
    %15 = arith.subf %13, %14 : vector<2x32x1xf32>
    %cst_7 = arith.constant 9.99999974E-6 : f32
    %16 = vector.broadcast %cst_7 : f32 to vector<2x32x1xf32>
    %17 = arith.addf %15, %16 : vector<2x32x1xf32>
    %18 = math.rsqrt %17 : vector<2x32x1xf32>
    %c0_8 = arith.constant 0 : index
    %c0_9 = arith.constant 0 : index
    %19 = vector.load %arg2[%c0_8, %c0_9] : memref<32x1xf32, #tpu.memory_space<vmem>>, vector<32x1xf32>
    %20 = vector.shape_cast %19 : vector<32x1xf32> to vector<1x32x1xf32>
    %21 = vector.broadcast %20 : vector<1x32x1xf32> to vector<2x32x1xf32>
    %22 = arith.mulf %18, %21 : vector<2x32x1xf32>
    %c0_10 = arith.constant 0 : index
    %c0_11 = arith.constant 0 : index
    %23 = vector.load %arg3[%c0_10, %c0_11] : memref<32x1xf32, #tpu.memory_space<vmem>>, vector<32x1xf32>
    %24 = arith.mulf %11, %22 : vector<2x32x1xf32>
    %25 = vector.shape_cast %23 : vector<32x1xf32> to vector<1x32x1xf32>
    %26 = vector.broadcast %25 : vector<1x32x1xf32> to vector<2x32x1xf32>
    %27 = arith.subf %26, %24 : vector<2x32x1xf32>
    %28 = vector.broadcast %22 : vector<2x32x1xf32> to vector<2x32x256xf32>
    %29 = arith.mulf %0, %28 : vector<2x32x256xf32>
    %30 = vector.broadcast %27 : vector<2x32x1xf32> to vector<2x32x256xf32>
    %31 = arith.addf %29, %30 : vector<2x32x256xf32>
    %32 = arith.truncf %31 : vector<2x32x256xf32> to vector<2x32x256xbf16>
    %c0_12 = arith.constant 0 : index
    %c0_13 = arith.constant 0 : index
    %33 = vector.load %arg4[%c0_12, %c0_13] : memref<96x32xf32, #tpu.memory_space<vmem>>, vector<96x32xf32>
    %34 = arith.truncf %33 : vector<96x32xf32> to vector<96x32xbf16>
    %c0_14 = arith.constant 0 : index
    %c0_15 = arith.constant 0 : index
    %35 = vector.load %arg5[%c0_14, %c0_15] : memref<96x1xf32, #tpu.memory_space<vmem>>, vector<96x1xf32>
    %c0_16 = arith.constant 0 : index
    %c0_17 = arith.constant 0 : index
    %36 = vector.load %arg6[%c0_16, %c0_17] : memref<32x32xf32, #tpu.memory_space<vmem>>, vector<32x32xf32>
    %c0_18 = arith.constant 0 : index
    %c0_19 = arith.constant 0 : index
    %37 = vector.load %arg7[%c0_18, %c0_19] : memref<32x1xf32, #tpu.memory_space<vmem>>, vector<32x1xf32>
    %c0_20 = arith.constant 0 : index
    %38 = memref.load %arg8[%c0_20] : memref<1xf32, #tpu.memory_space<smem>>
    %39 = vector.extract_strided_slice %32 {offsets = [0, 0, 0], sizes = [1, 32, 256], strides = [1, 1, 1]} : vector<2x32x256xbf16> to vector<1x32x256xbf16>
    %40 = vector.shape_cast %39 : vector<1x32x256xbf16> to vector<32x256xbf16>
    %cst_21 = arith.constant dense<0.000000e+00> : vector<96x256xf32>
    %41 = tpu.matmul %34, %40, %cst_21 {dimension_numbers = #tpu.dot_dimension_numbers<[1], [0], [0], [1], [0, 0, 1, 1], [], []>} : vector<96x32xbf16>, vector<32x256xbf16>, vector<96x256xf32> -> vector<96x256xf32>
    %42 = vector.broadcast %35 : vector<96x1xf32> to vector<96x256xf32>
    %43 = arith.addf %41, %42 : vector<96x256xf32>
    %44 = vector.extract_strided_slice %43 {offsets = [0, 0], sizes = [32, 256], strides = [1, 1]} : vector<96x256xf32> to vector<32x256xf32>
    %cst_22 = arith.constant 0.176776692 : f32
    %45 = vector.broadcast %cst_22 : f32 to vector<32x256xf32>
    %46 = arith.mulf %44, %45 : vector<32x256xf32>
    %47 = arith.truncf %46 : vector<32x256xf32> to vector<32x256xbf16>
    %48 = vector.extract_strided_slice %43 {offsets = [32, 0], sizes = [32, 256], strides = [1, 1]} : vector<96x256xf32> to vector<32x256xf32>
    %49 = arith.truncf %48 : vector<32x256xf32> to vector<32x256xbf16>
    %50 = vector.extract_strided_slice %43 {offsets = [64, 0], sizes = [32, 256], strides = [1, 1]} : vector<96x256xf32> to vector<32x256xf32>
    %51 = arith.truncf %50 : vector<32x256xf32> to vector<32x256xbf16>
    %cst_23 = arith.constant dense<0.000000e+00> : vector<256x256xf32>
    %52 = tpu.matmul %47, %49, %cst_23 {dimension_numbers = #tpu.dot_dimension_numbers<[0], [0], [1], [1], [0, 1, 1, 1], [], []>} : vector<32x256xbf16>, vector<32x256xbf16>, vector<256x256xf32> -> vector<256x256xf32>
    %cst_24 = arith.constant dense<0xFF800000> : vector<256xf32>
    %53 = vector.multi_reduction <maximumf>, %52, %cst_24 [1] : vector<256x256xf32> to vector<256xf32>
    %54 = vector.shape_cast %53 : vector<256xf32> to vector<256x1xf32>
    %55 = vector.broadcast %54 : vector<256x1xf32> to vector<256x256xf32>
    %56 = arith.subf %52, %55 : vector<256x256xf32>
    %57 = math.exp %56 : vector<256x256xf32>
    %58 = arith.truncf %57 : vector<256x256xf32> to vector<256x256xbf16>
    %cst_25 = arith.constant 1.000000e+00 : bf16
    %59 = vector.broadcast %cst_25 : bf16 to vector<1x256xbf16>
    %60 = tpu.concatenate %51, %59 in 0 : vector<32x256xbf16>, vector<1x256xbf16> -> vector<33x256xbf16>
    %cst_26 = arith.constant dense<0.000000e+00> : vector<33x256xf32>
    %61 = tpu.matmul %60, %58, %cst_26 {dimension_numbers = #tpu.dot_dimension_numbers<[1], [1], [0], [0], [0, 0, 1, 0], [], []>} : vector<33x256xbf16>, vector<256x256xbf16>, vector<33x256xf32> -> vector<33x256xf32>
    %62 = vector.extract_strided_slice %61 {offsets = [32, 0], sizes = [1, 256], strides = [1, 1]} : vector<33x256xf32> to vector<1x256xf32>
    %63 = tpu.reciprocal %62 {approx = true} : vector<1x256xf32> -> vector<1x256xf32>
    %64 = vector.extract_strided_slice %61 {offsets = [0, 0], sizes = [32, 256], strides = [1, 1]} : vector<33x256xf32> to vector<32x256xf32>
    %65 = vector.broadcast %63 : vector<1x256xf32> to vector<32x256xf32>
    %66 = arith.mulf %64, %65 : vector<32x256xf32>
    %cst_27 = arith.constant dense<0.000000e+00> : vector<32x256xf32>
    %67 = tpu.matmul %36, %66, %cst_27 {dimension_numbers = #tpu.dot_dimension_numbers<[1], [0], [0], [1], [0, 0, 1, 1], [], []>} : vector<32x32xf32>, vector<32x256xf32>, vector<32x256xf32> -> vector<32x256xf32>
    %68 = vector.broadcast %37 : vector<32x1xf32> to vector<32x256xf32>
    %69 = arith.addf %67, %68 : vector<32x256xf32>
    %70 = vector.broadcast %38 : f32 to vector<32x256xf32>
    %71 = arith.addf %70, %69 : vector<32x256xf32>
    %72 = vector.extract_strided_slice %0 {offsets = [0, 0, 0], sizes = [1, 32, 256], strides = [1, 1, 1]} : vector<2x32x256xf32> to vector<1x32x256xf32>
    %73 = vector.shape_cast %72 : vector<1x32x256xf32> to vector<32x256xf32>
    %74 = arith.addf %71, %73 : vector<32x256xf32>
    %c0_28 = arith.constant 0 : index
    %c0_29 = arith.constant 0 : index
    %c0_30 = arith.constant 0 : index
    %75 = vector.load %arg9[%c0_28, %c0_29, %c0_30] : memref<2x32x256xf32, #tpu.memory_space<vmem>>, vector<1x32x256xf32>
    %76 = vector.shape_cast %75 : vector<1x32x256xf32> to vector<32x256xf32>
    %77 = vector.shape_cast %74 : vector<32x256xf32> to vector<1x32x256xf32>
    tpu.vector_store %arg9[%c0_28, %c0_29, %c0_30], %77 {strides = array<i32>} : memref<2x32x256xf32, #tpu.memory_space<vmem>>, vector<1x32x256xf32>,
    %78 = vector.extract_strided_slice %32 {offsets = [1, 0, 0], sizes = [1, 32, 256], strides = [1, 1, 1]} : vector<2x32x256xbf16> to vector<1x32x256xbf16>
    %79 = vector.shape_cast %78 : vector<1x32x256xbf16> to vector<32x256xbf16>
    %cst_31 = arith.constant dense<0.000000e+00> : vector<96x256xf32>
    %80 = tpu.matmul %34, %79, %cst_31 {dimension_numbers = #tpu.dot_dimension_numbers<[1], [0], [0], [1], [0, 0, 1, 1], [], []>} : vector<96x32xbf16>, vector<32x256xbf16>, vector<96x256xf32> -> vector<96x256xf32>
    %81 = vector.broadcast %35 : vector<96x1xf32> to vector<96x256xf32>
    %82 = arith.addf %80, %81 : vector<96x256xf32>
    %83 = vector.extract_strided_slice %82 {offsets = [0, 0], sizes = [32, 256], strides = [1, 1]} : vector<96x256xf32> to vector<32x256xf32>
    %cst_32 = arith.constant 0.176776692 : f32
    %84 = vector.broadcast %cst_32 : f32 to vector<32x256xf32>
    %85 = arith.mulf %83, %84 : vector<32x256xf32>
    %86 = arith.truncf %85 : vector<32x256xf32> to vector<32x256xbf16>
    %87 = vector.extract_strided_slice %82 {offsets = [32, 0], sizes = [32, 256], strides = [1, 1]} : vector<96x256xf32> to vector<32x256xf32>
    %88 = arith.truncf %87 : vector<32x256xf32> to vector<32x256xbf16>
    %89 = vector.extract_strided_slice %82 {offsets = [64, 0], sizes = [32, 256], strides = [1, 1]} : vector<96x256xf32> to vector<32x256xf32>
    %90 = arith.truncf %89 : vector<32x256xf32> to vector<32x256xbf16>
    %cst_33 = arith.constant dense<0.000000e+00> : vector<256x256xf32>
    %91 = tpu.matmul %86, %88, %cst_33 {dimension_numbers = #tpu.dot_dimension_numbers<[0], [0], [1], [1], [0, 1, 1, 1], [], []>} : vector<32x256xbf16>, vector<32x256xbf16>, vector<256x256xf32> -> vector<256x256xf32>
    %cst_34 = arith.constant dense<0xFF800000> : vector<256xf32>
    %92 = vector.multi_reduction <maximumf>, %91, %cst_34 [1] : vector<256x256xf32> to vector<256xf32>
    %93 = vector.shape_cast %92 : vector<256xf32> to vector<256x1xf32>
    %94 = vector.broadcast %93 : vector<256x1xf32> to vector<256x256xf32>
    %95 = arith.subf %91, %94 : vector<256x256xf32>
    %96 = math.exp %95 : vector<256x256xf32>
    %97 = arith.truncf %96 : vector<256x256xf32> to vector<256x256xbf16>
    %cst_35 = arith.constant 1.000000e+00 : bf16
    %98 = vector.broadcast %cst_35 : bf16 to vector<1x256xbf16>
    %99 = tpu.concatenate %90, %98 in 0 : vector<32x256xbf16>, vector<1x256xbf16> -> vector<33x256xbf16>
    %cst_36 = arith.constant dense<0.000000e+00> : vector<33x256xf32>
    %100 = tpu.matmul %99, %97, %cst_36 {dimension_numbers = #tpu.dot_dimension_numbers<[1], [1], [0], [0], [0, 0, 1, 0], [], []>} : vector<33x256xbf16>, vector<256x256xbf16>, vector<33x256xf32> -> vector<33x256xf32>
    %101 = vector.extract_strided_slice %100 {offsets = [32, 0], sizes = [1, 256], strides = [1, 1]} : vector<33x256xf32> to vector<1x256xf32>
    %102 = tpu.reciprocal %101 {approx = true} : vector<1x256xf32> -> vector<1x256xf32>
    %103 = vector.extract_strided_slice %100 {offsets = [0, 0], sizes = [32, 256], strides = [1, 1]} : vector<33x256xf32> to vector<32x256xf32>
    %104 = vector.broadcast %102 : vector<1x256xf32> to vector<32x256xf32>
    %105 = arith.mulf %103, %104 : vector<32x256xf32>
    %cst_37 = arith.constant dense<0.000000e+00> : vector<32x256xf32>
    %106 = tpu.matmul %36, %105, %cst_37 {dimension_numbers = #tpu.dot_dimension_numbers<[1], [0], [0], [1], [0, 0, 1, 1], [], []>} : vector<32x32xf32>, vector<32x256xf32>, vector<32x256xf32> -> vector<32x256xf32>
    %107 = vector.broadcast %37 : vector<32x1xf32> to vector<32x256xf32>
    %108 = arith.addf %106, %107 : vector<32x256xf32>
    %109 = vector.broadcast %38 : f32 to vector<32x256xf32>
    %110 = arith.addf %109, %108 : vector<32x256xf32>
    %111 = vector.extract_strided_slice %0 {offsets = [1, 0, 0], sizes = [1, 32, 256], strides = [1, 1, 1]} : vector<2x32x256xf32> to vector<1x32x256xf32>
    %112 = vector.shape_cast %111 : vector<1x32x256xf32> to vector<32x256xf32>
    %113 = arith.addf %110, %112 : vector<32x256xf32>
    %c1 = arith.constant 1 : index
    %c0_38 = arith.constant 0 : index
    %c0_39 = arith.constant 0 : index
    %114 = vector.load %arg9[%c1, %c0_38, %c0_39] : memref<2x32x256xf32, #tpu.memory_space<vmem>>, vector<1x32x256xf32>
    %115 = vector.shape_cast %114 : vector<1x32x256xf32> to vector<32x256xf32>
    %116 = vector.shape_cast %113 : vector<32x256xf32> to vector<1x32x256xf32>
    tpu.vector_store %arg9[%c1, %c0_38, %c0_39], %116 {strides = array<i32>} : memref<2x32x256xf32, #tpu.memory_space<vmem>>, vector<1x32x256xf32>,
    return
  }
  func.func @transform_0(%arg0: i32) -> (i32, i32, i32) {
    %c0_i32 = arith.constant 0 : i32
    %c0_i32_0 = arith.constant 0 : i32
    %c0_i32_1 = arith.constant 0 : i32
    return %arg0, %c0_i32, %c0_i32_0 : i32, i32, i32
  }
  func.func @transform_1(%arg0: i32) -> (i32, i32) {
    %c0_i32 = arith.constant 0 : i32
    %c0_i32_0 = arith.constant 0 : i32
    %c0_i32_1 = arith.constant 0 : i32
    return %c0_i32, %c0_i32_0 : i32, i32
  }
  func.func @transform_2(%arg0: i32) -> (i32, i32) {
    %c0_i32 = arith.constant 0 : i32
    %c0_i32_0 = arith.constant 0 : i32
    %c0_i32_1 = arith.constant 0 : i32
    return %c0_i32, %c0_i32_0 : i32, i32
  }
  func.func @transform_3(%arg0: i32) -> (i32, i32) {
    %c0_i32 = arith.constant 0 : i32
    %c0_i32_0 = arith.constant 0 : i32
    %c0_i32_1 = arith.constant 0 : i32
    return %c0_i32, %c0_i32_0 : i32, i32
  }
  func.func @transform_4(%arg0: i32) -> (i32, i32) {
    %c0_i32 = arith.constant 0 : i32
    %c0_i32_0 = arith.constant 0 : i32
    %c0_i32_1 = arith.constant 0 : i32
    return %c0_i32, %c0_i32_0 : i32, i32
  }
  func.func @transform_5(%arg0: i32) -> (i32, i32) {
    %c0_i32 = arith.constant 0 : i32
    %c0_i32_0 = arith.constant 0 : i32
    %c0_i32_1 = arith.constant 0 : i32
    return %c0_i32, %c0_i32_0 : i32, i32
  }
  func.func @transform_6(%arg0: i32) -> (i32, i32) {
    %c0_i32 = arith.constant 0 : i32
    %c0_i32_0 = arith.constant 0 : i32
    %c0_i32_1 = arith.constant 0 : i32
    return %c0_i32, %c0_i32_0 : i32, i32
  }
  func.func @transform_7(%arg0: i32) -> i32 {
    %c0_i32 = arith.constant 0 : i32
    %c0_i32_0 = arith.constant 0 : i32
    return %c0_i32 : i32
  }
  func.func @transform_8(%arg0: i32) -> (i32, i32, i32) {
    %c0_i32 = arith.constant 0 : i32
    %c0_i32_0 = arith.constant 0 : i32
    %c0_i32_1 = arith.constant 0 : i32
    return %arg0, %c0_i32, %c0_i32_0 : i32, i32, i32
  }
}

</mosaic_0001>

<bundles_post_ra>
// kernel: tpu_custom_call.1
= control target key start
LH: loop header
LB: loop body
LE: loop exit
PB: predicated region body
PF: predicated region fallthrough
CT: control target
= control target key end

     0   :  { %s3959_s0 = inlined_call_operand.vmem [shape: f32[2,32,256], index: 0, kind: input, shape index: {}]   ;;  %s3960_s1 = inlined_call_operand.vmem [shape: f32[32,1], index: 1, kind: input, shape index: {}]   ;;  %s3961_s2 = inlined_call_operand.vmem [shape: f32[32,1], index: 2, kind: input, shape index: {}]   ;;  %s3962_s3 = inlined_call_operand.vmem [shape: f32[96,32], index: 3, kind: input, shape index: {}]   ;;  %s3963_s4 = inlined_call_operand.vmem [shape: f32[96,1], index: 4, kind: input, shape index: {}]   ;;  %s3964_s5 = inlined_call_operand.vmem [shape: f32[32,32], index: 5, kind: input, shape index: {}]   ;;  %s3965_s6 = inlined_call_operand.vmem [shape: f32[32,1], index: 6, kind: input, shape index: {}]   ;;  %s3966_s7 = inlined_call_operand.<no memory space> [shape: f32[1], index: 7, kind: input, shape index: {}]   ;;  %s3967_s8 = inlined_call_operand.hbm [shape: f32[2,32,256], index: 8, kind: output, shape index: {}]  }
   0x1   :  { %v2755_v0 = vld [vmem:[%s3959_s0] sm:$0xff]  ;;  %v2760_v1 = vld [vmem:[%s3959_s0 + $0x8] sm:$0xff]  ;;  %v2765_v2 = vld [vmem:[%s3959_s0 + $0x10] sm:$0xff] }
   0x2   :  { %v49_v3 = vadd.f32 %v2760_v1, %v2755_v0  ;;  %v73_v4 = vmul.f32 %v2755_v0, %v2755_v0  ;;  %v74_v5 = vmul.f32 %v2760_v1, %v2760_v1  ;;  %v2776_v6 = vld [vmem:[%s3959_s0 + $0x18] sm:$0xff]  ;;  %v75_v7 = vmul.f32 %v2765_v2, %v2765_v2 }
   0x3   :  { %v76_v8 = vmul.f32 %v2776_v6, %v2776_v6 }
   0x4   :  { %14 = vsyncpa [#allocation4], 0  ;;  %50 = vadd.xlane.f32.xlu0 %v49_v3  ;;  %v89_v9 = vadd.f32 %v74_v5, %v73_v4  ;;  %v52_v10 = vadd.f32 %v2776_v6, %v2765_v2  ;;  %v2787_v11 = vld [vmem:[%s3959_s0 + $0x20] sm:$0xff]  ;;  %v2792_v12 = vld [vmem:[%s3959_s0 + $0x28] sm:$0xff]  ;;  %v3968_v24 = vmov 0   ;;  %vm428_vm0 = vcmask 261120  }
   0x5   :  { %v92_v13 = vadd.f32 %v76_v8, %v75_v7  ;;  %v2797_v14 = vld [vmem:[%s3959_s0 + $0x30] sm:$0xff]  ;;  %v2802_v15 = vld [vmem:[%s3959_s0 + $0x38] sm:$0xff]  ;;  %v55_v16 = vadd.f32 %v2792_v12, %v2787_v11  ;;  %v77_v17 = vmul.f32 %v2787_v11, %v2787_v11  ;;  %v78_v18 = vmul.f32 %v2792_v12, %v2792_v12  ;;  %2367 = vset.pattern.permute.xlu0 %v3968_v24  ;;  %v177_v52 = vld [vmem:[%s3960_s1] sm:$0xff]  ;;  %s2704_s23 = smov [#allocation3]  }
   0x6   :  { %90 = vadd.xlane.f32.xlu1 %v89_v9  ;;  %v58_v19 = vadd.f32 %v2802_v15, %v2797_v14  ;;  %v79_v20 = vmul.f32 %v2797_v14, %v2797_v14  ;;  %v80_v21 = vmul.f32 %v2802_v15, %v2802_v15  ;;  %479 = vmatprep.mubr.bf16.mxu0 %v3968_v24  ;;  %v178_v56 = vld [vmem:[%s3960_s1 + $0x8] sm:$0xff]  ;;  %v179_v60 = vld [vmem:[%s3960_s1 + $0x10] sm:$0xff]  ;;  %v350_v61 = vld [vmem:[%s3963_s4 + $0x18] sm:$0xff]  ;;  %s2282_s24 = sshll.u32 %s2704_s23, 4  ;;  %s2283_s24 = int_to_ptr.vmem [resolvable:$true] %s2282_s24 }
   0x7   :  { %v95_v22 = vadd.f32 %v78_v18, %v77_v17  ;;  %2368 = vset.pattern.permute.xlu1 %v3968_v24  ;;  %672 = vmatprep.mubr.bf16.mxu1 %v3968_v24  ;;  %v348_v58 = vld [vmem:[%s3963_s4 + $0x8] sm:$0xff]  ;;  %v180_v4 = vld [vmem:[%s3960_s1 + $0x18] sm:$0xff]  ;;  %v189_v9 = vld [vmem:[%s3961_s2] sm:$0xff]  ;;  %s2677_s27 = scalar_lea.vmem %s2283_s24, 2048  ;;  %p2682_p1 = scmp.lt.s32.totalorder %s2283_s24, %s2283_s24 }
   0x8   :  { %53 = vadd.xlane.f32.xlu0 %v52_v10  ;;  %v98_v23 = vadd.f32 %v80_v21, %v79_v20  ;;  %v352_v5 = vld [vmem:[%s3963_s4 + $0x28] sm:$0xff]  ;;  %v354_v10 = vld [vmem:[%s3963_s4 + $0x38] sm:$0xff]  ;;  %v191_v20 = vld [vmem:[%s3961_s2 + $0x10] sm:$0xff]  ;;  %p2678_p0 = scmp.ne.s32.totalorder %s2283_s24, %s2677_s27  ;;  %p2683_p2 = scmp.lt.s32.totalorder %s2677_s27, %s2677_s27 }
   0x9   :  { %v190_v17 = vld [vmem:[%s3961_s2 + $0x8] sm:$0xff] }
   0xa   :  { %93 = vadd.xlane.f32.xlu1 %v92_v13  ;;  %p2684_p3 = por %p2683_p2, %p2682_p1 }
   0xc   :  { %56 = vadd.xlane.f32.xlu0 %v55_v16  ;;  %p2685_p4 = pnand %p2684_p3, %p2678_p0 }
   0xe   :  { %59 = vadd.xlane.f32.xlu1 %v58_v19 }
  0x10   :  { %96 = vadd.xlane.f32.xlu0 %v95_v22 }
  0x12   :  { %99 = vadd.xlane.f32.xlu1 %v98_v23  ;;  %v192_v23 = vld [vmem:[%s3961_s2 + $0x18] sm:$0xff] }
  0x91   :  { %v51_v25 = vpop.xlane.xlu0 %50 }
  0x92   :  { %v129_v26 = vmul.f32 0.00390625, %v51_v25 }
  0x93   :  { %v91_v27 = vpop.xlane.xlu1 %90 }
  0x94   :  { %v145_v28 = vmul.f32 %v129_v26, %v129_v26  ;;  %v137_v29 = vmul.f32 0.00390625, %v91_v27  ;;  %v349_v27 = vld [vmem:[%s3963_s4 + $0x10] sm:$0xff] }
  0x95   :  { %v54_v30 = vpop.xlane.xlu0 %53 }
  0x96   :  { %v153_v31 = vsub.f32 %v137_v29, %v145_v28  ;;  %v130_v32 = vmul.f32 0.00390625, %v54_v30  ;;  %v351_v28 = vld [vmem:[%s3963_s4 + $0x20] sm:$0xff]  ;;  %v353_v29 = vld [vmem:[%s3963_s4 + $0x30] sm:$0xff] }
  0x97   :  { %v94_v33 = vpop.xlane.xlu1 %93 }
  0x98   :  { %v161_v34 = vadd.f32 1e-05, %v153_v31  ;;  %v146_v35 = vmul.f32 %v130_v32, %v130_v32  ;;  %v138_v36 = vmul.f32 0.00390625, %v94_v33 }
  0x99   :  { %v57_v37 = vpop.xlane.xlu0 %56 }
  0x9a   :  { %2369 = vrsqrt.f32 %v161_v34  ;;  %v154_v38 = vsub.f32 %v138_v36, %v146_v35  ;;  %v131_v39 = vmul.f32 0.00390625, %v57_v37 }
  0x9b   :  { %v60_v40 = vpop.xlane.xlu1 %59 }
  0x9c   :  { %v162_v41 = vadd.f32 1e-05, %v154_v38  ;;  %v132_v42 = vmul.f32 0.00390625, %v60_v40  ;;  %v147_v44 = vmul.f32 %v131_v39, %v131_v39 }
  0x9d   :  { %v97_v43 = vpop.xlane.xlu0 %96 }
  0x9e   :  { %2371 = vrsqrt.f32 %v162_v41  ;;  %v148_v45 = vmul.f32 %v132_v42, %v132_v42  ;;  %v139_v46 = vmul.f32 0.00390625, %v97_v43 }
  0x9f   :  { %v100_v47 = vpop.xlane.xlu1 %99 }
  0xa0   :  { %v155_v48 = vsub.f32 %v139_v46, %v147_v44  ;;  %v140_v49 = vmul.f32 0.00390625, %v100_v47 }
  0xa2   :  { %v163_v50 = vadd.f32 1e-05, %v155_v48  ;;  %v156_v51 = vsub.f32 %v140_v49, %v148_v45 }
  0xa4   :  { %v2370_v53 = vpop.eup %2369  ;;  %2373 = vrsqrt.f32 %v163_v50  ;;  %v164_v54 = vadd.f32 1e-05, %v156_v51 }
  0xa5   :  { %v181_v55 = vmul.f32 %v2370_v53, %v177_v52  ;;  %v329_v52 = vld [vmem:[%s3962_s3] sm:$0xff]  ;;  %v330_v53 = vld [vmem:[%s3962_s3 + $0x8] sm:$0xff] }
  0xa6   :  { %2375 = vrsqrt.f32 %v164_v54 }
  0xa7   :  { %211 = vperm.xlu0 %2367, %v181_v55   ;;  %v193_v8 = vmul.f32 %v181_v55, %v129_v26  ;;  %v347_v26 = vld [vmem:[%s3963_s4] sm:$0xff] }
  0xa8   :  { %v2372_v57 = vpop.eup %2371 }
  0xa9   :  { %v182_v59 = vmul.f32 %v2372_v57, %v178_v56  ;;  %v201_v13 = vsub.f32 %v189_v9, %v193_v8  ;;  %v333_v56 = vld [vmem:[%s3962_s3 + $0x20] sm:$0xff]  ;;  %v334_v57 = vld [vmem:[%s3962_s3 + $0x28] sm:$0xff] }
  0xab   :  { %216 = vperm.xlu1 %2368, %v182_v59   ;;  %375 = vperm.xlu0 %2367, %v348_v58   ;;  %v194_v16 = vmul.f32 %v182_v59, %v130_v32  ;;  %v2904_v58 = vpack.c.bf16 %v334_v57, %v333_v56  ;;  %v335_v59 = vld [vmem:[%s3962_s3 + $0x30] sm:$0xff] }
  0xad   :  { %v202_v18 = vsub.f32 %v190_v17, %v194_v16  ;;  %4032 = vst [vmem:[#allocation8_spill] sm:$0xff] %v2904_v58 }
  0xae   :  { %v2374_v62 = vpop.eup %2373 }
  0xaf   :  { %v183_v63 = vmul.f32 %v2374_v62, %v179_v60  ;;  %385 = vperm.xlu0 %2367, %v350_v61   ;;  %v336_v60 = vld [vmem:[%s3962_s3 + $0x38] sm:$0xff] }
  0xb0   :  { %v2376_v3 = vpop.eup %2375  ;;  %v2915_v61 = vpack.c.bf16 %v336_v60, %v335_v59 }
  0xb1   :  { %221 = vperm.xlu1 %2368, %v183_v63   ;;  %v184_v7 = vmul.f32 %v2376_v3, %v180_v4  ;;  %v195_v19 = vmul.f32 %v183_v63, %v131_v39 }
  0xb2   :  { %4033 = vst [vmem:[#allocation9_spill] sm:$0xff] %v2915_v61 }
  0xb3   :  { %395 = vperm.xlu0 %2367, %v352_v5   ;;  %v203_v21 = vsub.f32 %v191_v20, %v195_v19  ;;  %v196_v22 = vmul.f32 %v184_v7, %v132_v42 }
  0xb5   :  { %226 = vperm.xlu1 %2368, %v184_v7   ;;  %v204_v25 = vsub.f32 %v192_v23, %v196_v22 }
  0xb7   :  { %405 = vperm.xlu0 %2367, %v354_v10  }
  0xb9   :  { %267 = vperm.xlu1 %2368, %v201_v13  }
  0xbd   :  { %272 = vperm.xlu1 %2368, %v202_v18  }
  0xc1   :  { %277 = vperm.xlu1 %2368, %v203_v21  }
  0xc5   :  { %282 = vperm.xlu1 %2368, %v204_v25  }
  0xc9   :  { %370 = vperm.xlu1 %2368, %v347_v26  }
  0xcd   :  { %380 = vperm.xlu1 %2368, %v349_v27  }
  0xd1   :  { %390 = vperm.xlu1 %2368, %v351_v28  }
  0xd5   :  { %400 = vperm.xlu1 %2368, %v353_v29  }
 0x126   :  { %v212_v33 = vpop.permute.xlu0 %211 }
 0x127   :  { %v249_v35 = vmul.f32 %v212_v33, %v2755_v0  ;;  %v250_v36 = vmul.f32 %v212_v33, %v2760_v1 }
 0x12a   :  { %v217_v30 = vpop.permute.xlu1 %216  ;;  %v2923_v5 = vpop.permute.xlu0 %375 }
 0x12b   :  { %v251_v37 = vmul.f32 %v217_v30, %v2765_v2  ;;  %v252_v38 = vmul.f32 %v217_v30, %v2776_v6  ;;  %4035 = vst [vmem:[#allocation11_spill] sm:$0xff] %v2923_v5 }
 0x12e   :  { %v2931_v27 = vpop.permute.xlu0 %385 }
 0x12f   :  { %4037 = vst [vmem:[#allocation13_spill] sm:$0xff] %v2931_v27 }
 0x130   :  { %v222_v31 = vpop.permute.xlu1 %221 }
 0x131   :  { %v253_v47 = vmul.f32 %v222_v31, %v2787_v11  ;;  %v254_v0 = vmul.f32 %v222_v31, %v2792_v12  ;;  %v2882_v12 = vpack.c.bf16 %v330_v53, %v329_v52 }
 0x133   :  { %4030 = vst [vmem:[#allocation6_spill] sm:$0xff] %v2882_v12 }
 0x134   :  { %v227_v32 = vpop.permute.xlu1 %226 }
 0x135   :  { %v255_v1 = vmul.f32 %v227_v32, %v2797_v14  ;;  %v256_v2 = vmul.f32 %v227_v32, %v2802_v15  ;;  %v331_v14 = vld [vmem:[%s3962_s3 + $0x10] sm:$0xff]  ;;  %v332_v15 = vld [vmem:[%s3962_s3 + $0x18] sm:$0xff] }
 0x136   :  { %v2893_v55 = vpack.c.bf16 %v332_v15, %v331_v14 }
 0x138   :  { %v268_v34 = vpop.permute.xlu1 %267  ;;  %4031 = vst [vmem:[#allocation7_spill] sm:$0xff] %v2893_v55 }
 0x139   :  { %v306_v40 = vadd.f32 %v268_v34, %v250_v36  ;;  %v305_v42 = vadd.f32 %v268_v34, %v249_v35 }
 0x13c   :  { %v273_v39 = vpop.permute.xlu1 %272 }
 0x13d   :  { %v308_v41 = vadd.f32 %v273_v39, %v252_v38  ;;  %v307_v43 = vadd.f32 %v273_v39, %v251_v37 }
 0x13f   :  { %v322_v44 = vpack.c.bf16 %v308_v41, %v306_v40  ;;  %v321_v45 = vpack.c.bf16 %v307_v43, %v305_v42  ;;  %v2936_v40 = vpop.permute.xlu0 %395 }
 0x140   :  { %v278_v46 = vpop.permute.xlu1 %277  ;;  %4038 = vst [vmem:[#allocation14_spill] sm:$0xff] %v2936_v40 }
 0x141   :  { %447 = vmatprep.subr.bf16.mxu0 %v322_v44  ;;  %v309_v6 = vadd.f32 %v278_v46, %v253_v47  ;;  %v310_v49 = vadd.f32 %v278_v46, %v254_v0 }
 0x142   :  { %448 = vmatpush1.bf16.msra.mxu0 %v321_v45 }
 0x144   :  { %v283_v48 = vpop.permute.xlu1 %282 }
 0x145   :  { %v311_v50 = vadd.f32 %v283_v48, %v255_v1  ;;  %v312_v51 = vadd.f32 %v283_v48, %v256_v2 }
 0x147   :  { %v324_v11 = vpack.c.bf16 %v312_v51, %v310_v49  ;;  %v323_v54 = vpack.c.bf16 %v311_v50, %v309_v6  ;;  %v2944_v6 = vpop.permute.xlu0 %405 }
 0x148   :  { %v2920_v62 = vpop.permute.xlu1 %370  ;;  %4040 = vst [vmem:[#allocation16_spill] sm:$0xff] %v2944_v6 }
 0x149   :  { %449 = vmatprep.subr.bf16.mxu0 %v324_v11  ;;  %4034 = vst [vmem:[#allocation10_spill] sm:$0xff] %v2920_v62 }
 0x14a   :  { %450 = vmatpush1.bf16.msra.mxu0 %v323_v54 }
 0x14c   :  { %v2928_v21 = vpop.permute.xlu1 %380 }
 0x14d   :  { %2293 = vmatmul.mubr.msk.bf16.vlgmr.msra.gmra.mrb[0].mxu0 %vm428_vm0, %v2882_v12  ;;  %4036 = vst [vmem:[#allocation12_spill] sm:$0xff] %v2928_v21 }
 0x14e   :  { %489 = vmatprep.mubr.bf16.mxu0 %v3968_v24 }
 0x150   :  { %v2938_v42 = vpop.permute.xlu1 %390 }
 0x151   :  { %4039 = vst [vmem:[#allocation15_spill] sm:$0xff] %v2938_v42 }
 0x154   :  { %v2946_v50 = vpop.permute.xlu1 %400 }
 0x155   :  { %2294 = vmatmul.mubr.msk.bf16.gmra.mrb[4].mxu0 %vm428_vm0, %v2893_v55  ;;  %4041 = vst [vmem:[#allocation17_spill] sm:$0xff] %v2946_v50 }
 0x156   :  { %499 = vmatprep.mubr.bf16.mxu0 %v3968_v24 }
 0x15d   :  { %2295 = vmatmul.mubr.msk.bf16.gmra.mrb[8].mxu0 %vm428_vm0, %v2904_v58 }
 0x15e   :  { %509 = vmatprep.mubr.bf16.mxu0 %v3968_v24 }
 0x165   :  { %2296 = vmatmul.mubr.msk.bf16.gmra.mrb[12].mxu0 %vm428_vm0, %v2915_v61 }
 0x166   :  { %519 = vmatprep.mubr.bf16.mxu0 %v3968_v24 }
 0x220   :  { %v481_v63 = vpop.f32.mrb[0].mxu0 }
 0x221   :  { %v482_v3 = vadd.f32 %v481_v63, %v2920_v62  ;;  %v483_v4 = vpop.f32.mrb[1].mxu0 }
 0x222   :  { %v484_v7 = vadd.f32 %v483_v4, %v2920_v62  ;;  %v485_v8 = vpop.f32.mrb[2].mxu0 }
 0x223   :  { %v486_v9 = vadd.f32 %v485_v8, %v2923_v5  ;;  %v487_v10 = vpop.f32.mrb[3].mxu0  ;;  %v540_v16 = vmul.f32 0.17677669, %v482_v3 }
 0x224   :  { %v488_v13 = vadd.f32 %v487_v10, %v2923_v5  ;;  %v541_v18 = vmul.f32 0.17677669, %v484_v7 }
 0x225   :  { %v542_v17 = vmul.f32 0.17677669, %v486_v9 }
 0x226   :  { %v543_v19 = vmul.f32 0.17677669, %v488_v13 }
 0x227   :  { %v548_v20 = vpack.c.bf16 %v542_v17, %v540_v16 }
 0x228   :  { %v549_v22 = vpack.c.bf16 %v543_v19, %v541_v18  ;;  %v491_v23 = vpop.f32.mrb[4].mxu0 }
 0x229   :  { %v492_v25 = vadd.f32 %v491_v23, %v2928_v21  ;;  %v493_v26 = vpop.f32.mrb[5].mxu0  ;;  %560 = vxpose.xlu1.c.b16.start [1/2] (short) %v548_v20, 128  ;;  %v338_v23 = vld [vmem:[%s3962_s3 + $0x48] sm:$0xff] }
 0x22a   :  { %v494_v28 = vadd.f32 %v493_v26, %v2928_v21  ;;  %v495_v29 = vpop.f32.mrb[6].mxu0  ;;  %576 = vxpose.xlu0.c.b16.start [1/2] (short) %v549_v22, 128  ;;  %v337_v22 = vld [vmem:[%s3962_s3 + $0x40] sm:$0xff]  ;;  %v339_v26 = vld [vmem:[%s3962_s3 + $0x50] sm:$0xff] }
 0x22b   :  { %v496_v30 = vadd.f32 %v495_v29, %v2931_v27  ;;  %v497_v31 = vpop.f32.mrb[7].mxu0  ;;  %v544_v33 = vmul.f32 0.17677669, %v492_v25  ;;  %v2989_v25 = vpack.c.bf16 %v338_v23, %v337_v22 }
 0x22c   :  { %v498_v32 = vadd.f32 %v497_v31, %v2931_v27  ;;  %v545_v35 = vmul.f32 0.17677669, %v494_v28  ;;  %v340_v28 = vld [vmem:[%s3962_s3 + $0x58] sm:$0xff] }
 0x22d   :  { %v546_v34 = vmul.f32 0.17677669, %v496_v30  ;;  %4042 = vst [vmem:[#allocation18_spill] sm:$0xff] %v2989_v25  ;;  %2297 = vmatmul.mubr.msk.bf16.gmra.mrb[16].mxu0 %vm428_vm0, %v2989_v25  ;;  %v3000_v29 = vpack.c.bf16 %v340_v28, %v339_v26 }
 0x22e   :  { %v547_v36 = vmul.f32 0.17677669, %v498_v32  ;;  %529 = vmatprep.mubr.bf16.mxu0 %v3968_v24 }
 0x22f   :  { %v550_v37 = vpack.c.bf16 %v546_v34, %v544_v33  ;;  %4043 = vst [vmem:[#allocation19_spill] sm:$0xff] %v3000_v29 }
 0x230   :  { %v551_v38 = vpack.c.bf16 %v547_v36, %v545_v35  ;;  %v501_v39 = vpop.f32.mrb[8].mxu0 }
 0x231   :  { %v503_v41 = vpop.f32.mrb[9].mxu0  ;;  %561 = vxpose.xlu1.c.b16.end [2/2] (short) %v550_v37, 128  ;;  %v502_v44 = vadd.f32 %v501_v39, %v2938_v42 }
 0x232   :  { %v505_v43 = vpop.f32.mrb[10].mxu0  ;;  %577 = vxpose.xlu0.c.b16.end [2/2] (short) %v551_v38, 128  ;;  %v504_v47 = vadd.f32 %v503_v41, %v2938_v42 }
 0x233   :  { %v506_v45 = vadd.f32 %v505_v43, %v2936_v40  ;;  %v507_v46 = vpop.f32.mrb[11].mxu0 }
 0x234   :  { %v508_v0 = vadd.f32 %v507_v46, %v2936_v40 }
 0x235   :  { %v552_v1 = vpack.c.bf16 %v506_v45, %v502_v44  ;;  %2298 = vmatmul.mubr.msk.bf16.gmra.mrb[20].mxu0 %vm428_vm0, %v3000_v29 }
 0x236   :  { %v553_v2 = vpack.c.bf16 %v508_v0, %v504_v47 }
 0x238   :  { %v511_v48 = vpop.f32.mrb[12].mxu0  ;;  %640 = vmatprep.subr.bf16.mxu1 %v553_v2 }
 0x239   :  { %v513_v49 = vpop.f32.mrb[13].mxu0  ;;  %641 = vmatpush1.bf16.msra.mxu1 %v552_v1  ;;  %v512_v52 = vadd.f32 %v511_v48, %v2946_v50 }
 0x23a   :  { %v515_v51 = vpop.f32.mrb[14].mxu0  ;;  %v514_v54 = vadd.f32 %v513_v49, %v2946_v50 }
 0x23b   :  { %v516_v53 = vadd.f32 %v515_v51, %v2944_v6  ;;  %v517_v11 = vpop.f32.mrb[15].mxu0 }
 0x23c   :  { %v518_v14 = vadd.f32 %v517_v11, %v2944_v6 }
 0x23d   :  { %v554_v15 = vpack.c.bf16 %v516_v53, %v512_v52 }
 0x23e   :  { %v555_v56 = vpack.c.bf16 %v518_v14, %v514_v54 }
 0x240   :  { %642 = vmatprep.subr.bf16.mxu1 %v555_v56 }
 0x241   :  { %643 = vmatpush1.bf16.msra.mxu1 %v554_v15 }
 0x293   :  { %v568_v57 = vpop.trf.xlu1 }
 0x294   :  { %2299 = vmatmul.mubr.msk.bf16.vlgmr.msra.gmra.mrb[0].mxu1 %vm428_vm0, %v568_v57  ;;  %v584_v9 = vpop.trf.xlu0 }
 0x295   :  { %682 = vmatprep.mubr.bf16.mxu1 %v3968_v24 }
 0x297   :  { %v569_v59 = vpop.trf.xlu1 }
 0x298   :  { %v585_v10 = vpop.trf.xlu0 }
 0x29b   :  { %v570_v60 = vpop.trf.xlu1 }
 0x29c   :  { %2300 = vmatmul.mubr.msk.bf16.gmra.mrb[4].mxu1 %vm428_vm0, %v569_v59  ;;  %v586_v13 = vpop.trf.xlu0 }
 0x29d   :  { %692 = vmatprep.mubr.bf16.mxu1 %v3968_v24 }
 0x29f   :  { %v571_v63 = vpop.trf.xlu1 }
 0x2a0   :  { %v587_v16 = vpop.trf.xlu0 }
 0x2a3   :  { %v572_v3 = vpop.trf.xlu1 }
 0x2a4   :  { %2301 = vmatmul.mubr.msk.bf16.gmra.mrb[8].mxu1 %vm428_vm0, %v570_v60  ;;  %v588_v17 = vpop.trf.xlu0 }
 0x2a5   :  { %702 = vmatprep.mubr.bf16.mxu1 %v3968_v24 }
 0x2a7   :  { %v573_v4 = vpop.trf.xlu1 }
 0x2a8   :  { %v589_v18 = vpop.trf.xlu0 }
 0x2ab   :  { %v574_v7 = vpop.trf.xlu1 }
 0x2ac   :  { %2302 = vmatmul.mubr.msk.bf16.gmra.mrb[12].mxu1 %vm428_vm0, %v571_v63  ;;  %v590_v19 = vpop.trf.xlu0 }
 0x2ad   :  { %712 = vmatprep.mubr.bf16.mxu1 %v3968_v24 }
 0x2af   :  { %v575_v8 = vpop.trf.xlu1 }
 0x2b0   :  { %v591_v20 = vpop.trf.xlu0 }
 0x2b4   :  { %2303 = vmatmul.mubr.msk.bf16.gmra.mrb[16].mxu1 %vm428_vm0, %v572_v3 }
 0x2b5   :  { %722 = vmatprep.mubr.bf16.mxu1 %v3968_v24 }
 0x2bc   :  { %2304 = vmatmul.mubr.msk.bf16.gmra.mrb[20].mxu1 %vm428_vm0, %v573_v4 }
 0x2bd   :  { %732 = vmatprep.mubr.bf16.mxu1 %v3968_v24 }
 0x2c4   :  { %2305 = vmatmul.mubr.msk.bf16.gmra.mrb[24].mxu1 %vm428_vm0, %v574_v7 }
 0x2c5   :  { %742 = vmatprep.mubr.bf16.mxu1 %v3968_v24 }
 0x2cc   :  { %2306 = vmatmul.mubr.msk.bf16.gmra.mrb[28].mxu1 %vm428_vm0, %v575_v8 }
 0x2cd   :  { %752 = vmatprep.mubr.bf16.mxu1 %v3968_v24 }
 0x2d4   :  { %2307 = vmatmul.mubr.msk.bf16.gmra.mrb[32].mxu1 %vm428_vm0, %v584_v9 }
 0x2d5   :  { %762 = vmatprep.mubr.bf16.mxu1 %v3968_v24 }
 0x2dc   :  { %2308 = vmatmul.mubr.msk.bf16.gmra.mrb[36].mxu1 %vm428_vm0, %v585_v10 }
 0x2dd   :  { %772 = vmatprep.mubr.bf16.mxu1 %v3968_v24 }
 0x2e4   :  { %2309 = vmatmul.mubr.msk.bf16.gmra.mrb[40].mxu1 %vm428_vm0, %v586_v13 }
 0x2e5   :  { %782 = vmatprep.mubr.bf16.mxu1 %v3968_v24 }
 0x2ec   :  { %2310 = vmatmul.mubr.msk.bf16.gmra.mrb[44].mxu1 %vm428_vm0, %v587_v16 }
 0x2ed   :  { %792 = vmatprep.mubr.bf16.mxu1 %v3968_v24 }
 0x2f4   :  { %2311 = vmatmul.mubr.msk.bf16.gmra.mrb[48].mxu1 %vm428_vm0, %v588_v17 }
 0x2f5   :  { %802 = vmatprep.mubr.bf16.mxu1 %v3968_v24 }
 0x2fc   :  { %2312 = vmatmul.mubr.msk.bf16.gmra.mrb[52].mxu1 %vm428_vm0, %v589_v18 }
 0x2fd   :  { %812 = vmatprep.mubr.bf16.mxu1 %v3968_v24 }
 0x304   :  { %2313 = vmatmul.mubr.msk.bf16.gmra.mrb[56].mxu1 %vm428_vm0, %v590_v19 }
 0x305   :  { %822 = vmatprep.mubr.bf16.mxu1 %v3968_v24 }
 0x30c   :  { %2314 = vmatmul.mubr.msk.bf16.gmra.mrb[60].mxu1 %vm428_vm0, %v591_v20 }
 0x367   :  { %v3004_v30 = vpop.f32.mrb[0].mxu1 }
 0x368   :  { %v3006_v31 = vpop.f32.mrb[1].mxu1 }
 0x369   :  { %v3008_v32 = vpop.f32.mrb[2].mxu1  ;;  %v833_v33 = vmax.f32 %v3004_v30, %v3006_v31 }
 0x36a   :  { %v3012_v34 = vpop.f32.mrb[3].mxu1 }
 0x36b   :  { %834 = vmax.xlane.f32.xlu0 %v833_v33  ;;  %v836_v35 = vmax.f32 %v3008_v32, %v3012_v34 }
 0x36d   :  { %837 = vmax.xlane.f32.xlu1 %v836_v35 }
 0x36f   :  { %v3016_v36 = vpop.f32.mrb[4].mxu1 }
 0x370   :  { %v3018_v37 = vpop.f32.mrb[5].mxu1 }
 0x371   :  { %v3020_v38 = vpop.f32.mrb[6].mxu1  ;;  %v839_v39 = vmax.f32 %v3016_v36, %v3018_v37 }
 0x372   :  { %v3024_v41 = vpop.f32.mrb[7].mxu1 }
 0x373   :  { %840 = vmax.xlane.f32.xlu0 %v839_v39  ;;  %v842_v43 = vmax.f32 %v3020_v38, %v3024_v41 }
 0x375   :  { %843 = vmax.xlane.f32.xlu1 %v842_v43 }
 0x377   :  { %v3028_v44 = vpop.f32.mrb[8].mxu1 }
 0x378   :  { %v3030_v45 = vpop.f32.mrb[9].mxu1 }
 0x379   :  { %v3032_v46 = vpop.f32.mrb[10].mxu1  ;;  %v845_v47 = vmax.f32 %v3028_v44, %v3030_v45 }
 0x37a   :  { %v3036_v0 = vpop.f32.mrb[11].mxu1 }
 0x37b   :  { %846 = vmax.xlane.f32.xlu0 %v845_v47  ;;  %v848_v1 = vmax.f32 %v3032_v46, %v3036_v0 }
 0x37d   :  { %849 = vmax.xlane.f32.xlu1 %v848_v1 }
 0x37f   :  { %v3040_v2 = vpop.f32.mrb[12].mxu1 }
 0x380   :  { %v3042_v48 = vpop.f32.mrb[13].mxu1 }
 0x381   :  { %v3044_v49 = vpop.f32.mrb[14].mxu1  ;;  %v851_v51 = vmax.f32 %v3040_v2, %v3042_v48 }
 0x382   :  { %v3048_v52 = vpop.f32.mrb[15].mxu1 }
 0x383   :  { %852 = vmax.xlane.f32.xlu0 %v851_v51  ;;  %v854_v53 = vmax.f32 %v3044_v49, %v3048_v52 }
 0x385   :  { %855 = vmax.xlane.f32.xlu1 %v854_v53 }
 0x387   :  { %v3052_v11 = vpop.f32.mrb[16].mxu1 }
 0x388   :  { %v3054_v54 = vpop.f32.mrb[17].mxu1 }
 0x389   :  { %v3056_v14 = vpop.f32.mrb[18].mxu1  ;;  %v857_v15 = vmax.f32 %v3052_v11, %v3054_v54 }
 0x38a   :  { %v3060_v56 = vpop.f32.mrb[19].mxu1 }
 0x38b   :  { %858 = vmax.xlane.f32.xlu0 %v857_v15  ;;  %v860_v57 = vmax.f32 %v3056_v14, %v3060_v56 }
 0x38d   :  { %861 = vmax.xlane.f32.xlu1 %v860_v57 }
 0x38f   :  { %v3064_v59 = vpop.f32.mrb[20].mxu1 }
 0x390   :  { %v3066_v60 = vpop.f32.mrb[21].mxu1 }
 0x391   :  { %v3068_v63 = vpop.f32.mrb[22].mxu1  ;;  %v863_v3 = vmax.f32 %v3064_v59, %v3066_v60 }
 0x392   :  { %v3072_v4 = vpop.f32.mrb[23].mxu1 }
 0x393   :  { %864 = vmax.xlane.f32.xlu0 %v863_v3  ;;  %v866_v7 = vmax.f32 %v3068_v63, %v3072_v4 }
 0x395   :  { %867 = vmax.xlane.f32.xlu1 %v866_v7 }
 0x397   :  { %v3076_v8 = vpop.f32.mrb[24].mxu1 }
 0x398   :  { %v3078_v9 = vpop.f32.mrb[25].mxu1 }
 0x399   :  { %v3080_v10 = vpop.f32.mrb[26].mxu1  ;;  %v869_v13 = vmax.f32 %v3076_v8, %v3078_v9 }
 0x39a   :  { %v3084_v16 = vpop.f32.mrb[27].mxu1 }
 0x39b   :  { %870 = vmax.xlane.f32.xlu0 %v869_v13  ;;  %v872_v17 = vmax.f32 %v3080_v10, %v3084_v16 }
 0x39d   :  { %873 = vmax.xlane.f32.xlu1 %v872_v17 }
 0x39f   :  { %v3088_v18 = vpop.f32.mrb[28].mxu1 }
 0x3a0   :  { %v3090_v19 = vpop.f32.mrb[29].mxu1 }
 0x3a1   :  { %v3092_v20 = vpop.f32.mrb[30].mxu1  ;;  %v875_v22 = vmax.f32 %v3088_v18, %v3090_v19 }
 0x3a2   :  { %v3096_v23 = vpop.f32.mrb[31].mxu1 }
 0x3a3   :  { %876 = vmax.xlane.f32.xlu0 %v875_v22  ;;  %v878_v26 = vmax.f32 %v3092_v20, %v3096_v23 }
 0x3a5   :  { %879 = vmax.xlane.f32.xlu1 %v878_v26 }
 0x3a7   :  { %v3100_v28 = vpop.f32.mrb[32].mxu1 }
 0x3a8   :  { %v3102_v33 = vpop.f32.mrb[33].mxu1 }
 0x3a9   :  { %v3104_v35 = vpop.f32.mrb[34].mxu1  ;;  %v881_v39 = vmax.f32 %v3100_v28, %v3102_v33 }
 0x3aa   :  { %v3108_v43 = vpop.f32.mrb[35].mxu1 }
 0x3ab   :  { %882 = vmax.xlane.f32.xlu0 %v881_v39  ;;  %v884_v47 = vmax.f32 %v3104_v35, %v3108_v43 }
 0x3ad   :  { %885 = vmax.xlane.f32.xlu1 %v884_v47 }
 0x3af   :  { %v3112_v1 = vpop.f32.mrb[36].mxu1 }
 0x3b0   :  { %v3114_v51 = vpop.f32.mrb[37].mxu1 }
 0x3b1   :  { %v3116_v53 = vpop.f32.mrb[38].mxu1  ;;  %v887_v15 = vmax.f32 %v3112_v1, %v3114_v51 }
 0x3b2   :  { %v3120_v57 = vpop.f32.mrb[39].mxu1 }
 0x3b3   :  { %888 = vmax.xlane.f32.xlu0 %v887_v15  ;;  %v890_v3 = vmax.f32 %v3116_v53, %v3120_v57 }
 0x3b5   :  { %891 = vmax.xlane.f32.xlu1 %v890_v3 }
 0x3b7   :  { %v3124_v7 = vpop.f32.mrb[40].mxu1 }
 0x3b8   :  { %v3126_v13 = vpop.f32.mrb[41].mxu1 }
 0x3b9   :  { %v3128_v17 = vpop.f32.mrb[42].mxu1  ;;  %v893_v22 = vmax.f32 %v3124_v7, %v3126_v13 }
 0x3ba   :  { %v3132_v26 = vpop.f32.mrb[43].mxu1 }
 0x3bb   :  { %894 = vmax.xlane.f32.xlu0 %v893_v22  ;;  %v896_v39 = vmax.f32 %v3128_v17, %v3132_v26 }
 0x3bd   :  { %897 = vmax.xlane.f32.xlu1 %v896_v39 }
 0x3bf   :  { %v3136_v47 = vpop.f32.mrb[44].mxu1 }
 0x3c0   :  { %v3138_v15 = vpop.f32.mrb[45].mxu1 }
 0x3c1   :  { %v3140_v3 = vpop.f32.mrb[46].mxu1  ;;  %v899_v24 = vmax.f32 %v3136_v47, %v3138_v15 }
 0x3c2   :  { %v3144_v6 = vpop.f32.mrb[47].mxu1 }
 0x3c3   :  { %900 = vmax.xlane.f32.xlu0 %v899_v24  ;;  %v902_v50 = vmax.f32 %v3140_v3, %v3144_v6 }
 0x3c5   :  { %903 = vmax.xlane.f32.xlu1 %v902_v50 }
 0x3c7   :  { %v3148_v22 = vpop.f32.mrb[48].mxu1 }
 0x3c8   :  { %v3150_v40 = vpop.f32.mrb[49].mxu1 }
 0x3c9   :  { %4044 = vst [vmem:[#allocation20_spill] sm:$0xff] %v3150_v40  ;;  %v3152_v39 = vpop.f32.mrb[50].mxu1  ;;  %v905_v42 = vmax.f32 %v3148_v22, %v3150_v40 }
 0x3ca   :  { %4045 = vst [vmem:[#allocation21_spill] sm:$0xff] %v3152_v39  ;;  %v3156_v27 = vpop.f32.mrb[51].mxu1 }
 0x3cb   :  { %4046 = vst [vmem:[#allocation22_spill] sm:$0xff] %v3156_v27  ;;  %906 = vmax.xlane.f32.xlu0 %v905_v42  ;;  %v908_v21 = vmax.f32 %v3152_v39, %v3156_v27 }
 0x3cd   :  { %909 = vmax.xlane.f32.xlu1 %v908_v21 }
 0x3cf   :  { %v3160_v24 = vpop.f32.mrb[52].mxu1 }
 0x3d0   :  { %4047 = vst [vmem:[#allocation23_spill] sm:$0xff] %v3160_v24  ;;  %v3162_v5 = vpop.f32.mrb[53].mxu1 }
 0x3d1   :  { %4048 = vst [vmem:[#allocation24_spill] sm:$0xff] %v3162_v5  ;;  %v3164_v50 = vpop.f32.mrb[54].mxu1  ;;  %v911_v62 = vmax.f32 %v3160_v24, %v3162_v5 }
 0x3d2   :  { %4049 = vst [vmem:[#allocation25_spill] sm:$0xff] %v3164_v50  ;;  %v3168_v29 = vpop.f32.mrb[55].mxu1 }
 0x3d3   :  { %4050 = vst [vmem:[#allocation26_spill] sm:$0xff] %v3168_v29  ;;  %912 = vmax.xlane.f32.xlu0 %v911_v62  ;;  %v914_v25 = vmax.f32 %v3164_v50, %v3168_v29 }
 0x3d5   :  { %915 = vmax.xlane.f32.xlu1 %v914_v25 }
 0x3d7   :  { %v3172_v42 = vpop.f32.mrb[56].mxu1 }
 0x3d8   :  { %4051 = vst [vmem:[#allocation27_spill] sm:$0xff] %v3172_v42  ;;  %v3174_v61 = vpop.f32.mrb[57].mxu1 }
 0x3d9   :  { %4052 = vst [vmem:[#allocation28_spill] sm:$0xff] %v3174_v61  ;;  %v3176_v21 = vpop.f32.mrb[58].mxu1  ;;  %v917_v58 = vmax.f32 %v3172_v42, %v3174_v61 }
 0x3da   :  { %4053 = vst [vmem:[#allocation29_spill] sm:$0xff] %v3176_v21  ;;  %v3180_v55 = vpop.f32.mrb[59].mxu1 }
 0x3db   :  { %4054 = vst [vmem:[#allocation30_spill] sm:$0xff] %v3180_v55  ;;  %918 = vmax.xlane.f32.xlu0 %v917_v58  ;;  %v920_v12 = vmax.f32 %v3176_v21, %v3180_v55  ;;  %v356_v58 = vld [vmem:[%s3963_s4 + $0x48] sm:$0xff] }
 0x3dd   :  { %921 = vmax.xlane.f32.xlu1 %v920_v12  ;;  %v3199_v12 = vpop.f32.mrb[16].mxu0 }
 0x3de   :  { %4057 = vst [vmem:[#allocation33_spill] sm:$0xff] %v3199_v12  ;;  %v3201_v55 = vpop.f32.mrb[17].mxu0 }
 0x3df   :  { %v3184_v62 = vpop.f32.mrb[60].mxu1  ;;  %4058 = vst [vmem:[#allocation34_spill] sm:$0xff] %v3201_v55  ;;  %v3203_v21 = vpop.f32.mrb[18].mxu0 }
 0x3e0   :  { %4055 = vst [vmem:[#allocation31_spill] sm:$0xff] %v3184_v62  ;;  %v3186_v29 = vpop.f32.mrb[61].mxu1  ;;  %4059 = vst [vmem:[#allocation35_spill] sm:$0xff] %v3203_v21 }
 0x3e1   :  { %4056 = vst [vmem:[#allocation32_spill] sm:$0xff] %v3186_v29  ;;  %v923_v25 = vmax.f32 %v3184_v62, %v3186_v29  ;;  %v3190_v50 = vpop.f32.mrb[62].mxu1  ;;  %v3205_v29 = vpop.f32.mrb[19].mxu0 }
 0x3e2   :  { %v3192_v5 = vpop.f32.mrb[63].mxu1  ;;  %4060 = vst [vmem:[#allocation36_spill] sm:$0xff] %v3205_v29  ;;  %v3217_v21 = vpop.f32.mrb[20].mxu0 }
 0x3e3   :  { %924 = vmax.xlane.f32.xlu0 %v923_v25  ;;  %v355_v25 = vld [vmem:[%s3963_s4 + $0x40] sm:$0xff]  ;;  %4061 = vst [vmem:[#allocation37_spill] sm:$0xff] %v3217_v21  ;;  %v3219_v39 = vpop.f32.mrb[21].mxu0 }
 0x3e4   :  { %4062 = vst [vmem:[#allocation38_spill] sm:$0xff] %v3219_v39 }
 0x3ee   :  { %415 = vperm.xlu1 %2368, %v356_v58   ;;  %v358_v58 = vld [vmem:[%s3963_s4 + $0x58] sm:$0xff] }
 0x3f8   :  { %v835_v62 = vpop.xlane.xlu0 %834 }
 0x3f9   :  { %v929_v61 = vsub.f32 %v3004_v30, %v835_v62  ;;  %v930_v42 = vsub.f32 %v3006_v31, %v835_v62  ;;  %410 = vperm.xlu0 %2367, %v355_v25   ;;  %v3221_v31 = vpop.f32.mrb[22].mxu0 }
 0x3fa   :  { %v838_v24 = vpop.xlane.xlu1 %837  ;;  %v3223_v62 = vpop.f32.mrb[23].mxu0 }
 0x3fb   :  { %v993_v55 = vmul.f32 1.442695, %v929_v61  ;;  %v931_v12 = vsub.f32 %v3008_v32, %v838_v24  ;;  %v932_v29 = vsub.f32 %v3012_v34, %v838_v24  ;;  %v995_v27 = vmul.f32 1.442695, %v930_v42 }
 0x3fd   :  { %v997_v40 = vmul.f32 1.442695, %v931_v12  ;;  %v999_v30 = vmul.f32 1.442695, %v932_v29  ;;  %425 = vperm.xlu0 %2367, %v358_v58   ;;  %2377 = vpow2.f32 %v993_v55 }
 0x3ff   :  { %2379 = vpow2.f32 %v997_v40 }
 0x400   :  { %2381 = vpow2.f32 %v999_v30  ;;  %v841_v61 = vpop.xlane.xlu0 %840 }
 0x401   :  { %2383 = vpow2.f32 %v995_v27  ;;  %v933_v32 = vsub.f32 %v3016_v36, %v841_v61  ;;  %v934_v34 = vsub.f32 %v3018_v37, %v841_v61 }
 0x402   :  { %v844_v24 = vpop.xlane.xlu1 %843 }
 0x403   :  { %v1001_v42 = vmul.f32 1.442695, %v933_v32  ;;  %v935_v25 = vsub.f32 %v3020_v38, %v844_v24  ;;  %v936_v29 = vsub.f32 %v3024_v41, %v844_v24  ;;  %v1003_v12 = vmul.f32 1.442695, %v934_v34 }
 0x405   :  { %v1005_v58 = vmul.f32 1.442695, %v935_v25  ;;  %v1007_v39 = vmul.f32 1.442695, %v936_v29  ;;  %2385 = vpow2.f32 %v1001_v42 }
 0x407   :  { %2387 = vpow2.f32 %v1005_v58  ;;  %v2378_v55 = vpop.eup %2377 }
 0x408   :  { %2389 = vpow2.f32 %v1007_v39  ;;  %v847_v40 = vpop.xlane.xlu0 %846 }
 0x409   :  { %v2380_v30 = vpop.eup %2379  ;;  %2391 = vpow2.f32 %v1003_v12  ;;  %v937_v27 = vsub.f32 %v3028_v44, %v847_v40  ;;  %v938_v36 = vsub.f32 %v3030_v45, %v847_v40 }
 0x40a   :  { %v2382_v37 = vpop.eup %2381  ;;  %v850_v61 = vpop.xlane.xlu1 %849  ;;  %v1121_v32 = vpack.c.bf16 %v2380_v30, %v2378_v55 }
 0x40b   :  { %v2384_v38 = vpop.eup %2383  ;;  %v1009_v21 = vmul.f32 1.442695, %v937_v27  ;;  %v939_v41 = vsub.f32 %v3032_v46, %v850_v61  ;;  %v940_v34 = vsub.f32 %v3036_v0, %v850_v61  ;;  %v1011_v42 = vmul.f32 1.442695, %v938_v36  ;;  %v3253_v61 = vld [vmem:[%s3959_s0 + $0x40] sm:$0xff] }
 0x40c   :  { %v1122_v24 = vpack.c.bf16 %v2382_v37, %v2384_v38  ;;  %v4063_v0 = vmax.f32 %v3190_v50, %v3192_v5  ;;  %v3243_v37 = vld [vmem:[%s3959_s0 + $0x50] sm:$0xff] }
 0x40d   :  { %v1013_v25 = vmul.f32 1.442695, %v939_v41  ;;  %v1015_v39 = vmul.f32 1.442695, %v940_v34  ;;  %2393 = vpow2.f32 %v1009_v21 }
 0x40e   :  { %1153 = vmatprep.subr.bf16.mxu0 %v1122_v24 }
 0x40f   :  { %2395 = vpow2.f32 %v1013_v25  ;;  %1154 = vmatpush1.bf16.xpose.msra.mxu0 %v1121_v32  ;;  %v2386_v44 = vpop.eup %2385 }
 0x410   :  { %2397 = vpow2.f32 %v1015_v39  ;;  %v853_v45 = vpop.xlane.xlu0 %852 }
 0x411   :  { %v2388_v29 = vpop.eup %2387  ;;  %2399 = vpow2.f32 %v1011_v42  ;;  %v941_v12 = vsub.f32 %v3040_v2, %v853_v45  ;;  %v942_v58 = vsub.f32 %v3042_v48, %v853_v45  ;;  %v3248_v48 = vld [vmem:[%s3959_s0 + $0x58] sm:$0xff]  ;;  %v81_v42 = vmul.f32 %v3253_v61, %v3253_v61 }
 0x412   :  { %v2390_v46 = vpop.eup %2389  ;;  %v856_v55 = vpop.xlane.xlu1 %855  ;;  %927 = vmax.xlane.f32.xlu1 %v4063_v0  ;;  %v1123_v40 = vpack.c.bf16 %v2388_v29, %v2386_v44  ;;  %v64_v24 = vadd.f32 %v3248_v48, %v3243_v37 }
 0x413   :  { %v2392_v21 = vpop.eup %2391  ;;  %v1017_v30 = vmul.f32 1.442695, %v941_v12  ;;  %v943_v27 = vsub.f32 %v3044_v49, %v856_v55  ;;  %v944_v36 = vsub.f32 %v3048_v52, %v856_v55  ;;  %v3258_v49 = vld [vmem:[%s3959_s0 + $0x48] sm:$0xff]  ;;  %v1019_v52 = vmul.f32 1.442695, %v942_v58 }
 0x414   :  { %v1124_v2 = vpack.c.bf16 %v2390_v46, %v2392_v21  ;;  %v82_v25 = vmul.f32 %v3258_v49, %v3258_v49 }
 0x415   :  { %v1021_v32 = vmul.f32 1.442695, %v943_v27  ;;  %v1023_v38 = vmul.f32 1.442695, %v944_v36  ;;  %2401 = vpow2.f32 %v1017_v30  ;;  %v3273_v27 = vld [vmem:[%s3959_s0 + $0x60] sm:$0xff] }
 0x416   :  { %1155 = vmatprep.subr.bf16.mxu0 %v1124_v2  ;;  %v101_v30 = vadd.f32 %v82_v25, %v81_v42 }
 0x417   :  { %2403 = vpow2.f32 %v1021_v32  ;;  %1156 = vmatpush1.bf16.xpose.msra.mxu0 %v1123_v40  ;;  %v2394_v41 = vpop.eup %2393 }
 0x418   :  { %2405 = vpow2.f32 %v1023_v38  ;;  %v859_v34 = vpop.xlane.xlu0 %858  ;;  %v85_v38 = vmul.f32 %v3273_v27, %v3273_v27 }
 0x419   :  { %v2396_v39 = vpop.eup %2395  ;;  %2407 = vpow2.f32 %v1019_v52  ;;  %v945_v44 = vsub.f32 %v3052_v11, %v859_v34  ;;  %v946_v45 = vsub.f32 %v3054_v54, %v859_v34  ;;  %v3278_v11 = vld [vmem:[%s3959_s0 + $0x68] sm:$0xff]  ;;  %v357_v52 = vld [vmem:[%s3963_s4 + $0x50] sm:$0xff] }
 0x41a   :  { %v2398_v29 = vpop.eup %2397  ;;  %v862_v12 = vpop.xlane.xlu1 %861  ;;  %v1125_v58 = vpack.c.bf16 %v2396_v39, %v2394_v41  ;;  %v67_v32 = vadd.f32 %v3278_v11, %v3273_v27  ;;  %v86_v41 = vmul.f32 %v3278_v11, %v3278_v11 }
 0x41b   :  { %v2400_v46 = vpop.eup %2399  ;;  %v1025_v55 = vmul.f32 1.442695, %v945_v44  ;;  %v947_v0 = vsub.f32 %v3056_v14, %v862_v12  ;;  %v948_v40 = vsub.f32 %v3060_v56, %v862_v12  ;;  %v1027_v54 = vmul.f32 1.442695, %v946_v45 }
 0x41c   :  { %v1126_v21 = vpack.c.bf16 %v2398_v29, %v2400_v46  ;;  %65 = vadd.xlane.f32.xlu0 %v64_v24 }
 0x41d   :  { %v1029_v36 = vmul.f32 1.442695, %v947_v0  ;;  %v1031_v2 = vmul.f32 1.442695, %v948_v40  ;;  %2409 = vpow2.f32 %v1025_v55  ;;  %v107_v55 = vadd.f32 %v86_v41, %v85_v38 }
 0x41e   :  { %1157 = vmatprep.subr.bf16.mxu0 %v1126_v21 }
 0x41f   :  { %2411 = vpow2.f32 %v1029_v36  ;;  %1158 = vmatpush1.bf16.xpose.msra.mxu0 %v1125_v58  ;;  %v2402_v14 = vpop.eup %2401 }
 0x420   :  { %2413 = vpow2.f32 %v1031_v2  ;;  %v865_v56 = vpop.xlane.xlu0 %864  ;;  %102 = vadd.xlane.f32.xlu0 %v101_v30 }
 0x421   :  { %v2404_v34 = vpop.eup %2403  ;;  %2415 = vpow2.f32 %v1027_v54  ;;  %v949_v24 = vsub.f32 %v3064_v59, %v865_v56  ;;  %v950_v42 = vsub.f32 %v3066_v60, %v865_v56 }
 0x422   :  { %v2406_v25 = vpop.eup %2405  ;;  %v868_v39 = vpop.xlane.xlu1 %867  ;;  %v1127_v44 = vpack.c.bf16 %v2404_v34, %v2402_v14 }
 0x423   :  { %v2408_v45 = vpop.eup %2407  ;;  %v1033_v29 = vmul.f32 1.442695, %v949_v24  ;;  %v951_v12 = vsub.f32 %v3068_v63, %v868_v39  ;;  %v952_v58 = vsub.f32 %v3072_v4, %v868_v39  ;;  %420 = vperm.xlu1 %2368, %v357_v52   ;;  %v1035_v0 = vmul.f32 1.442695, %v950_v42 }
 0x424   :  { %v1128_v46 = vpack.c.bf16 %v2406_v25, %v2408_v45  ;;  %68 = vadd.xlane.f32.xlu0 %v67_v32 }
 0x425   :  { %v1037_v40 = vmul.f32 1.442695, %v951_v12  ;;  %v1039_v21 = vmul.f32 1.442695, %v952_v58  ;;  %2417 = vpow2.f32 %v1033_v29 }
 0x426   :  { %1159 = vmatprep.subr.bf16.mxu0 %v1128_v46 }
 0x427   :  { %2419 = vpow2.f32 %v1037_v40  ;;  %1160 = vmatpush1.bf16.xpose.msra.mxu0 %v1127_v44  ;;  %v2410_v59 = vpop.eup %2409 }
 0x428   :  { %2421 = vpow2.f32 %v1039_v21  ;;  %v871_v60 = vpop.xlane.xlu0 %870  ;;  %108 = vadd.xlane.f32.xlu0 %v107_v55 }
 0x429   :  { %v2412_v30 = vpop.eup %2411  ;;  %2423 = vpow2.f32 %v1035_v0  ;;  %v953_v63 = vsub.f32 %v3076_v8, %v871_v60  ;;  %v954_v4 = vsub.f32 %v3078_v9, %v871_v60 }
 0x42a   :  { %v2414_v54 = vpop.eup %2413  ;;  %v874_v36 = vpop.xlane.xlu1 %873  ;;  %v1129_v2 = vpack.c.bf16 %v2412_v30, %v2410_v59 }
 0x42b   :  { %v2416_v14 = vpop.eup %2415  ;;  %v1041_v56 = vmul.f32 1.442695, %v953_v63  ;;  %v955_v52 = vsub.f32 %v3080_v10, %v874_v36  ;;  %v956_v32 = vsub.f32 %v3084_v16, %v874_v36  ;;  %v1043_v41 = vmul.f32 1.442695, %v954_v4 }
 0x42c   :  { %v1130_v38 = vpack.c.bf16 %v2414_v54, %v2416_v14 }
 0x42d   :  { %v1045_v34 = vmul.f32 1.442695, %v955_v52  ;;  %v1047_v24 = vmul.f32 1.442695, %v956_v32  ;;  %2425 = vpow2.f32 %v1041_v56 }
 0x42e   :  { %1161 = vmatprep.subr.bf16.mxu0 %v1130_v38 }
 0x42f   :  { %2427 = vpow2.f32 %v1045_v34  ;;  %1162 = vmatpush1.bf16.xpose.msra.mxu0 %v1129_v2  ;;  %v2418_v8 = vpop.eup %2417 }
 0x430   :  { %2429 = vpow2.f32 %v1047_v24  ;;  %v877_v9 = vpop.xlane.xlu0 %876  ;;  %v61_v24 = vadd.f32 %v3258_v49, %v3253_v61 }
 0x431   :  { %v2420_v42 = vpop.eup %2419  ;;  %2431 = vpow2.f32 %v1043_v41  ;;  %v957_v25 = vsub.f32 %v3088_v18, %v877_v9  ;;  %v958_v39 = vsub.f32 %v3090_v19, %v877_v9 }
 0x432   :  { %v2422_v10 = vpop.eup %2421  ;;  %v880_v44 = vpop.xlane.xlu1 %879  ;;  %v1131_v16 = vpack.c.bf16 %v2420_v42, %v2418_v8  ;;  %v83_v8 = vmul.f32 %v3243_v37, %v3243_v37 }
 0x433   :  { %v2424_v45 = vpop.eup %2423  ;;  %v1049_v29 = vmul.f32 1.442695, %v957_v25  ;;  %v959_v12 = vsub.f32 %v3092_v20, %v880_v44  ;;  %v960_v58 = vsub.f32 %v3096_v23, %v880_v44  ;;  %v1051_v55 = vmul.f32 1.442695, %v958_v39 }
 0x434   :  { %v1132_v46 = vpack.c.bf16 %v2422_v10, %v2424_v45 }
 0x435   :  { %v1053_v0 = vmul.f32 1.442695, %v959_v12  ;;  %v1055_v40 = vmul.f32 1.442695, %v960_v58  ;;  %2433 = vpow2.f32 %v1049_v29  ;;  %v3318_v29 = vld [vmem:[%s3959_s0 + $0x70] sm:$0xff] }
 0x436   :  { %1163 = vmatprep.subr.bf16.mxu0 %v1132_v46 }
 0x437   :  { %2435 = vpow2.f32 %v1053_v0  ;;  %1164 = vmatpush1.bf16.xpose.msra.mxu0 %v1131_v16  ;;  %v2426_v18 = vpop.eup %2425 }
 0x438   :  { %2437 = vpow2.f32 %v1055_v40  ;;  %v883_v19 = vpop.xlane.xlu0 %882 }
 0x439   :  { %v2428_v21 = vpop.eup %2427  ;;  %2439 = vpow2.f32 %v1051_v55  ;;  %v961_v59 = vsub.f32 %v3100_v28, %v883_v19  ;;  %v962_v60 = vsub.f32 %v3102_v33, %v883_v19 }
 0x43a   :  { %v2430_v20 = vpop.eup %2429  ;;  %v886_v30 = vpop.xlane.xlu1 %885  ;;  %v1133_v23 = vpack.c.bf16 %v2428_v21, %v2426_v18  ;;  %v87_v21 = vmul.f32 %v3318_v29, %v3318_v29 }
 0x43b   :  { %v2432_v63 = vpop.eup %2431  ;;  %v1057_v4 = vmul.f32 1.442695, %v961_v59  ;;  %v963_v54 = vsub.f32 %v3104_v35, %v886_v30  ;;  %v964_v36 = vsub.f32 %v3108_v43, %v886_v30  ;;  %v1059_v14 = vmul.f32 1.442695, %v962_v60 }
 0x43c   :  { %v1134_v2 = vpack.c.bf16 %v2430_v20, %v2432_v63 }
 0x43d   :  { %v1061_v56 = vmul.f32 1.442695, %v963_v54  ;;  %v1063_v52 = vmul.f32 1.442695, %v964_v36  ;;  %2441 = vpow2.f32 %v1057_v4 }
 0x43e   :  { %1165 = vmatprep.subr.bf16.mxu0 %v1134_v2 }
 0x43f   :  { %2443 = vpow2.f32 %v1061_v56  ;;  %1166 = vmatpush1.bf16.xpose.msra.mxu0 %v1133_v23  ;;  %v2434_v28 = vpop.eup %2433 }
 0x440   :  { %2445 = vpow2.f32 %v1063_v52  ;;  %v889_v33 = vpop.xlane.xlu0 %888 }
 0x441   :  { %v2436_v32 = vpop.eup %2435  ;;  %2447 = vpow2.f32 %v1059_v14  ;;  %v965_v38 = vsub.f32 %v3112_v1, %v889_v33  ;;  %v966_v41 = vsub.f32 %v3114_v51, %v889_v33  ;;  %v84_v1 = vmul.f32 %v3248_v48, %v3248_v48 }
 0x442   :  { %v2438_v35 = vpop.eup %2437  ;;  %v892_v34 = vpop.xlane.xlu1 %891  ;;  %v1135_v43 = vpack.c.bf16 %v2436_v32, %v2434_v28 }
 0x443   :  { %v2440_v9 = vpop.eup %2439  ;;  %v1065_v42 = vmul.f32 1.442695, %v965_v38  ;;  %v967_v25 = vsub.f32 %v3116_v53, %v892_v34  ;;  %v968_v39 = vsub.f32 %v3120_v57, %v892_v34  ;;  %v1067_v51 = vmul.f32 1.442695, %v966_v41  ;;  %v3323_v53 = vld [vmem:[%s3959_s0 + $0x78] sm:$0xff] }
 0x444   :  { %v1136_v10 = vpack.c.bf16 %v2438_v35, %v2440_v9  ;;  %v104_v45 = vadd.f32 %v84_v1, %v83_v8  ;;  %v70_v19 = vadd.f32 %v3323_v53, %v3318_v29 }
 0x445   :  { %v1069_v44 = vmul.f32 1.442695, %v967_v25  ;;  %v1071_v16 = vmul.f32 1.442695, %v968_v39  ;;  %2449 = vpow2.f32 %v1065_v42  ;;  %v4064_v42 = vld [vmem:[#allocation20_spill] sm:$0xff] }
 0x446   :  { %1167 = vmatprep.subr.bf16.mxu0 %v1136_v10 }
 0x447   :  { %2451 = vpow2.f32 %v1069_v44  ;;  %1168 = vmatpush1.bf16.xpose.msra.mxu0 %v1135_v43  ;;  %62 = vadd.xlane.f32.xlu1 %v61_v24  ;;  %v2442_v57 = vpop.eup %2441 }
 0x448   :  { %2453 = vpow2.f32 %v1071_v16  ;;  %v895_v12 = vpop.xlane.xlu0 %894  ;;  %v4066_v16 = vld [vmem:[#allocation22_spill] sm:$0xff] }
 0x449   :  { %v2444_v58 = vpop.eup %2443  ;;  %2455 = vpow2.f32 %v1067_v51  ;;  %v969_v46 = vsub.f32 %v3124_v7, %v895_v12  ;;  %v970_v55 = vsub.f32 %v3126_v13, %v895_v12  ;;  %v88_v7 = vmul.f32 %v3323_v53, %v3323_v53  ;;  %v4065_v51 = vld [vmem:[#allocation21_spill] sm:$0xff] }
 0x44a   :  { %v2446_v0 = vpop.eup %2445  ;;  %v898_v40 = vpop.xlane.xlu1 %897  ;;  %v1137_v18 = vpack.c.bf16 %v2444_v58, %v2442_v57 }
 0x44b   :  { %v2448_v59 = vpop.eup %2447  ;;  %v1073_v60 = vmul.f32 1.442695, %v969_v46  ;;  %v971_v20 = vsub.f32 %v3128_v17, %v898_v40  ;;  %v972_v30 = vsub.f32 %v3132_v26, %v898_v40  ;;  %105 = vadd.xlane.f32.xlu1 %v104_v45  ;;  %v1075_v23 = vmul.f32 1.442695, %v970_v55  ;;  %v4067_v40 = vld [vmem:[#allocation23_spill] sm:$0xff] }
 0x44c   :  { %v1138_v13 = vpack.c.bf16 %v2446_v0, %v2448_v59  ;;  %v110_v54 = vadd.f32 %v88_v7, %v87_v21 }
 0x44d   :  { %v1077_v63 = vmul.f32 1.442695, %v971_v20  ;;  %v1079_v4 = vmul.f32 1.442695, %v972_v30  ;;  %2457 = vpow2.f32 %v1073_v60 }
 0x44e   :  { %1169 = vmatprep.subr.bf16.mxu0 %v1138_v13 }
 0x44f   :  { %2459 = vpow2.f32 %v1077_v63  ;;  %1170 = vmatpush1.bf16.xpose.msra.mxu0 %v1137_v18  ;;  %71 = vadd.xlane.f32.xlu1 %v70_v19  ;;  %v2450_v36 = vpop.eup %2449  ;;  %v4068_v19 = vld [vmem:[#allocation24_spill] sm:$0xff] }
 0x450   :  { %2461 = vpow2.f32 %v1079_v4  ;;  %v901_v2 = vpop.xlane.xlu0 %900  ;;  %v4070_v4 = vld [vmem:[#allocation26_spill] sm:$0xff] }
 0x451   :  { %v2452_v17 = vpop.eup %2451  ;;  %2463 = vpow2.f32 %v1075_v23  ;;  %v973_v26 = vsub.f32 %v3136_v47, %v901_v2  ;;  %v974_v14 = vsub.f32 %v3138_v15, %v901_v2  ;;  %v4069_v23 = vld [vmem:[#allocation25_spill] sm:$0xff] }
 0x452   :  { %v2454_v56 = vpop.eup %2453  ;;  %v904_v52 = vpop.xlane.xlu1 %903  ;;  %v1139_v28 = vpack.c.bf16 %v2452_v17, %v2450_v36 }
 0x453   :  { %v2456_v33 = vpop.eup %2455  ;;  %v1081_v32 = vmul.f32 1.442695, %v973_v26  ;;  %v975_v38 = vsub.f32 %v3140_v3, %v904_v52  ;;  %v976_v41 = vsub.f32 %v3144_v6, %v904_v52  ;;  %111 = vadd.xlane.f32.xlu1 %v110_v54  ;;  %v1083_v34 = vmul.f32 1.442695, %v974_v14  ;;  %v4071_v52 = vld [vmem:[#allocation27_spill] sm:$0xff] }
 0x454   :  { %v1140_v35 = vpack.c.bf16 %v2454_v56, %v2456_v33  ;;  %v4072_v33 = vld [vmem:[#allocation28_spill] sm:$0xff] }
 0x455   :  { %v1085_v43 = vmul.f32 1.442695, %v975_v38  ;;  %v1087_v24 = vmul.f32 1.442695, %v976_v41  ;;  %2465 = vpow2.f32 %v1081_v32 }
 0x456   :  { %1171 = vmatprep.subr.bf16.mxu0 %v1140_v35 }
 0x457   :  { %2467 = vpow2.f32 %v1085_v43  ;;  %1172 = vmatpush1.bf16.xpose.msra.mxu0 %v1139_v28  ;;  %v2458_v47 = vpop.eup %2457 }
 0x458   :  { %2469 = vpow2.f32 %v1087_v24  ;;  %v907_v15 = vpop.xlane.xlu0 %906 }
 0x459   :  { %v2460_v8 = vpop.eup %2459  ;;  %2471 = vpow2.f32 %v1083_v34  ;;  %v977_v9 = vsub.f32 %v3148_v22, %v907_v15  ;;  %v978_v3 = vsub.f32 %v4064_v42, %v907_v15 }
 0x45a   :  { %v2462_v25 = vpop.eup %2461  ;;  %v910_v6 = vpop.xlane.xlu1 %909  ;;  %v1141_v39 = vpack.c.bf16 %v2460_v8, %v2458_v47  ;;  %v4073_v47 = vld [vmem:[#allocation29_spill] sm:$0xff]  ;;  %v4074_v8 = vld [vmem:[#allocation30_spill] sm:$0xff] }
 0x45b   :  { %v2464_v1 = vpop.eup %2463  ;;  %v1089_v10 = vmul.f32 1.442695, %v977_v9  ;;  %v979_v44 = vsub.f32 %v4065_v51, %v910_v6  ;;  %v980_v45 = vsub.f32 %v4066_v16, %v910_v6  ;;  %v1091_v12 = vmul.f32 1.442695, %v978_v3 }
 0x45c   :  { %v1142_v57 = vpack.c.bf16 %v2462_v25, %v2464_v1 }
 0x45d   :  { %v1093_v58 = vmul.f32 1.442695, %v979_v44  ;;  %v1095_v46 = vmul.f32 1.442695, %v980_v45  ;;  %2473 = vpow2.f32 %v1089_v10 }
 0x45e   :  { %1173 = vmatprep.subr.bf16.mxu0 %v1142_v57 }
 0x45f   :  { %2475 = vpow2.f32 %v1093_v58  ;;  %1174 = vmatpush1.bf16.xpose.msra.mxu0 %v1141_v39  ;;  %v2466_v22 = vpop.eup %2465 }
 0x460   :  { %2477 = vpow2.f32 %v1095_v46  ;;  %v913_v55 = vpop.xlane.xlu0 %912 }
 0x461   :  { %v2468_v0 = vpop.eup %2467  ;;  %2479 = vpow2.f32 %v1091_v12  ;;  %v981_v18 = vsub.f32 %v4067_v40, %v913_v55  ;;  %v982_v21 = vsub.f32 %v4068_v19, %v913_v55 }
 0x462   :  { %v2470_v59 = vpop.eup %2469  ;;  %v916_v60 = vpop.xlane.xlu1 %915  ;;  %v1143_v20 = vpack.c.bf16 %v2468_v0, %v2466_v22  ;;  %v4075_v22 = vld [vmem:[#allocation35_spill] sm:$0xff]  ;;  %v4076_v0 = vld [vmem:[#allocation36_spill] sm:$0xff] }
 0x463   :  { %v2472_v30 = vpop.eup %2471  ;;  %v1097_v7 = vmul.f32 1.442695, %v981_v18  ;;  %v1099_v13 = vmul.f32 1.442695, %v982_v21  ;;  %v983_v63 = vsub.f32 %v4069_v23, %v916_v60  ;;  %v984_v54 = vsub.f32 %v4070_v4, %v916_v60  ;;  %v4077_v18 = vld [vmem:[#allocation33_spill] sm:$0xff]  ;;  %v4078_v21 = vld [vmem:[#allocation34_spill] sm:$0xff] }
 0x464   :  { %v1144_v36 = vpack.c.bf16 %v2470_v59, %v2472_v30  ;;  %v4079_v23 = vld [vmem:[#allocation31_spill] sm:$0xff]  ;;  %v4080_v4 = vld [vmem:[#allocation32_spill] sm:$0xff] }
 0x465   :  { %2481 = vpow2.f32 %v1097_v7  ;;  %v1101_v2 = vmul.f32 1.442695, %v983_v63  ;;  %v1103_v17 = vmul.f32 1.442695, %v984_v54 }
 0x466   :  { %2483 = vpow2.f32 %v1099_v13  ;;  %1175 = vmatprep.subr.bf16.mxu0 %v1144_v36 }
 0x467   :  { %2485 = vpow2.f32 %v1101_v2  ;;  %1176 = vmatpush1.bf16.xpose.msra.mxu0 %v1143_v20  ;;  %v2474_v26 = vpop.eup %2473 }
 0x468   :  { %2487 = vpow2.f32 %v1103_v17  ;;  %v919_v14 = vpop.xlane.xlu0 %918 }
 0x469   :  { %v2476_v56 = vpop.eup %2475  ;;  %v985_v28 = vsub.f32 %v4071_v52, %v919_v14  ;;  %v986_v32 = vsub.f32 %v4072_v33, %v919_v14 }
 0x46a   :  { %v2478_v38 = vpop.eup %2477  ;;  %v922_v41 = vpop.xlane.xlu1 %921  ;;  %v1145_v35 = vpack.c.bf16 %v2476_v56, %v2474_v26 }
 0x46b   :  { %v2480_v34 = vpop.eup %2479  ;;  %v1105_v43 = vmul.f32 1.442695, %v985_v28  ;;  %v1107_v24 = vmul.f32 1.442695, %v986_v32  ;;  %v987_v15 = vsub.f32 %v4073_v47, %v922_v41  ;;  %v988_v9 = vsub.f32 %v4074_v8, %v922_v41  ;;  %v4081_v41 = vld [vmem:[#allocation37_spill] sm:$0xff] }
 0x46c   :  { %v1146_v42 = vpack.c.bf16 %v2478_v38, %v2480_v34 }
 0x46d   :  { %2489 = vpow2.f32 %v1105_v43  ;;  %v1109_v3 = vmul.f32 1.442695, %v987_v15  ;;  %v1111_v25 = vmul.f32 1.442695, %v988_v9 }
 0x46e   :  { %2491 = vpow2.f32 %v1107_v24  ;;  %1177 = vmatprep.subr.bf16.mxu0 %v1146_v42  ;;  %v3351_v45 = vpop.permute.xlu1 %415  ;;  %v4007_v42 = vmov 1065369472  }
 0x46f   :  { %v2482_v6 = vpop.eup %2481  ;;  %2493 = vpow2.f32 %v1109_v3  ;;  %1178 = vmatpush1.bf16.xpose.msra.mxu0 %v1145_v35  ;;  %v526_v55 = vadd.f32 %v4075_v22, %v3351_v45  ;;  %v528_v40 = vadd.f32 %v4076_v0, %v3351_v45 }
 0x470   :  { %v2484_v39 = vpop.eup %2483  ;;  %2495 = vpow2.f32 %v1111_v25  ;;  %v925_v16 = vpop.xlane.xlu0 %924 }
 0x471   :  { %v2486_v1 = vpop.eup %2485  ;;  %v989_v63 = vsub.f32 %v4079_v23, %v925_v16  ;;  %v990_v54 = vsub.f32 %v4080_v4, %v925_v16 }
 0x472   :  { %v2488_v10 = vpop.eup %2487  ;;  %v1147_v51 = vpack.c.bf16 %v2486_v1, %v2482_v6  ;;  %v4083_v6 = vmov 0  }
 0x473   :  { %v1148_v44 = vpack.c.bf16 %v2488_v10, %v2484_v39  ;;  %v1113_v36 = vmul.f32 1.442695, %v989_v63  ;;  %v1115_v2 = vmul.f32 1.442695, %v990_v54 }
 0x475   :  { %1179 = vmatprep.subr.bf16.mxu0 %v1148_v44  ;;  %2497 = vpow2.f32 %v1113_v36 }
 0x476   :  { %2499 = vpow2.f32 %v1115_v2  ;;  %v2649_v2 = vld [vmem:[%s3960_s1] sm:$0xff] }
 0x477   :  { %v2490_v57 = vpop.eup %2489  ;;  %1180 = vmatpush1.bf16.xpose.msra.mxu0 %v1147_v51 }
 0x478   :  { %v2492_v12 = vpop.eup %2491  ;;  %v3353_v58 = vpop.permute.xlu0 %410 }
 0x479   :  { %v2494_v46 = vpop.eup %2493  ;;  %v522_v19 = vadd.f32 %v4077_v18, %v3353_v58  ;;  %v524_v59 = vadd.f32 %v4078_v21, %v3353_v58 }
 0x47a   :  { %v2496_v60 = vpop.eup %2495  ;;  %v1149_v20 = vpack.c.bf16 %v2494_v46, %v2490_v57 }
 0x47b   :  { %v556_v30 = vpack.c.bf16 %v526_v55, %v522_v19  ;;  %v1150_v7 = vpack.c.bf16 %v2496_v60, %v2492_v12  ;;  %v557_v13 = vpack.c.bf16 %v528_v40, %v524_v59 }
 0x47c   :  { %v3365_v26 = vpop.permute.xlu0 %425 }
 0x47d   :  { %1181 = vmatprep.subr.bf16.mxu0 %v1150_v7  ;;  %1185 = vmatprep.mubr.bf16.mxu0 %v557_v13  ;;  %v536_v33 = vadd.f32 %v3221_v31, %v3365_v26  ;;  %v538_v38 = vadd.f32 %v3223_v62, %v3365_v26 }
 0x47f   :  { %1182 = vmatpush1.bf16.xpose.msra.mxu0 %v1149_v20  ;;  %v2498_v24 = vpop.eup %2497 }
 0x480   :  { %v2500_v47 = vpop.eup %2499 }
 0x49f   :  { %v928_v17 = vpop.xlane.xlu1 %927 }
 0x4a0   :  { %v991_v14 = vsub.f32 %v3190_v50, %v928_v17  ;;  %v992_v56 = vsub.f32 %v3192_v5, %v928_v17  ;;  %v4082_v50 = vld [vmem:[#allocation38_spill] sm:$0xff] }
 0x4a2   :  { %v1117_v52 = vmul.f32 1.442695, %v991_v14  ;;  %v1119_v28 = vmul.f32 1.442695, %v992_v56  ;;  %v2650_v56 = vld [vmem:[%s3960_s1 + $0x8] sm:$0xff] }
 0x4a3   :  { %v3371_v32 = vpop.permute.xlu1 %420 }
 0x4a4   :  { %2501 = vpow2.f32 %v1117_v52  ;;  %v532_v35 = vadd.f32 %v4081_v41, %v3371_v32  ;;  %v534_v34 = vadd.f32 %v4082_v50, %v3371_v32 }
 0x4a5   :  { %2503 = vpow2.f32 %v1119_v28 }
 0x4a6   :  { %v559_v5 = vpack.c.bf16 %v538_v38, %v534_v34  ;;  %v558_v43 = vpack.c.bf16 %v536_v33, %v532_v35  ;;  %v2651_v38 = vld [vmem:[%s3961_s2] sm:$0xff]  ;;  %v2652_v35 = vld [vmem:[%s3960_s1 + $0x10] sm:$0xff]  ;;  %v2653_v34 = vld [vmem:[%s3961_s2 + $0x8] sm:$0xff] }
 0x4a9   :  { %v66_v62 = vpop.xlane.xlu0 %65 }
 0x4aa   :  { %v134_v44 = vmul.f32 0.00390625, %v66_v62  ;;  %v2656_v62 = vld [vmem:[%s3961_s2 + $0x18] sm:$0xff] }
 0x4ac   :  { %v150_v22 = vmul.f32 %v134_v44, %v134_v44 }
 0x4ad   :  { %v103_v3 = vpop.xlane.xlu0 %102 }
 0x4ae   :  { %v2502_v15 = vpop.eup %2501  ;;  %v141_v12 = vmul.f32 0.00390625, %v103_v3 }
 0x4af   :  { %v2504_v8 = vpop.eup %2503  ;;  %v1151_v31 = vpack.c.bf16 %v2502_v15, %v2498_v24 }
 0x4b0   :  { %v1152_v9 = vpack.c.bf16 %v2504_v8, %v2500_v47  ;;  %v2654_v47 = vld [vmem:[%s3960_s1 + $0x18] sm:$0xff] }
 0x4b1   :  { %v69_v25 = vpop.xlane.xlu0 %68 }
 0x4b2   :  { %1183 = vmatprep.subr.bf16.mxu0 %v1152_v9  ;;  %v135_v39 = vmul.f32 0.00390625, %v69_v25  ;;  %v4005_v25 = vmov 0.0  }
 0x4b3   :  { %1184 = vmatpush1.bf16.xpose.msra.mxu0 %v1151_v31  ;;  %v2655_v31 = vld [vmem:[%s3961_s2 + $0x10] sm:$0xff]  ;;  %1328 = vmatprep.mubr.f32.mxu1 %v4005_v25 }
 0x4b4   :  { %v151_v10 = vmul.f32 %v135_v39, %v135_v39 }
 0x4b5   :  { %v109_v1 = vpop.xlane.xlu0 %108 }
 0x4b6   :  { %v143_v51 = vmul.f32 0.00390625, %v109_v1 }
 0x4b8   :  { %v159_v46 = vsub.f32 %v143_v51, %v151_v10 }
 0x4ba   :  { %1186 = vmatmul.mubr.bf16.vlgmr.msra.gmra.mrb[24].mxu0 %v556_v30  ;;  %v167_v19 = vadd.f32 1e-05, %v159_v46 }
 0x4bb   :  { %1195 = vmatprep.mubr.bf16.mxu0 %v559_v5 }
 0x4c2   :  { %1196 = vmatmul.mubr.bf16.gmra.mrb[28].mxu0 %v558_v43 }
 0x4c3   :  { %1205 = vmatprep.mubr.bf16.mxu0 %v4007_v42 }
 0x4ca   :  { %1206 = vmatmul.mubr.bf16.gmra.mrb[32].mxu0 %v4007_v42 }
 0x4cb   :  { %1603 = vmatprep.mubr.bf16.mxu0 %v4083_v6 }
 0x4d4   :  { %v63_v16 = vpop.xlane.xlu1 %62 }
 0x4d5   :  { %v133_v57 = vmul.f32 0.00390625, %v63_v16 }
 0x4d7   :  { %v149_v55 = vmul.f32 %v133_v57, %v133_v57 }
 0x4d8   :  { %v106_v0 = vpop.xlane.xlu1 %105 }
 0x4d9   :  { %v157_v40 = vsub.f32 %v141_v12, %v149_v55  ;;  %v142_v18 = vmul.f32 0.00390625, %v106_v0 }
 0x4db   :  { %v165_v21 = vadd.f32 1e-05, %v157_v40  ;;  %v158_v59 = vsub.f32 %v142_v18, %v150_v22  ;;  %v1216_v22 = vlaneseq }
 0x4dc   :  { %v72_v60 = vpop.xlane.xlu1 %71 }
 0x4dd   :  { %2505 = vrsqrt.f32 %v165_v21  ;;  %v166_v20 = vadd.f32 1e-05, %v158_v59  ;;  %v136_v30 = vmul.f32 0.00390625, %v72_v60  ;;  %v1217_v21 = vshrl.u32 %v1216_v22, 7  ;;  %v4088_v22 = vld [vmem:[#allocation9_spill] sm:$0xff] }
 0x4de   :  { %2507 = vrsqrt.f32 %v167_v19 }
 0x4df   :  { %2509 = vrsqrt.f32 %v166_v20  ;;  %v152_v7 = vmul.f32 %v136_v30, %v136_v30  ;;  %v3407_v20 = vsub.s32 0, %v1217_v21 }
 0x4e0   :  { %v112_v13 = vpop.xlane.xlu1 %111 }
 0x4e1   :  { %v144_v23 = vmul.f32 0.00390625, %v112_v13  ;;  %4084 = vst [vmem:[#allocation20_spill] sm:$0xff] %v3407_v20 }
 0x4e3   :  { %v160_v63 = vsub.f32 %v144_v23, %v152_v7 }
 0x4e5   :  { %v168_v4 = vadd.f32 1e-05, %v160_v63 }
 0x4e7   :  { %v2506_v54 = vpop.eup %2505  ;;  %2511 = vrsqrt.f32 %v168_v4 }
 0x4e8   :  { %v2508_v36 = vpop.eup %2507  ;;  %v185_v17 = vmul.f32 %v2649_v2, %v2506_v54 }
 0x4e9   :  { %v2510_v14 = vpop.eup %2509  ;;  %v187_v50 = vmul.f32 %v2652_v35, %v2508_v36 }
 0x4ea   :  { %231 = vperm.xlu0 %2367, %v185_v17   ;;  %v186_v52 = vmul.f32 %v2650_v56, %v2510_v14  ;;  %v197_v28 = vmul.f32 %v185_v17, %v133_v57 }
 0x4eb   :  { %v199_v43 = vmul.f32 %v187_v50, %v135_v39 }
 0x4ec   :  { %236 = vperm.xlu1 %2368, %v186_v52   ;;  %v198_v33 = vmul.f32 %v186_v52, %v134_v44  ;;  %v205_v41 = vsub.f32 %v2651_v38, %v197_v28 }
 0x4ed   :  { %v207_v9 = vsub.f32 %v2655_v31, %v199_v43 }
 0x4ee   :  { %v206_v5 = vsub.f32 %v2653_v34, %v198_v33 }
 0x4f0   :  { %292 = vperm.xlu0 %2367, %v206_v5   ;;  %287 = vperm.xlu1 %2368, %v205_v41  }
 0x4f1   :  { %v2512_v24 = vpop.eup %2511 }
 0x4f2   :  { %v188_v15 = vmul.f32 %v2654_v47, %v2512_v24 }
 0x4f4   :  { %246 = vperm.xlu0 %2367, %v188_v15   ;;  %241 = vperm.xlu1 %2368, %v187_v50   ;;  %v200_v8 = vmul.f32 %v188_v15, %v136_v30 }
 0x4f6   :  { %v208_v3 = vsub.f32 %v2656_v62, %v200_v8 }
 0x4f8   :  { %302 = vperm.xlu0 %2367, %v208_v3   ;;  %297 = vperm.xlu1 %2368, %v207_v9  }
 0x569   :  { %v232_v19 = vpop.permute.xlu0 %231 }
 0x56a   :  { %v258_v41 = vmul.f32 %v232_v19, %v3258_v49  ;;  %v257_v24 = vmul.f32 %v232_v19, %v3253_v61 }
 0x56b   :  { %v237_v0 = vpop.permute.xlu1 %236 }
 0x56c   :  { %v260_v35 = vmul.f32 %v237_v0, %v3248_v48  ;;  %v259_v47 = vmul.f32 %v237_v0, %v3243_v37  ;;  %v359_v37 = vld [vmem:[%s3964_s5] sm:$0xff]  ;;  %v4090_v0 = vld [vmem:[#allocation19_spill] sm:$0xff] }
 0x56f   :  { %v288_v59 = vpop.permute.xlu1 %287  ;;  %v293_v60 = vpop.permute.xlu0 %292 }
 0x570   :  { %v314_v5 = vadd.f32 %v288_v59, %v258_v41  ;;  %v316_v43 = vadd.f32 %v293_v60, %v260_v35  ;;  %v313_v49 = vadd.f32 %v288_v59, %v257_v24  ;;  %v315_v62 = vadd.f32 %v293_v60, %v259_v47 }
 0x572   :  { %v326_v48 = vpack.c.bf16 %v316_v43, %v314_v5  ;;  %v325_v61 = vpack.c.bf16 %v315_v62, %v313_v49 }
 0x573   :  { %v242_v63 = vpop.permute.xlu1 %241  ;;  %v247_v4 = vpop.permute.xlu0 %246 }
 0x574   :  { %v262_v31 = vmul.f32 %v242_v63, %v3278_v11  ;;  %v264_v9 = vmul.f32 %v247_v4, %v3323_v53 }
 0x577   :  { %v298_v15 = vpop.permute.xlu1 %297  ;;  %v303_v8 = vpop.permute.xlu0 %302 }
 0x578   :  { %v318_v3 = vadd.f32 %v298_v15, %v262_v31 }
 0x58d   :  { %v1187_v39 = vpop.f32.mrb[24].mxu0 }
 0x58e   :  { %v1189_v1 = vpop.f32.mrb[25].mxu0 }
 0x58f   :  { %v1191_v10 = vpop.f32.mrb[26].mxu0 }
 0x590   :  { %v1193_v51 = vpop.f32.mrb[27].mxu0 }
 0x595   :  { %v1197_v44 = vpop.f32.mrb[28].mxu0 }
 0x596   :  { %v1199_v16 = vpop.f32.mrb[29].mxu0 }
 0x597   :  { %v1201_v57 = vpop.f32.mrb[30].mxu0 }
 0x598   :  { %v1203_v12 = vpop.f32.mrb[31].mxu0 }
 0x59d   :  { %v1207_v46 = vpop.f32.mrb[32].mxu0 }
 0x59e   :  { %2513 = vrcp.f32 %v1207_v46  ;;  %v1209_v55 = vpop.f32.mrb[33].mxu0  ;;  %v4087_v46 = vld [vmem:[#allocation8_spill] sm:$0xff] }
 0x59f   :  { %2515 = vrcp.f32 %v1209_v55  ;;  %v1211_v40 = vpop.f32.mrb[34].mxu0  ;;  %v4089_v55 = vld [vmem:[#allocation18_spill] sm:$0xff] }
 0x5a0   :  { %v1212_v18 = vpop.f32.mrb[35].mxu0 }
 0x5a8   :  { %v2514_v30 = vpop.eup %2513 }
 0x5a9   :  { %v2516_v7 = vpop.eup %2515  ;;  %v1219_v13 = vrot.slane %v2514_v30, %v3407_v20 }
 0x5aa   :  { %v1223_v23 = vrot.slane %v2516_v7, %v3407_v20 }
 0x5ab   :  { %v1224_v54 = vmul.f32 %v1219_v13, %v1187_v39  ;;  %v1226_v36 = vmul.f32 %v1219_v13, %v1191_v10  ;;  %v1228_v2 = vmul.f32 %v1219_v13, %v1197_v44  ;;  %v1230_v17 = vmul.f32 %v1219_v13, %v1201_v57  ;;  %v361_v44 = vld [vmem:[%s3964_s5 + $0x10] sm:$0xff]  ;;  %v4085_v57 = vld [vmem:[#allocation6_spill] sm:$0xff] }
 0x5ac   :  { %v1225_v14 = vmul.f32 %v1223_v23, %v1189_v1  ;;  %v1227_v56 = vmul.f32 %v1223_v23, %v1193_v51  ;;  %v1229_v52 = vmul.f32 %v1223_v23, %v1199_v16  ;;  %v1231_v28 = vmul.f32 %v1223_v23, %v1203_v12  ;;  %v362_v16 = vld [vmem:[%s3964_s5 + $0x18] sm:$0xff]  ;;  %v4086_v12 = vld [vmem:[#allocation7_spill] sm:$0xff]  ;;  %v4099_v23 = vld [vmem:[#allocation10_spill] sm:$0xff] }
 0x5ad   :  { %v2347_v33 = vpack.c.bf16 %v1226_v36, %v1224_v54  ;;  %v2351_v38 = vpack.c.bf16 %v1230_v17, %v1228_v2  ;;  %v320_v39 = vadd.f32 %v303_v8, %v264_v9  ;;  %v261_v1 = vmul.f32 %v242_v63, %v3273_v27  ;;  %v360_v27 = vld [vmem:[%s3964_s5 + $0x8] sm:$0xff] }
 0x5ae   :  { %v2345_v50 = vpack.c.bf16 %v1227_v56, %v1225_v14  ;;  %v2349_v34 = vpack.c.bf16 %v1231_v28, %v1229_v52  ;;  %v263_v10 = vmul.f32 %v247_v4, %v3318_v29  ;;  %v4100_v2 = vld [vmem:[#allocation11_spill] sm:$0xff] }
 0x5af   :  { %v317_v11 = vadd.f32 %v298_v15, %v261_v1  ;;  %v328_v53 = vpack.c.bf16 %v320_v39, %v318_v3  ;;  %v4102_v15 = vld [vmem:[#allocation13_spill] sm:$0xff] }
 0x5b0   :  { %2346 = vmatprep.subr.bf16.mxu1 %v2345_v50  ;;  %v319_v51 = vadd.f32 %v303_v8, %v263_v10 }
 0x5b1   :  { %2348 = vmatpush1.bf16.msra.mxu1 %v2347_v33 }
 0x5b2   :  { %2350 = vmatprep.subr.bf16.mxu1 %v2349_v34  ;;  %v327_v29 = vpack.c.bf16 %v319_v51, %v317_v11  ;;  %v4101_v34 = vld [vmem:[#allocation12_spill] sm:$0xff]  ;;  %v4103_v11 = vld [vmem:[#allocation15_spill] sm:$0xff] }
 0x5b5   :  { %2352 = vmatpush1.bf16.msra.mxu1 %v2351_v38 }
 0x5b6   :  { %1378 = vmatprep.subr.bf16.mxu1 %v326_v48 }
 0x5b8   :  { %2315 = vmatmul.mubr.msk.f32.vlgmr.msra.gmra.mrb[64].mxu1 %vm428_vm0, %v359_v37 }
 0x5b9   :  { %1379 = vmatpush1.bf16.msra.mxu1 %v325_v61  ;;  %1334 = vmatprep.mubr.f32.mxu1 %v4005_v25 }
 0x5ba   :  { %1380 = vmatprep.subr.bf16.mxu1 %v328_v53  ;;  %v4104_v53 = vld [vmem:[#allocation14_spill] sm:$0xff] }
 0x5bc   :  { %2316 = vmatmul.mubr.msk.f32.gmra.mrb[66].mxu1 %vm428_vm0, %v360_v27 }
 0x5bd   :  { %1381 = vmatpush1.bf16.msra.mxu1 %v327_v29  ;;  %1340 = vmatprep.mubr.f32.mxu1 %v4005_v25 }
 0x5c0   :  { %2317 = vmatmul.mubr.msk.f32.gmra.mrb[68].mxu1 %vm428_vm0, %v361_v44 }
 0x5c1   :  { %1346 = vmatprep.mubr.f32.mxu1 %v4005_v25 }
 0x5c4   :  { %2318 = vmatmul.mubr.msk.f32.gmra.mrb[70].mxu1 %vm428_vm0, %v362_v16 }
 0x5c5   :  { %1410 = vmatprep.mubr.bf16.mxu1 %v4083_v6 }
 0x5c8   :  { %2319 = vmatmul.mubr.msk.bf16.vlgmr.msra.gmra.mrb[72].mxu1 %vm428_vm0, %v4085_v57 }
 0x5c9   :  { %1420 = vmatprep.mubr.bf16.mxu1 %v4083_v6 }
 0x5d0   :  { %2320 = vmatmul.mubr.msk.bf16.gmra.mrb[76].mxu1 %vm428_vm0, %v4086_v12 }
 0x5d1   :  { %1430 = vmatprep.mubr.bf16.mxu1 %v4083_v6 }
 0x5d8   :  { %2321 = vmatmul.mubr.msk.bf16.gmra.mrb[80].mxu1 %vm428_vm0, %v4087_v46 }
 0x5d9   :  { %1440 = vmatprep.mubr.bf16.mxu1 %v4083_v6 }
 0x5e0   :  { %2322 = vmatmul.mubr.msk.bf16.gmra.mrb[84].mxu1 %vm428_vm0, %v4088_v22 }
 0x5e1   :  { %1450 = vmatprep.mubr.bf16.mxu1 %v4083_v6 }
 0x5e8   :  { %2323 = vmatmul.mubr.msk.bf16.gmra.mrb[88].mxu1 %vm428_vm0, %v4089_v55 }
 0x5e9   :  { %1460 = vmatprep.mubr.bf16.mxu1 %v4083_v6 }
 0x5f0   :  { %2324 = vmatmul.mubr.msk.bf16.gmra.mrb[92].mxu1 %vm428_vm0, %v4090_v0  ;;  %v4105_v0 = vld [vmem:[#allocation17_spill] sm:$0xff] }
 0x68b   :  { %v3456_v40 = vpop.f32.mrb[64].mxu1 }
 0x68c   :  { %4091 = vst [vmem:[#allocation21_spill] sm:$0xff] %v3456_v40  ;;  %v3458_v18 = vpop.f32.mrb[65].mxu1 }
 0x68d   :  { %4092 = vst [vmem:[#allocation22_spill] sm:$0xff] %v3458_v18 }
 0x68f   :  { %v3460_v19 = vpop.f32.mrb[66].mxu1 }
 0x690   :  { %4093 = vst [vmem:[#allocation23_spill] sm:$0xff] %v3460_v19  ;;  %v3462_v21 = vpop.f32.mrb[67].mxu1 }
 0x691   :  { %4094 = vst [vmem:[#allocation24_spill] sm:$0xff] %v3462_v21 }
 0x693   :  { %v3464_v59 = vpop.f32.mrb[68].mxu1 }
 0x694   :  { %4095 = vst [vmem:[#allocation25_spill] sm:$0xff] %v3464_v59  ;;  %v3466_v60 = vpop.f32.mrb[69].mxu1 }
 0x695   :  { %4096 = vst [vmem:[#allocation26_spill] sm:$0xff] %v3466_v60 }
 0x697   :  { %v3468_v30 = vpop.f32.mrb[70].mxu1 }
 0x698   :  { %4097 = vst [vmem:[#allocation27_spill] sm:$0xff] %v3468_v30  ;;  %v3470_v7 = vpop.f32.mrb[71].mxu1 }
 0x699   :  { %4098 = vst [vmem:[#allocation28_spill] sm:$0xff] %v3470_v7 }
 0x69b   :  { %v1412_v13 = vpop.f32.mrb[72].mxu1 }
 0x69c   :  { %v1413_v63 = vadd.f32 %v1412_v13, %v4099_v23  ;;  %v1414_v4 = vpop.f32.mrb[73].mxu1 }
 0x69d   :  { %v1415_v54 = vadd.f32 %v1414_v4, %v4099_v23  ;;  %v1416_v36 = vpop.f32.mrb[74].mxu1  ;;  %v4106_v23 = vld [vmem:[#allocation16_spill] sm:$0xff] }
 0x69e   :  { %v1417_v17 = vadd.f32 %v1416_v36, %v4100_v2  ;;  %v1418_v14 = vpop.f32.mrb[75].mxu1  ;;  %v1471_v52 = vmul.f32 0.17677669, %v1413_v63 }
 0x69f   :  { %v1419_v56 = vadd.f32 %v1418_v14, %v4100_v2  ;;  %v1472_v33 = vmul.f32 0.17677669, %v1415_v54 }
 0x6a0   :  { %v1473_v28 = vmul.f32 0.17677669, %v1417_v17 }
 0x6a1   :  { %v1474_v38 = vmul.f32 0.17677669, %v1419_v56 }
 0x6a2   :  { %v1479_v41 = vpack.c.bf16 %v1473_v28, %v1471_v52 }
 0x6a3   :  { %v1480_v35 = vpack.c.bf16 %v1474_v38, %v1472_v33  ;;  %v1422_v50 = vpop.f32.mrb[76].mxu1 }
 0x6a4   :  { %v1423_v5 = vadd.f32 %v1422_v50, %v4101_v34  ;;  %v1424_v43 = vpop.f32.mrb[77].mxu1  ;;  %1491 = vxpose.xlu1.c.b16.start [1/2] (short) %v1479_v41, 128 }
 0x6a5   :  { %v1425_v24 = vadd.f32 %v1424_v43, %v4101_v34  ;;  %v1426_v47 = vpop.f32.mrb[78].mxu1  ;;  %1507 = vxpose.xlu0.c.b16.start [1/2] (short) %v1480_v35, 128 }
 0x6a6   :  { %v1427_v8 = vadd.f32 %v1426_v47, %v4102_v15  ;;  %v1428_v31 = vpop.f32.mrb[79].mxu1  ;;  %v1475_v49 = vmul.f32 0.17677669, %v1423_v5 }
 0x6a7   :  { %v1429_v9 = vadd.f32 %v1428_v31, %v4102_v15  ;;  %v1476_v48 = vmul.f32 0.17677669, %v1425_v24 }
 0x6a8   :  { %v1477_v62 = vmul.f32 0.17677669, %v1427_v8 }
 0x6a9   :  { %v1478_v3 = vmul.f32 0.17677669, %v1429_v9 }
 0x6aa   :  { %v1481_v39 = vpack.c.bf16 %v1477_v62, %v1475_v49 }
 0x6ab   :  { %v1482_v1 = vpack.c.bf16 %v1478_v3, %v1476_v48  ;;  %v1432_v10 = vpop.f32.mrb[80].mxu1 }
 0x6ac   :  { %v1434_v37 = vpop.f32.mrb[81].mxu1  ;;  %1492 = vxpose.xlu1.c.b16.end [2/2] (short) %v1481_v39, 128  ;;  %v1433_v51 = vadd.f32 %v1432_v10, %v4103_v11 }
 0x6ad   :  { %v1436_v61 = vpop.f32.mrb[82].mxu1  ;;  %1508 = vxpose.xlu0.c.b16.end [2/2] (short) %v1482_v1, 128  ;;  %v1435_v44 = vadd.f32 %v1434_v37, %v4103_v11 }
 0x6ae   :  { %v1437_v27 = vadd.f32 %v1436_v61, %v4104_v53  ;;  %v1438_v29 = vpop.f32.mrb[83].mxu1 }
 0x6af   :  { %v1439_v16 = vadd.f32 %v1438_v29, %v4104_v53 }
 0x6b0   :  { %v1483_v57 = vpack.c.bf16 %v1437_v27, %v1433_v51 }
 0x6b1   :  { %v1484_v12 = vpack.c.bf16 %v1439_v16, %v1435_v44 }
 0x6b3   :  { %v1442_v46 = vpop.f32.mrb[84].mxu1  ;;  %1571 = vmatprep.subr.bf16.mxu0 %v1484_v12 }
 0x6b4   :  { %v1444_v22 = vpop.f32.mrb[85].mxu1  ;;  %1572 = vmatpush1.bf16.msra.mxu0 %v1483_v57  ;;  %v1443_v13 = vadd.f32 %v1442_v46, %v4105_v0 }
 0x6b5   :  { %v1446_v55 = vpop.f32.mrb[86].mxu1  ;;  %v1445_v54 = vadd.f32 %v1444_v22, %v4105_v0 }
 0x6b6   :  { %v1447_v63 = vadd.f32 %v1446_v55, %v4106_v23  ;;  %v1448_v4 = vpop.f32.mrb[87].mxu1 }
 0x6b7   :  { %v1449_v36 = vadd.f32 %v1448_v4, %v4106_v23 }
 0x6b8   :  { %v1485_v2 = vpack.c.bf16 %v1447_v63, %v1443_v13 }
 0x6b9   :  { %v1486_v17 = vpack.c.bf16 %v1449_v36, %v1445_v54 }
 0x6bb   :  { %v1452_v14 = vpop.f32.mrb[88].mxu1  ;;  %1573 = vmatprep.subr.bf16.mxu0 %v1486_v17 }
 0x6bc   :  { %v1454_v56 = vpop.f32.mrb[89].mxu1  ;;  %1574 = vmatpush1.bf16.msra.mxu0 %v1485_v2  ;;  %v3489_v28 = vadd.f32 %v1452_v14, %v3353_v58 }
 0x6bd   :  { %v1456_v52 = vpop.f32.mrb[90].mxu1  ;;  %v1455_v41 = vadd.f32 %v1454_v56, %v3353_v58 }
 0x6be   :  { %4107 = vst [vmem:[#allocation29_spill] sm:$0xff] %v3489_v28  ;;  %v3492_v33 = vadd.f32 %v1456_v52, %v3351_v45  ;;  %v1458_v38 = vpop.f32.mrb[91].mxu1 }
 0x6bf   :  { %v1459_v35 = vadd.f32 %v1458_v38, %v3351_v45 }
 0x6c0   :  { %4108 = vst [vmem:[#allocation30_spill] sm:$0xff] %v3492_v33 }
 0x6c1   :  { %v1488_v34 = vpack.c.bf16 %v1459_v35, %v1455_v41 }
 0x6c3   :  { %v1462_v5 = vpop.f32.mrb[92].mxu1  ;;  %2116 = vmatprep.mubr.bf16.mxu1 %v1488_v34 }
 0x6c4   :  { %v1464_v43 = vpop.f32.mrb[93].mxu1  ;;  %v3499_v47 = vadd.f32 %v1462_v5, %v3371_v32 }
 0x6c5   :  { %v1466_v24 = vpop.f32.mrb[94].mxu1  ;;  %v3505_v31 = vadd.f32 %v1464_v43, %v3371_v32 }
 0x6c6   :  { %4109 = vst [vmem:[#allocation35_spill] sm:$0xff] %v3499_v47  ;;  %v3502_v15 = vadd.f32 %v1466_v24, %v3365_v26  ;;  %v1468_v8 = vpop.f32.mrb[95].mxu1 }
 0x6c7   :  { %4111 = vst [vmem:[#allocation33_spill] sm:$0xff] %v3505_v31  ;;  %v3508_v45 = vadd.f32 %v1468_v8, %v3365_v26 }
 0x6c8   :  { %4110 = vst [vmem:[#allocation36_spill] sm:$0xff] %v3502_v15 }
 0x6c9   :  { %4112 = vst [vmem:[#allocation34_spill] sm:$0xff] %v3508_v45 }
 0x70e   :  { %v1499_v49 = vpop.trf.xlu1 }
 0x70f   :  { %2325 = vmatmul.mubr.msk.bf16.vlgmr.msra.gmra.mrb[36].mxu0 %vm428_vm0, %v1499_v49  ;;  %v1515_v10 = vpop.trf.xlu0 }
 0x710   :  { %1613 = vmatprep.mubr.bf16.mxu0 %v4083_v6 }
 0x712   :  { %v1500_v62 = vpop.trf.xlu1 }
 0x713   :  { %v1516_v37 = vpop.trf.xlu0 }
 0x716   :  { %v1501_v32 = vpop.trf.xlu1 }
 0x717   :  { %2326 = vmatmul.mubr.msk.bf16.gmra.mrb[40].mxu0 %vm428_vm0, %v1500_v62  ;;  %v1517_v61 = vpop.trf.xlu0 }
 0x718   :  { %1623 = vmatprep.mubr.bf16.mxu0 %v4083_v6 }
 0x71a   :  { %v1502_v26 = vpop.trf.xlu1 }
 0x71b   :  { %v1518_v11 = vpop.trf.xlu0 }
 0x71e   :  { %v1503_v48 = vpop.trf.xlu1 }
 0x71f   :  { %2327 = vmatmul.mubr.msk.bf16.gmra.mrb[44].mxu0 %vm428_vm0, %v1501_v32  ;;  %v1519_v51 = vpop.trf.xlu0 }
 0x720   :  { %1633 = vmatprep.mubr.bf16.mxu0 %v4083_v6 }
 0x722   :  { %v1504_v3 = vpop.trf.xlu1 }
 0x723   :  { %v1520_v53 = vpop.trf.xlu0 }
 0x726   :  { %v1505_v39 = vpop.trf.xlu1 }
 0x727   :  { %2328 = vmatmul.mubr.msk.bf16.gmra.mrb[48].mxu0 %vm428_vm0, %v1502_v26  ;;  %v1521_v27 = vpop.trf.xlu0 }
 0x728   :  { %1643 = vmatprep.mubr.bf16.mxu0 %v4083_v6 }
 0x72a   :  { %v1506_v1 = vpop.trf.xlu1 }
 0x72b   :  { %v1522_v29 = vpop.trf.xlu0 }
 0x72f   :  { %2329 = vmatmul.mubr.msk.bf16.gmra.mrb[52].mxu0 %vm428_vm0, %v1503_v48 }
 0x730   :  { %1653 = vmatprep.mubr.bf16.mxu0 %v4083_v6 }
 0x737   :  { %2330 = vmatmul.mubr.msk.bf16.gmra.mrb[56].mxu0 %vm428_vm0, %v1504_v3 }
 0x738   :  { %1663 = vmatprep.mubr.bf16.mxu0 %v4083_v6 }
 0x73f   :  { %2331 = vmatmul.mubr.msk.bf16.gmra.mrb[60].mxu0 %vm428_vm0, %v1505_v39 }
 0x740   :  { %1673 = vmatprep.mubr.bf16.mxu0 %v4083_v6 }
 0x747   :  { %2332 = vmatmul.mubr.msk.bf16.gmra.mrb[64].mxu0 %vm428_vm0, %v1506_v1 }
 0x748   :  { %1683 = vmatprep.mubr.bf16.mxu0 %v4083_v6 }
 0x74f   :  { %2333 = vmatmul.mubr.msk.bf16.gmra.mrb[68].mxu0 %vm428_vm0, %v1515_v10 }
 0x750   :  { %1693 = vmatprep.mubr.bf16.mxu0 %v4083_v6 }
 0x757   :  { %2334 = vmatmul.mubr.msk.bf16.gmra.mrb[72].mxu0 %vm428_vm0, %v1516_v37 }
 0x758   :  { %1703 = vmatprep.mubr.bf16.mxu0 %v4083_v6 }
 0x75f   :  { %2335 = vmatmul.mubr.msk.bf16.gmra.mrb[76].mxu0 %vm428_vm0, %v1517_v61 }
 0x760   :  { %1713 = vmatprep.mubr.bf16.mxu0 %v4083_v6 }
 0x767   :  { %2336 = vmatmul.mubr.msk.bf16.gmra.mrb[80].mxu0 %vm428_vm0, %v1518_v11 }
 0x768   :  { %1723 = vmatprep.mubr.bf16.mxu0 %v4083_v6 }
 0x76f   :  { %2337 = vmatmul.mubr.msk.bf16.gmra.mrb[84].mxu0 %vm428_vm0, %v1519_v51 }
 0x770   :  { %1733 = vmatprep.mubr.bf16.mxu0 %v4083_v6 }
 0x777   :  { %2338 = vmatmul.mubr.msk.bf16.gmra.mrb[88].mxu0 %vm428_vm0, %v1520_v53 }
 0x778   :  { %1743 = vmatprep.mubr.bf16.mxu0 %v4083_v6 }
 0x77f   :  { %2339 = vmatmul.mubr.msk.bf16.gmra.mrb[92].mxu0 %vm428_vm0, %v1521_v27 }
 0x780   :  { %1753 = vmatprep.mubr.bf16.mxu0 %v4083_v6 }
 0x787   :  { %2340 = vmatmul.mubr.msk.bf16.gmra.mrb[96].mxu0 %vm428_vm0, %v1522_v29 }
 0x788   :  { %2227 = vmatprep.mubr.f32.mxu0 %v4005_v25 }
 0x7e2   :  { %v3546_v44 = vpop.f32.mrb[36].mxu0 }
 0x7e3   :  { %v3548_v16 = vpop.f32.mrb[37].mxu0 }
 0x7e4   :  { %v1764_v57 = vmax.f32 %v3546_v44, %v3548_v16  ;;  %v3552_v12 = vpop.f32.mrb[38].mxu0 }
 0x7e5   :  { %v3554_v46 = vpop.f32.mrb[39].mxu0 }
 0x7e6   :  { %v1767_v22 = vmax.f32 %v3552_v12, %v3554_v46  ;;  %1765 = vmax.xlane.f32.xlu0 %v1764_v57 }
 0x7e8   :  { %1768 = vmax.xlane.f32.xlu1 %v1767_v22 }
 0x7ea   :  { %v3558_v6 = vpop.f32.mrb[40].mxu0 }
 0x7eb   :  { %v3560_v55 = vpop.f32.mrb[41].mxu0 }
 0x7ec   :  { %v1770_v0 = vmax.f32 %v3558_v6, %v3560_v55  ;;  %v3564_v13 = vpop.f32.mrb[42].mxu0 }
 0x7ed   :  { %v3566_v23 = vpop.f32.mrb[43].mxu0 }
 0x7ee   :  { %v1773_v63 = vmax.f32 %v3564_v13, %v3566_v23  ;;  %1771 = vmax.xlane.f32.xlu0 %v1770_v0 }
 0x7f0   :  { %1774 = vmax.xlane.f32.xlu1 %v1773_v63 }
 0x7f2   :  { %v3570_v4 = vpop.f32.mrb[44].mxu0 }
 0x7f3   :  { %v3572_v54 = vpop.f32.mrb[45].mxu0 }
 0x7f4   :  { %v1776_v36 = vmax.f32 %v3570_v4, %v3572_v54  ;;  %v3576_v2 = vpop.f32.mrb[46].mxu0 }
 0x7f5   :  { %v3578_v17 = vpop.f32.mrb[47].mxu0 }
 0x7f6   :  { %v1779_v14 = vmax.f32 %v3576_v2, %v3578_v17  ;;  %1777 = vmax.xlane.f32.xlu0 %v1776_v36 }
 0x7f8   :  { %1780 = vmax.xlane.f32.xlu1 %v1779_v14 }
 0x7fa   :  { %v3582_v56 = vpop.f32.mrb[48].mxu0 }
 0x7fb   :  { %v3584_v52 = vpop.f32.mrb[49].mxu0 }
 0x7fc   :  { %v1782_v38 = vmax.f32 %v3582_v56, %v3584_v52  ;;  %v3588_v41 = vpop.f32.mrb[50].mxu0 }
 0x7fd   :  { %v3590_v35 = vpop.f32.mrb[51].mxu0 }
 0x7fe   :  { %v1785_v34 = vmax.f32 %v3588_v41, %v3590_v35  ;;  %1783 = vmax.xlane.f32.xlu0 %v1782_v38 }
 0x800   :  { %1786 = vmax.xlane.f32.xlu1 %v1785_v34 }
 0x802   :  { %v3594_v5 = vpop.f32.mrb[52].mxu0 }
 0x803   :  { %v3596_v43 = vpop.f32.mrb[53].mxu0 }
 0x804   :  { %v1788_v24 = vmax.f32 %v3594_v5, %v3596_v43  ;;  %v3600_v8 = vpop.f32.mrb[54].mxu0 }
 0x805   :  { %v3602_v49 = vpop.f32.mrb[55].mxu0 }
 0x806   :  { %v1791_v62 = vmax.f32 %v3600_v8, %v3602_v49  ;;  %1789 = vmax.xlane.f32.xlu0 %v1788_v24 }
 0x808   :  { %1792 = vmax.xlane.f32.xlu1 %v1791_v62 }
 0x80a   :  { %v3606_v32 = vpop.f32.mrb[56].mxu0 }
 0x80b   :  { %v3608_v26 = vpop.f32.mrb[57].mxu0 }
 0x80c   :  { %v1794_v48 = vmax.f32 %v3606_v32, %v3608_v26  ;;  %v3612_v3 = vpop.f32.mrb[58].mxu0 }
 0x80d   :  { %v3614_v39 = vpop.f32.mrb[59].mxu0 }
 0x80e   :  { %v1797_v1 = vmax.f32 %v3612_v3, %v3614_v39  ;;  %1795 = vmax.xlane.f32.xlu0 %v1794_v48 }
 0x810   :  { %1798 = vmax.xlane.f32.xlu1 %v1797_v1 }
 0x812   :  { %v3618_v10 = vpop.f32.mrb[60].mxu0 }
 0x813   :  { %v3620_v37 = vpop.f32.mrb[61].mxu0 }
 0x814   :  { %v1800_v61 = vmax.f32 %v3618_v10, %v3620_v37  ;;  %v3624_v11 = vpop.f32.mrb[62].mxu0 }
 0x815   :  { %v3626_v51 = vpop.f32.mrb[63].mxu0 }
 0x816   :  { %v1803_v53 = vmax.f32 %v3624_v11, %v3626_v51  ;;  %1801 = vmax.xlane.f32.xlu0 %v1800_v61 }
 0x818   :  { %1804 = vmax.xlane.f32.xlu1 %v1803_v53 }
 0x81a   :  { %v3630_v27 = vpop.f32.mrb[64].mxu0 }
 0x81b   :  { %v3632_v29 = vpop.f32.mrb[65].mxu0 }
 0x81c   :  { %v1806_v57 = vmax.f32 %v3630_v27, %v3632_v29  ;;  %v3636_v22 = vpop.f32.mrb[66].mxu0 }
 0x81d   :  { %v3638_v0 = vpop.f32.mrb[67].mxu0 }
 0x81e   :  { %v1809_v63 = vmax.f32 %v3636_v22, %v3638_v0  ;;  %1807 = vmax.xlane.f32.xlu0 %v1806_v57 }
 0x820   :  { %1810 = vmax.xlane.f32.xlu1 %v1809_v63 }
 0x822   :  { %v3642_v36 = vpop.f32.mrb[68].mxu0 }
 0x823   :  { %v3644_v14 = vpop.f32.mrb[69].mxu0 }
 0x824   :  { %v1812_v38 = vmax.f32 %v3642_v36, %v3644_v14  ;;  %v3648_v34 = vpop.f32.mrb[70].mxu0 }
 0x825   :  { %v3650_v24 = vpop.f32.mrb[71].mxu0 }
 0x826   :  { %v1815_v62 = vmax.f32 %v3648_v34, %v3650_v24  ;;  %1813 = vmax.xlane.f32.xlu0 %v1812_v38 }
 0x828   :  { %1816 = vmax.xlane.f32.xlu1 %v1815_v62 }
 0x82a   :  { %v3654_v48 = vpop.f32.mrb[72].mxu0 }
 0x82b   :  { %v3656_v1 = vpop.f32.mrb[73].mxu0 }
 0x82c   :  { %v1818_v61 = vmax.f32 %v3654_v48, %v3656_v1  ;;  %v3660_v53 = vpop.f32.mrb[74].mxu0 }
 0x82d   :  { %v3662_v57 = vpop.f32.mrb[75].mxu0 }
 0x82e   :  { %v1821_v63 = vmax.f32 %v3660_v53, %v3662_v57  ;;  %1819 = vmax.xlane.f32.xlu0 %v1818_v61 }
 0x830   :  { %1822 = vmax.xlane.f32.xlu1 %v1821_v63 }
 0x832   :  { %v3666_v25 = vpop.f32.mrb[76].mxu0 }
 0x833   :  { %v3668_v38 = vpop.f32.mrb[77].mxu0 }
 0x834   :  { %v1824_v62 = vmax.f32 %v3666_v25, %v3668_v38  ;;  %v3672_v42 = vpop.f32.mrb[78].mxu0 }
 0x835   :  { %v3674_v58 = vpop.f32.mrb[79].mxu0 }
 0x836   :  { %v1827_v9 = vmax.f32 %v3672_v42, %v3674_v58  ;;  %1825 = vmax.xlane.f32.xlu0 %v1824_v62 }
 0x838   :  { %1828 = vmax.xlane.f32.xlu1 %v1827_v9 }
 0x83a   :  { %v3678_v50 = vpop.f32.mrb[80].mxu0 }
 0x83b   :  { %v3680_v61 = vpop.f32.mrb[81].mxu0 }
 0x83c   :  { %v1830_v63 = vmax.f32 %v3678_v50, %v3680_v61  ;;  %v3684_v20 = vpop.f32.mrb[82].mxu0 }
 0x83d   :  { %v3686_v47 = vpop.f32.mrb[83].mxu0 }
 0x83e   :  { %v1833_v15 = vmax.f32 %v3684_v20, %v3686_v47  ;;  %1831 = vmax.xlane.f32.xlu0 %v1830_v63 }
 0x840   :  { %1834 = vmax.xlane.f32.xlu1 %v1833_v15 }
 0x842   :  { %v3690_v31 = vpop.f32.mrb[84].mxu0 }
 0x843   :  { %v3692_v62 = vpop.f32.mrb[85].mxu0 }
 0x844   :  { %v1836_v9 = vmax.f32 %v3690_v31, %v3692_v62  ;;  %v3696_v45 = vpop.f32.mrb[86].mxu0 }
 0x845   :  { %v3698_v28 = vpop.f32.mrb[87].mxu0 }
 0x846   :  { %4113 = vst [vmem:[#allocation31_spill] sm:$0xff] %v3698_v28  ;;  %v1839_v33 = vmax.f32 %v3696_v45, %v3698_v28  ;;  %1837 = vmax.xlane.f32.xlu0 %v1836_v9 }
 0x848   :  { %1840 = vmax.xlane.f32.xlu1 %v1839_v33 }
 0x84a   :  { %v3702_v7 = vpop.f32.mrb[88].mxu0 }
 0x84b   :  { %4114 = vst [vmem:[#allocation32_spill] sm:$0xff] %v3702_v7  ;;  %v3704_v63 = vpop.f32.mrb[89].mxu0 }
 0x84c   :  { %4115 = vst [vmem:[#allocation37_spill] sm:$0xff] %v3704_v63  ;;  %v1842_v15 = vmax.f32 %v3702_v7, %v3704_v63  ;;  %v3708_v30 = vpop.f32.mrb[90].mxu0 }
 0x84d   :  { %4116 = vst [vmem:[#allocation38_spill] sm:$0xff] %v3708_v30  ;;  %v3710_v60 = vpop.f32.mrb[91].mxu0 }
 0x84e   :  { %4117 = vst [vmem:[#allocation6_spill] sm:$0xff] %v3710_v60  ;;  %v1845_v59 = vmax.f32 %v3708_v30, %v3710_v60  ;;  %1843 = vmax.xlane.f32.xlu0 %v1842_v15 }
 0x850   :  { %1846 = vmax.xlane.f32.xlu1 %v1845_v59 }
 0x852   :  { %v3714_v18 = vpop.f32.mrb[92].mxu0 }
 0x853   :  { %4118 = vst [vmem:[#allocation7_spill] sm:$0xff] %v3714_v18  ;;  %v3716_v9 = vpop.f32.mrb[93].mxu0 }
 0x854   :  { %4119 = vst [vmem:[#allocation8_spill] sm:$0xff] %v3716_v9  ;;  %v1848_v33 = vmax.f32 %v3714_v18, %v3716_v9  ;;  %v3720_v40 = vpop.f32.mrb[94].mxu0 }
 0x855   :  { %4120 = vst [vmem:[#allocation9_spill] sm:$0xff] %v3720_v40  ;;  %v3722_v21 = vpop.f32.mrb[95].mxu0 }
 0x856   :  { %4121 = vst [vmem:[#allocation18_spill] sm:$0xff] %v3722_v21  ;;  %v1851_v19 = vmax.f32 %v3720_v40, %v3722_v21  ;;  %1849 = vmax.xlane.f32.xlu0 %v1848_v33  ;;  %v363_v33 = vld [vmem:[%s3965_s6] sm:$0xff] }
 0x858   :  { %1852 = vmax.xlane.f32.xlu1 %v1851_v19  ;;  %v364_v19 = vld [vmem:[%s3965_s6 + $0x8] sm:$0xff] }
 0x85a   :  { %v3726_v63 = vpop.f32.mrb[96].mxu0 }
 0x85b   :  { %4122 = vst [vmem:[#allocation19_spill] sm:$0xff] %v3726_v63  ;;  %v3728_v15 = vpop.f32.mrb[97].mxu0 }
 0x85c   :  { %4123 = vst [vmem:[#allocation10_spill] sm:$0xff] %v3728_v15  ;;  %v1854_v59 = vmax.f32 %v3726_v63, %v3728_v15  ;;  %v3732_v60 = vpop.f32.mrb[98].mxu0  ;;  %v365_v15 = vld [vmem:[%s3965_s6 + $0x10] sm:$0xff] }
 0x85d   :  { %4124 = vst [vmem:[#allocation11_spill] sm:$0xff] %v3732_v60  ;;  %v3734_v30 = vpop.f32.mrb[99].mxu0 }
 0x85e   :  { %4125 = vst [vmem:[#allocation12_spill] sm:$0xff] %v3734_v30  ;;  %v1857_v9 = vmax.f32 %v3732_v60, %v3734_v30  ;;  %1855 = vmax.xlane.f32.xlu0 %v1854_v59  ;;  %v366_v59 = vld [vmem:[%s3965_s6 + $0x18] sm:$0xff] }
 0x860   :  { %1858 = vmax.xlane.f32.xlu1 %v1857_v9 }
 0x871   :  { %1239 = vperm.xlu1 %2368, %v364_v19  }
 0x873   :  { %v1766_v63 = vpop.xlane.xlu0 %1765 }
 0x874   :  { %v1860_v21 = vsub.f32 %v3546_v44, %v1766_v63  ;;  %v1861_v30 = vsub.f32 %v3548_v16, %v1766_v63  ;;  %1234 = vperm.xlu0 %2367, %v363_v33  }
 0x875   :  { %1244 = vperm.xlu1 %2368, %v365_v15   ;;  %v1769_v9 = vpop.xlane.xlu1 %1768 }
 0x876   :  { %v1924_v19 = vmul.f32 1.442695, %v1860_v21  ;;  %v1862_v60 = vsub.f32 %v3552_v12, %v1769_v9  ;;  %v1863_v40 = vsub.f32 %v3554_v46, %v1769_v9  ;;  %v1926_v18 = vmul.f32 1.442695, %v1861_v30 }
 0x878   :  { %v1928_v7 = vmul.f32 1.442695, %v1862_v60  ;;  %v1930_v28 = vmul.f32 1.442695, %v1863_v40  ;;  %1249 = vperm.xlu0 %2367, %v366_v59   ;;  %2517 = vpow2.f32 %v1924_v19 }
 0x87a   :  { %2519 = vpow2.f32 %v1928_v7 }
 0x87b   :  { %2521 = vpow2.f32 %v1930_v28  ;;  %v1772_v44 = vpop.xlane.xlu0 %1771 }
 0x87c   :  { %2523 = vpow2.f32 %v1926_v18  ;;  %v1864_v16 = vsub.f32 %v3558_v6, %v1772_v44  ;;  %v1865_v63 = vsub.f32 %v3560_v55, %v1772_v44 }
 0x87d   :  { %v1775_v15 = vpop.xlane.xlu1 %1774 }
 0x87e   :  { %v1932_v33 = vmul.f32 1.442695, %v1864_v16  ;;  %v1866_v21 = vsub.f32 %v3564_v13, %v1775_v15  ;;  %v1867_v12 = vsub.f32 %v3566_v23, %v1775_v15  ;;  %v1934_v46 = vmul.f32 1.442695, %v1865_v63 }
 0x880   :  { %v1936_v30 = vmul.f32 1.442695, %v1866_v21  ;;  %v1938_v60 = vmul.f32 1.442695, %v1867_v12  ;;  %2525 = vpow2.f32 %v1932_v33 }
 0x882   :  { %2527 = vpow2.f32 %v1936_v30  ;;  %v2518_v40 = vpop.eup %2517 }
 0x883   :  { %2529 = vpow2.f32 %v1938_v60  ;;  %v1778_v7 = vpop.xlane.xlu0 %1777 }
 0x884   :  { %v2520_v28 = vpop.eup %2519  ;;  %2531 = vpow2.f32 %v1934_v46  ;;  %v1868_v18 = vsub.f32 %v3570_v4, %v1778_v7  ;;  %v1869_v6 = vsub.f32 %v3572_v54, %v1778_v7 }
 0x885   :  { %v2522_v55 = vpop.eup %2521  ;;  %v1781_v9 = vpop.xlane.xlu1 %1780  ;;  %v2052_v59 = vpack.c.bf16 %v2520_v28, %v2518_v40 }
 0x886   :  { %v2524_v13 = vpop.eup %2523  ;;  %v1940_v19 = vmul.f32 1.442695, %v1868_v18  ;;  %v1870_v23 = vsub.f32 %v3576_v2, %v1781_v9  ;;  %v1871_v44 = vsub.f32 %v3578_v17, %v1781_v9  ;;  %v1942_v63 = vmul.f32 1.442695, %v1869_v6 }
 0x887   :  { %v2053_v16 = vpack.c.bf16 %v2522_v55, %v2524_v13 }
 0x888   :  { %v1944_v15 = vmul.f32 1.442695, %v1870_v23  ;;  %v1946_v33 = vmul.f32 1.442695, %v1871_v44  ;;  %2533 = vpow2.f32 %v1940_v19 }
 0x889   :  { %2084 = vmatprep.subr.bf16.mxu1 %v2053_v16 }
 0x88a   :  { %2535 = vpow2.f32 %v1944_v15  ;;  %2085 = vmatpush1.bf16.xpose.msra.mxu1 %v2052_v59  ;;  %v2526_v4 = vpop.eup %2525 }
 0x88b   :  { %2537 = vpow2.f32 %v1946_v33  ;;  %v1784_v54 = vpop.xlane.xlu0 %1783 }
 0x88c   :  { %v2528_v21 = vpop.eup %2527  ;;  %2539 = vpow2.f32 %v1942_v63  ;;  %v1872_v12 = vsub.f32 %v3582_v56, %v1784_v54  ;;  %v1873_v46 = vsub.f32 %v3584_v52, %v1784_v54 }
 0x88d   :  { %v2530_v2 = vpop.eup %2529  ;;  %v1787_v30 = vpop.xlane.xlu1 %1786  ;;  %v2054_v17 = vpack.c.bf16 %v2528_v21, %v2526_v4 }
 0x88e   :  { %v2532_v60 = vpop.eup %2531  ;;  %v1948_v40 = vmul.f32 1.442695, %v1872_v12  ;;  %v1874_v7 = vsub.f32 %v3588_v41, %v1787_v30  ;;  %v1875_v28 = vsub.f32 %v3590_v35, %v1787_v30  ;;  %v1950_v6 = vmul.f32 1.442695, %v1873_v46 }
 0x88f   :  { %v2055_v18 = vpack.c.bf16 %v2530_v2, %v2532_v60 }
 0x890   :  { %v1952_v55 = vmul.f32 1.442695, %v1874_v7  ;;  %v1954_v9 = vmul.f32 1.442695, %v1875_v28  ;;  %2541 = vpow2.f32 %v1948_v40 }
 0x891   :  { %2086 = vmatprep.subr.bf16.mxu1 %v2055_v18 }
 0x892   :  { %2543 = vpow2.f32 %v1952_v55  ;;  %2087 = vmatpush1.bf16.xpose.msra.mxu1 %v2054_v17  ;;  %v2534_v56 = vpop.eup %2533 }
 0x893   :  { %2545 = vpow2.f32 %v1954_v9  ;;  %v1790_v52 = vpop.xlane.xlu0 %1789 }
 0x894   :  { %v2536_v59 = vpop.eup %2535  ;;  %2547 = vpow2.f32 %v1950_v6  ;;  %v1876_v13 = vsub.f32 %v3594_v5, %v1790_v52  ;;  %v1877_v19 = vsub.f32 %v3596_v43, %v1790_v52 }
 0x895   :  { %v2538_v41 = vpop.eup %2537  ;;  %v1793_v23 = vpop.xlane.xlu1 %1792  ;;  %v2056_v35 = vpack.c.bf16 %v2536_v59, %v2534_v56 }
 0x896   :  { %v2540_v44 = vpop.eup %2539  ;;  %v1956_v16 = vmul.f32 1.442695, %v1876_v13  ;;  %v1878_v63 = vsub.f32 %v3600_v8, %v1793_v23  ;;  %v1879_v15 = vsub.f32 %v3602_v49, %v1793_v23  ;;  %v1958_v4 = vmul.f32 1.442695, %v1877_v19 }
 0x897   :  { %v2057_v33 = vpack.c.bf16 %v2538_v41, %v2540_v44 }
 0x898   :  { %v1960_v54 = vmul.f32 1.442695, %v1878_v63  ;;  %v1962_v21 = vmul.f32 1.442695, %v1879_v15  ;;  %2549 = vpow2.f32 %v1956_v16 }
 0x899   :  { %2088 = vmatprep.subr.bf16.mxu1 %v2057_v33 }
 0x89a   :  { %2551 = vpow2.f32 %v1960_v54  ;;  %2089 = vmatpush1.bf16.xpose.msra.mxu1 %v2056_v35  ;;  %v2542_v5 = vpop.eup %2541 }
 0x89b   :  { %2553 = vpow2.f32 %v1962_v21  ;;  %v1796_v43 = vpop.xlane.xlu0 %1795 }
 0x89c   :  { %v2544_v12 = vpop.eup %2543  ;;  %2555 = vpow2.f32 %v1958_v4  ;;  %v1880_v46 = vsub.f32 %v3606_v32, %v1796_v43  ;;  %v1881_v2 = vsub.f32 %v3608_v26, %v1796_v43 }
 0x89d   :  { %v2546_v8 = vpop.eup %2545  ;;  %v1799_v30 = vpop.xlane.xlu1 %1798  ;;  %v2058_v49 = vpack.c.bf16 %v2544_v12, %v2542_v5 }
 0x89e   :  { %v2548_v17 = vpop.eup %2547  ;;  %v1964_v60 = vmul.f32 1.442695, %v1880_v46  ;;  %v1882_v40 = vsub.f32 %v3612_v3, %v1799_v30  ;;  %v1883_v7 = vsub.f32 %v3614_v39, %v1799_v30  ;;  %v1966_v18 = vmul.f32 1.442695, %v1881_v2 }
 0x89f   :  { %v2059_v28 = vpack.c.bf16 %v2546_v8, %v2548_v17 }
 0x8a0   :  { %v1968_v6 = vmul.f32 1.442695, %v1882_v40  ;;  %v1970_v55 = vmul.f32 1.442695, %v1883_v7  ;;  %2557 = vpow2.f32 %v1964_v60 }
 0x8a1   :  { %2090 = vmatprep.subr.bf16.mxu1 %v2059_v28 }
 0x8a2   :  { %2559 = vpow2.f32 %v1968_v6  ;;  %2091 = vmatpush1.bf16.xpose.msra.mxu1 %v2058_v49  ;;  %v2550_v32 = vpop.eup %2549 }
 0x8a3   :  { %2561 = vpow2.f32 %v1970_v55  ;;  %v1802_v26 = vpop.xlane.xlu0 %1801 }
 0x8a4   :  { %v2552_v9 = vpop.eup %2551  ;;  %2563 = vpow2.f32 %v1966_v18  ;;  %v1884_v56 = vsub.f32 %v3618_v10, %v1802_v26  ;;  %v1885_v52 = vsub.f32 %v3620_v37, %v1802_v26 }
 0x8a5   :  { %v2554_v3 = vpop.eup %2553  ;;  %v1805_v59 = vpop.xlane.xlu1 %1804  ;;  %v2060_v39 = vpack.c.bf16 %v2552_v9, %v2550_v32 }
 0x8a6   :  { %v2556_v13 = vpop.eup %2555  ;;  %v1972_v19 = vmul.f32 1.442695, %v1884_v56  ;;  %v1886_v41 = vsub.f32 %v3624_v11, %v1805_v59  ;;  %v1887_v23 = vsub.f32 %v3626_v51, %v1805_v59  ;;  %v1974_v44 = vmul.f32 1.442695, %v1885_v52 }
 0x8a7   :  { %v2061_v35 = vpack.c.bf16 %v2554_v3, %v2556_v13 }
 0x8a8   :  { %v1976_v16 = vmul.f32 1.442695, %v1886_v41  ;;  %v1978_v63 = vmul.f32 1.442695, %v1887_v23  ;;  %2565 = vpow2.f32 %v1972_v19 }
 0x8a9   :  { %2092 = vmatprep.subr.bf16.mxu1 %v2061_v35 }
 0x8aa   :  { %2567 = vpow2.f32 %v1976_v16  ;;  %2093 = vmatpush1.bf16.xpose.msra.mxu1 %v2060_v39  ;;  %v2558_v10 = vpop.eup %2557 }
 0x8ab   :  { %2569 = vpow2.f32 %v1978_v63  ;;  %v1808_v37 = vpop.xlane.xlu0 %1807 }
 0x8ac   :  { %v2560_v15 = vpop.eup %2559  ;;  %2571 = vpow2.f32 %v1974_v44  ;;  %v1888_v33 = vsub.f32 %v3630_v27, %v1808_v37  ;;  %v1889_v4 = vsub.f32 %v3632_v29, %v1808_v37 }
 0x8ad   :  { %v2562_v11 = vpop.eup %2561  ;;  %v1811_v54 = vpop.xlane.xlu1 %1810  ;;  %v2062_v51 = vpack.c.bf16 %v2560_v15, %v2558_v10 }
 0x8ae   :  { %v2564_v21 = vpop.eup %2563  ;;  %v1980_v5 = vmul.f32 1.442695, %v1888_v33  ;;  %v1890_v43 = vsub.f32 %v3636_v22, %v1811_v54  ;;  %v1891_v12 = vsub.f32 %v3638_v0, %v1811_v54  ;;  %v1982_v2 = vmul.f32 1.442695, %v1889_v4 }
 0x8af   :  { %v2063_v46 = vpack.c.bf16 %v2562_v11, %v2564_v21 }
 0x8b0   :  { %v1984_v8 = vmul.f32 1.442695, %v1890_v43  ;;  %v1986_v30 = vmul.f32 1.442695, %v1891_v12  ;;  %2573 = vpow2.f32 %v1980_v5 }
 0x8b1   :  { %2094 = vmatprep.subr.bf16.mxu1 %v2063_v46 }
 0x8b2   :  { %2575 = vpow2.f32 %v1984_v8  ;;  %2095 = vmatpush1.bf16.xpose.msra.mxu1 %v2062_v51  ;;  %v2566_v27 = vpop.eup %2565 }
 0x8b3   :  { %2577 = vpow2.f32 %v1986_v30  ;;  %v1814_v29 = vpop.xlane.xlu0 %1813 }
 0x8b4   :  { %v2568_v49 = vpop.eup %2567  ;;  %2579 = vpow2.f32 %v1982_v2  ;;  %v1892_v17 = vsub.f32 %v3642_v36, %v1814_v29  ;;  %v1893_v60 = vsub.f32 %v3644_v14, %v1814_v29 }
 0x8b5   :  { %v2570_v22 = vpop.eup %2569  ;;  %v1817_v40 = vpop.xlane.xlu1 %1816  ;;  %v2064_v0 = vpack.c.bf16 %v2568_v49, %v2566_v27 }
 0x8b6   :  { %v2572_v7 = vpop.eup %2571  ;;  %v1988_v28 = vmul.f32 1.442695, %v1892_v17  ;;  %v1894_v18 = vsub.f32 %v3648_v34, %v1817_v40  ;;  %v1895_v6 = vsub.f32 %v3650_v24, %v1817_v40  ;;  %v1990_v32 = vmul.f32 1.442695, %v1893_v60 }
 0x8b7   :  { %v2065_v55 = vpack.c.bf16 %v2570_v22, %v2572_v7 }
 0x8b8   :  { %v1992_v26 = vmul.f32 1.442695, %v1894_v18  ;;  %v1994_v9 = vmul.f32 1.442695, %v1895_v6  ;;  %2581 = vpow2.f32 %v1988_v28 }
 0x8b9   :  { %2096 = vmatprep.subr.bf16.mxu1 %v2065_v55 }
 0x8ba   :  { %2583 = vpow2.f32 %v1992_v26  ;;  %2097 = vmatpush1.bf16.xpose.msra.mxu1 %v2064_v0  ;;  %v2574_v36 = vpop.eup %2573  ;;  %v4126_v26 = vld [vmem:[#allocation31_spill] sm:$0xff] }
 0x8bb   :  { %2585 = vpow2.f32 %v1994_v9  ;;  %v1820_v14 = vpop.xlane.xlu0 %1819 }
 0x8bc   :  { %v2576_v56 = vpop.eup %2575  ;;  %2587 = vpow2.f32 %v1990_v32  ;;  %v1896_v52 = vsub.f32 %v3654_v48, %v1820_v14  ;;  %v1897_v3 = vsub.f32 %v3656_v1, %v1820_v14 }
 0x8bd   :  { %v2578_v34 = vpop.eup %2577  ;;  %v1823_v59 = vpop.xlane.xlu1 %1822  ;;  %v2066_v24 = vpack.c.bf16 %v2576_v56, %v2574_v36 }
 0x8be   :  { %v2580_v39 = vpop.eup %2579  ;;  %v1996_v13 = vmul.f32 1.442695, %v1896_v52  ;;  %v1898_v19 = vsub.f32 %v3660_v53, %v1823_v59  ;;  %v1899_v41 = vsub.f32 %v3662_v57, %v1823_v59  ;;  %v1998_v35 = vmul.f32 1.442695, %v1897_v3 }
 0x8bf   :  { %v2067_v23 = vpack.c.bf16 %v2578_v34, %v2580_v39  ;;  %v4127_v34 = vld [vmem:[#allocation32_spill] sm:$0xff] }
 0x8c0   :  { %v2000_v44 = vmul.f32 1.442695, %v1898_v19  ;;  %v2002_v16 = vmul.f32 1.442695, %v1899_v41  ;;  %2589 = vpow2.f32 %v1996_v13 }
 0x8c1   :  { %2098 = vmatprep.subr.bf16.mxu1 %v2067_v23 }
 0x8c2   :  { %2591 = vpow2.f32 %v2000_v44  ;;  %2099 = vmatpush1.bf16.xpose.msra.mxu1 %v2066_v24  ;;  %v2582_v48 = vpop.eup %2581  ;;  %v4128_v24 = vld [vmem:[#allocation37_spill] sm:$0xff] }
 0x8c3   :  { %2593 = vpow2.f32 %v2002_v16  ;;  %v1826_v1 = vpop.xlane.xlu0 %1825  ;;  %v4130_v16 = vld [vmem:[#allocation6_spill] sm:$0xff] }
 0x8c4   :  { %v2584_v63 = vpop.eup %2583  ;;  %2595 = vpow2.f32 %v1998_v35  ;;  %v1900_v10 = vsub.f32 %v3666_v25, %v1826_v1  ;;  %v1901_v37 = vsub.f32 %v3668_v38, %v1826_v1  ;;  %v4129_v35 = vld [vmem:[#allocation38_spill] sm:$0xff] }
 0x8c5   :  { %v2586_v53 = vpop.eup %2585  ;;  %v1829_v15 = vpop.xlane.xlu1 %1828  ;;  %v2068_v57 = vpack.c.bf16 %v2584_v63, %v2582_v48 }
 0x8c6   :  { %v2588_v33 = vpop.eup %2587  ;;  %v2004_v4 = vmul.f32 1.442695, %v1900_v10  ;;  %v1902_v11 = vsub.f32 %v3672_v42, %v1829_v15  ;;  %v1903_v54 = vsub.f32 %v3674_v58, %v1829_v15  ;;  %v2006_v21 = vmul.f32 1.442695, %v1901_v37 }
 0x8c7   :  { %v2069_v51 = vpack.c.bf16 %v2586_v53, %v2588_v33  ;;  %v4131_v33 = vld [vmem:[#allocation7_spill] sm:$0xff] }
 0x8c8   :  { %v2008_v5 = vmul.f32 1.442695, %v1902_v11  ;;  %v2010_v43 = vmul.f32 1.442695, %v1903_v54  ;;  %2597 = vpow2.f32 %v2004_v4  ;;  %v4132_v11 = vld [vmem:[#allocation8_spill] sm:$0xff] }
 0x8c9   :  { %2100 = vmatprep.subr.bf16.mxu1 %v2069_v51 }
 0x8ca   :  { %2599 = vpow2.f32 %v2008_v5  ;;  %2101 = vmatpush1.bf16.xpose.msra.mxu1 %v2068_v57  ;;  %v2590_v25 = vpop.eup %2589 }
 0x8cb   :  { %2601 = vpow2.f32 %v2010_v43  ;;  %v1832_v38 = vpop.xlane.xlu0 %1831 }
 0x8cc   :  { %v2592_v12 = vpop.eup %2591  ;;  %2603 = vpow2.f32 %v2006_v21  ;;  %v1904_v46 = vsub.f32 %v3678_v50, %v1832_v38  ;;  %v1905_v2 = vsub.f32 %v3680_v61, %v1832_v38  ;;  %v4133_v38 = vld [vmem:[#allocation9_spill] sm:$0xff] }
 0x8cd   :  { %v2594_v42 = vpop.eup %2593  ;;  %v1835_v8 = vpop.xlane.xlu1 %1834  ;;  %v2070_v58 = vpack.c.bf16 %v2592_v12, %v2590_v25 }
 0x8ce   :  { %v2596_v30 = vpop.eup %2595  ;;  %v2012_v27 = vmul.f32 1.442695, %v1904_v46  ;;  %v1906_v29 = vsub.f32 %v3684_v20, %v1835_v8  ;;  %v1907_v49 = vsub.f32 %v3686_v47, %v1835_v8  ;;  %v2014_v60 = vmul.f32 1.442695, %v1905_v2  ;;  %v4134_v46 = vld [vmem:[#allocation18_spill] sm:$0xff] }
 0x8cf   :  { %v2071_v17 = vpack.c.bf16 %v2594_v42, %v2596_v30 }
 0x8d0   :  { %v2016_v22 = vmul.f32 1.442695, %v1906_v29  ;;  %v2018_v40 = vmul.f32 1.442695, %v1907_v49  ;;  %2605 = vpow2.f32 %v2012_v27 }
 0x8d1   :  { %2102 = vmatprep.subr.bf16.mxu1 %v2071_v17  ;;  %v4135_v17 = vld [vmem:[#allocation19_spill] sm:$0xff] }
 0x8d2   :  { %2607 = vpow2.f32 %v2016_v22  ;;  %2103 = vmatpush1.bf16.xpose.msra.mxu1 %v2070_v58  ;;  %v2598_v50 = vpop.eup %2597  ;;  %v4136_v22 = vld [vmem:[#allocation10_spill] sm:$0xff] }
 0x8d3   :  { %2609 = vpow2.f32 %v2018_v40  ;;  %v1838_v61 = vpop.xlane.xlu0 %1837 }
 0x8d4   :  { %v2600_v0 = vpop.eup %2599  ;;  %2611 = vpow2.f32 %v2014_v60  ;;  %v1908_v7 = vsub.f32 %v3690_v31, %v1838_v61  ;;  %v1909_v28 = vsub.f32 %v3692_v62, %v1838_v61 }
 0x8d5   :  { %v2602_v20 = vpop.eup %2601  ;;  %v1841_v18 = vpop.xlane.xlu1 %1840  ;;  %v2072_v47 = vpack.c.bf16 %v2600_v0, %v2598_v50 }
 0x8d6   :  { %v2604_v6 = vpop.eup %2603  ;;  %v2020_v55 = vmul.f32 1.442695, %v1908_v7  ;;  %v1910_v32 = vsub.f32 %v3696_v45, %v1841_v18  ;;  %v1911_v9 = vsub.f32 %v4126_v26, %v1841_v18  ;;  %v2022_v14 = vmul.f32 1.442695, %v1909_v28  ;;  %v4137_v18 = vld [vmem:[#allocation11_spill] sm:$0xff] }
 0x8d7   :  { %v2073_v36 = vpack.c.bf16 %v2602_v20, %v2604_v6  ;;  %v4138_v6 = vld [vmem:[#allocation12_spill] sm:$0xff] }
 0x8d8   :  { %v2024_v56 = vmul.f32 1.442695, %v1910_v32  ;;  %v2026_v52 = vmul.f32 1.442695, %v1911_v9  ;;  %2613 = vpow2.f32 %v2020_v55 }
 0x8d9   :  { %2104 = vmatprep.subr.bf16.mxu1 %v2073_v36  ;;  %v3817_v36 = vstv %s3966_s7 }
 0x8da   :  { %2615 = vpow2.f32 %v2024_v56  ;;  %2105 = vmatpush1.bf16.xpose.msra.mxu1 %v2072_v47  ;;  %v2606_v31 = vpop.eup %2605  ;;  %v4139_v56 = vld [vmem:[#allocation23_spill] sm:$0xff] }
 0x8db   :  { %2617 = vpow2.f32 %v2026_v52  ;;  %v1844_v62 = vpop.xlane.xlu0 %1843 }
 0x8dc   :  { %v2608_v3 = vpop.eup %2607  ;;  %2619 = vpow2.f32 %v2022_v14  ;;  %v1912_v59 = vsub.f32 %v4127_v34, %v1844_v62  ;;  %v1913_v39 = vsub.f32 %v4128_v24, %v1844_v62 }
 0x8dd   :  { %v2610_v45 = vpop.eup %2609  ;;  %v1847_v13 = vpop.xlane.xlu1 %1846  ;;  %v2074_v19 = vpack.c.bf16 %v2608_v3, %v2606_v31  ;;  %v4140_v31 = vld [vmem:[#allocation24_spill] sm:$0xff] }
 0x8de   :  { %v2612_v41 = vpop.eup %2611  ;;  %v2028_v23 = vmul.f32 1.442695, %v1912_v59  ;;  %v1914_v44 = vsub.f32 %v4129_v35, %v1847_v13  ;;  %v1915_v48 = vsub.f32 %v4130_v16, %v1847_v13  ;;  %v2030_v63 = vmul.f32 1.442695, %v1913_v39 }
 0x8df   :  { %v2075_v1 = vpack.c.bf16 %v2610_v45, %v2612_v41  ;;  %v4141_v45 = vld [vmem:[#allocation21_spill] sm:$0xff] }
 0x8e0   :  { %v2032_v10 = vmul.f32 1.442695, %v1914_v44  ;;  %v2034_v37 = vmul.f32 1.442695, %v1915_v48  ;;  %2621 = vpow2.f32 %v2028_v23  ;;  %v2657_v48 = vld [vmem:[%s3959_s0 + $0x10] sm:$0xff] }
 0x8e1   :  { %2106 = vmatprep.subr.bf16.mxu1 %v2075_v1 }
 0x8e2   :  { %2623 = vpow2.f32 %v2032_v10  ;;  %2107 = vmatpush1.bf16.xpose.msra.mxu1 %v2074_v19  ;;  %v2614_v53 = vpop.eup %2613  ;;  %v4142_v19 = vld [vmem:[#allocation22_spill] sm:$0xff] }
 0x8e3   :  { %2625 = vpow2.f32 %v2034_v37  ;;  %v1850_v15 = vpop.xlane.xlu0 %1849 }
 0x8e4   :  { %v2616_v57 = vpop.eup %2615  ;;  %2627 = vpow2.f32 %v2030_v63  ;;  %v1916_v4 = vsub.f32 %v4131_v33, %v1850_v15  ;;  %v1917_v54 = vsub.f32 %v4132_v11, %v1850_v15  ;;  %v2658_v63 = vld [vmem:[%s3959_s0 + $0x18] sm:$0xff]  ;;  %v4144_v33 = vld [vmem:[#allocation26_spill] sm:$0xff] }
 0x8e5   :  { %v2618_v51 = vpop.eup %2617  ;;  %v1853_v21 = vpop.xlane.xlu1 %1852  ;;  %v2076_v5 = vpack.c.bf16 %v2616_v57, %v2614_v53  ;;  %v4143_v15 = vld [vmem:[#allocation25_spill] sm:$0xff] }
 0x8e6   :  { %v2620_v43 = vpop.eup %2619  ;;  %v2036_v25 = vmul.f32 1.442695, %v1916_v4  ;;  %v1918_v12 = vsub.f32 %v4133_v38, %v1853_v21  ;;  %v1919_v2 = vsub.f32 %v4134_v46, %v1853_v21  ;;  %v2038_v8 = vmul.f32 1.442695, %v1917_v54 }
 0x8e7   :  { %v2077_v42 = vpack.c.bf16 %v2618_v51, %v2620_v43  ;;  %v2659_v51 = vld [vmem:[%s3959_s0] sm:$0xff] }
 0x8e8   :  { %v2040_v58 = vmul.f32 1.442695, %v1918_v12  ;;  %v2042_v30 = vmul.f32 1.442695, %v1919_v2  ;;  %2629 = vpow2.f32 %v2036_v25  ;;  %v4145_v25 = vld [vmem:[#allocation27_spill] sm:$0xff]  ;;  %v4146_v12 = vld [vmem:[#allocation28_spill] sm:$0xff] }
 0x8e9   :  { %2108 = vmatprep.subr.bf16.mxu1 %v2077_v42 }
 0x8ea   :  { %2631 = vpow2.f32 %v2040_v58  ;;  %2109 = vmatpush1.bf16.xpose.msra.mxu1 %v2076_v5  ;;  %v2622_v27 = vpop.eup %2621  ;;  %v2660_v5 = vld [vmem:[%s3959_s0 + $0x8] sm:$0xff] }
 0x8eb   :  { %2633 = vpow2.f32 %v2042_v30  ;;  %v1856_v29 = vpop.xlane.xlu0 %1855 }
 0x8ec   :  { %v2624_v49 = vpop.eup %2623  ;;  %2635 = vpow2.f32 %v2038_v8  ;;  %v1920_v60 = vsub.f32 %v4135_v17, %v1856_v29  ;;  %v1921_v40 = vsub.f32 %v4136_v22, %v1856_v29  ;;  %v2661_v29 = vld [vmem:[%s3959_s0 + $0x20] sm:$0xff]  ;;  %v2662_v17 = vld [vmem:[%s3959_s0 + $0x28] sm:$0xff] }
 0x8ed   :  { %v2626_v50 = vpop.eup %2625  ;;  %v1859_v61 = vpop.xlane.xlu1 %1858  ;;  %v2078_v0 = vpack.c.bf16 %v2624_v49, %v2622_v27 }
 0x8ee   :  { %v2628_v7 = vpop.eup %2627  ;;  %v2044_v28 = vmul.f32 1.442695, %v1920_v60  ;;  %v2046_v20 = vmul.f32 1.442695, %v1921_v40  ;;  %v1922_v47 = vsub.f32 %v4137_v18, %v1859_v61  ;;  %v1923_v55 = vsub.f32 %v4138_v6, %v1859_v61  ;;  %v2663_v40 = vld [vmem:[%s3959_s0 + $0x30] sm:$0xff]  ;;  %v2664_v61 = vld [vmem:[%s3959_s0 + $0x38] sm:$0xff] }
 0x8ef   :  { %v2079_v32 = vpack.c.bf16 %v2626_v50, %v2628_v7  ;;  %v4147_v18 = vld [vmem:[#allocation30_spill] sm:$0xff] }
 0x8f0   :  { %2637 = vpow2.f32 %v2044_v28  ;;  %v2048_v26 = vmul.f32 1.442695, %v1922_v47  ;;  %v2050_v9 = vmul.f32 1.442695, %v1923_v55  ;;  %v4148_v47 = vld [vmem:[#allocation29_spill] sm:$0xff]  ;;  %v4150_v55 = vld [vmem:[#allocation34_spill] sm:$0xff] }
 0x8f1   :  { %2639 = vpow2.f32 %v2046_v20  ;;  %2110 = vmatprep.subr.bf16.mxu1 %v2079_v32  ;;  %v3819_v14 = vpop.permute.xlu1 %1239  ;;  %v4149_v6 = vpack.c.bf16 %v4147_v18, %v4148_v47  ;;  %v4151_v32 = vld [vmem:[#allocation33_spill] sm:$0xff]  ;;  %v2671_v47 = vld [vmem:[%s3959_s0 + $0x50] sm:$0xff] }
 0x8f2   :  { %2641 = vpow2.f32 %v2048_v26  ;;  %2111 = vmatpush1.bf16.xpose.msra.mxu1 %v2078_v0  ;;  %v1337_v52 = vadd.f32 %v4139_v56, %v3819_v14  ;;  %v1339_v62 = vadd.f32 %v4140_v31, %v3819_v14  ;;  %v2630_v3 = vpop.eup %2629  ;;  %v4152_v26 = vpack.c.bf16 %v4150_v55, %v4151_v32  ;;  %v4154_v56 = vld [vmem:[#allocation35_spill] sm:$0xff] }
 0x8f3   :  { %2643 = vpow2.f32 %v2050_v9  ;;  %v3825_v34 = vpop.permute.xlu0 %1234  ;;  %v4153_v9 = vld [vmem:[#allocation36_spill] sm:$0xff]  ;;  %v4156_v31 = vmov 1065369472  }
 0x8f4   :  { %v2632_v59 = vpop.eup %2631  ;;  %v1356_v24 = vadd.f32 %v3817_v36, %v1337_v52  ;;  %v1357_v39 = vadd.f32 %v3817_v36, %v1339_v62  ;;  %v1331_v13 = vadd.f32 %v4141_v45, %v3825_v34  ;;  %v1333_v41 = vadd.f32 %v4142_v19, %v3825_v34 }
 0x8f5   :  { %v2634_v23 = vpop.eup %2633  ;;  %v3833_v35 = vpop.permute.xlu1 %1244  ;;  %v2080_v44 = vpack.c.bf16 %v2632_v59, %v2630_v3  ;;  %v4155_v52 = vpack.c.bf16 %v4153_v9, %v4154_v56 }
 0x8f6   :  { %v2636_v16 = vpop.eup %2635  ;;  %v1364_v1 = vadd.f32 %v2657_v48, %v1356_v24  ;;  %v1365_v10 = vadd.f32 %v2658_v63, %v1357_v39  ;;  %v1354_v37 = vadd.f32 %v3817_v36, %v1331_v13  ;;  %v1355_v53 = vadd.f32 %v3817_v36, %v1333_v41  ;;  %v4157_v63 = vld [vmem:[#allocation20_spill] sm:$0xff] }
 0x8f7   :  { %v1343_v57 = vadd.f32 %v4143_v15, %v3833_v35  ;;  %v1345_v4 = vadd.f32 %v4144_v33, %v3833_v35  ;;  %v3847_v11 = vpop.permute.xlu0 %1249  ;;  %v2081_v54 = vpack.c.bf16 %v2634_v23, %v2636_v16 }
 0x8f8   :  { %1372 = vst [vmem:[#allocation3 + $0x10] sm:$0xff] %v1364_v1  ;;  %1373 = vst [vmem:[#allocation3 + $0x18] sm:$0xff] %v1365_v10  ;;  %v1362_v21 = vadd.f32 %v2659_v51, %v1354_v37  ;;  %v1363_v43 = vadd.f32 %v2660_v5, %v1355_v53  ;;  %v1349_v38 = vadd.f32 %v4145_v25, %v3847_v11 }
 0x8f9   :  { %v1351_v46 = vadd.f32 %v4146_v12, %v3847_v11  ;;  %v1358_v2 = vadd.f32 %v3817_v36, %v1343_v57  ;;  %v1359_v42 = vadd.f32 %v3817_v36, %v1345_v4  ;;  %2112 = vmatprep.subr.bf16.mxu1 %v2081_v54  ;;  %v2665_v12 = vld [vmem:[%s3964_s5] sm:$0xff] }
 0x8fa   :  { %v2638_v8 = vpop.eup %2637  ;;  %1370 = vst [vmem:[#allocation3] sm:$0xff] %v1362_v21  ;;  %1371 = vst [vmem:[#allocation3 + $0x8] sm:$0xff] %v1363_v43  ;;  %v1360_v58 = vadd.f32 %v3817_v36, %v1349_v38  ;;  %2113 = vmatpush1.bf16.xpose.msra.mxu1 %v2080_v44 }
 0x8fb   :  { %v1361_v30 = vadd.f32 %v3817_v36, %v1351_v46  ;;  %v2640_v27 = vpop.eup %2639  ;;  %v1366_v49 = vadd.f32 %v2661_v29, %v1358_v2  ;;  %v1367_v60 = vadd.f32 %v2662_v17, %v1359_v42  ;;  %v4158_v46 = vmov 0.0   ;;  %v2666_v2 = vld [vmem:[%s3964_s5 + $0x8] sm:$0xff]  ;;  %v2667_v42 = vld [vmem:[%s3964_s5 + $0x10] sm:$0xff] }
 0x8fc   :  { %v2642_v22 = vpop.eup %2641  ;;  %v1368_v50 = vadd.f32 %v2663_v40, %v1360_v58 }
 0x8fd   :  { %v1369_v0 = vadd.f32 %v2664_v61, %v1361_v30  ;;  %v2644_v7 = vpop.eup %2643  ;;  %1374 = vst [vmem:[#allocation3 + $0x20] sm:$0xff] %v1366_v49  ;;  %1375 = vst [vmem:[#allocation3 + $0x28] sm:$0xff] %v1367_v60  ;;  %v2082_v28 = vpack.c.bf16 %v2642_v22, %v2638_v8  ;;  %v2668_v8 = vld [vmem:[%s3964_s5 + $0x18] sm:$0xff]  ;;  %v2669_v22 = vld [vmem:[%s3959_s0 + $0x40] sm:$0xff] }
 0x8fe   :  { %1376 = vst [vmem:[#allocation3 + $0x30] sm:$0xff] %v1368_v50  ;;  %v2083_v20 = vpack.c.bf16 %v2644_v7, %v2640_v27 }
 0x8ff   :  { %1377 = vst [vmem:[#allocation3 + $0x38] sm:$0xff] %v1369_v0  ;;  %v2670_v0 = vld [vmem:[%s3959_s0 + $0x48] sm:$0xff] }
 0x900   :  { %2114 = vmatprep.subr.bf16.mxu1 %v2083_v20 }
 0x902   :  { %2115 = vmatpush1.bf16.xpose.msra.mxu1 %v2082_v28 }
 0x909   :  { %2117 = vmatmul.mubr.bf16.vlgmr.msra.gmra.mrb[96].mxu1 %v4149_v6 }
 0x90a   :  { %2126 = vmatprep.mubr.bf16.mxu1 %v4152_v26  ;;  %v2672_v26 = vld [vmem:[%s3959_s0 + $0x58] sm:$0xff] }
 0x911   :  { %2127 = vmatmul.mubr.bf16.gmra.mrb[100].mxu1 %v4155_v52 }
 0x912   :  { %2136 = vmatprep.mubr.bf16.mxu1 %v4156_v31 }
 0x919   :  { %2137 = vmatmul.mubr.bf16.gmra.mrb[104].mxu1 %v4156_v31 }
 0x9dc   :  { %v2118_v62 = vpop.f32.mrb[96].mxu1 }
 0x9dd   :  { %v2120_v3 = vpop.f32.mrb[97].mxu1 }
 0x9de   :  { %v2122_v59 = vpop.f32.mrb[98].mxu1 }
 0x9df   :  { %v2124_v24 = vpop.f32.mrb[99].mxu1 }
 0x9e4   :  { %v2128_v39 = vpop.f32.mrb[100].mxu1 }
 0x9e5   :  { %v2130_v45 = vpop.f32.mrb[101].mxu1 }
 0x9e6   :  { %v2132_v13 = vpop.f32.mrb[102].mxu1 }
 0x9e7   :  { %v2134_v19 = vpop.f32.mrb[103].mxu1 }
 0x9ec   :  { %v2138_v41 = vpop.f32.mrb[104].mxu1 }
 0x9ed   :  { %2645 = vrcp.f32 %v2138_v41  ;;  %v2140_v23 = vpop.f32.mrb[105].mxu1  ;;  %v2675_v41 = vld [vmem:[%s3959_s0 + $0x70] sm:$0xff] }
 0x9ee   :  { %2647 = vrcp.f32 %v2140_v23  ;;  %v2142_v44 = vpop.f32.mrb[106].mxu1 }
 0x9ef   :  { %v2143_v16 = vpop.f32.mrb[107].mxu1  ;;  %v2676_v44 = vld [vmem:[%s3959_s0 + $0x78] sm:$0xff] }
 0x9f7   :  { %v2646_v48 = vpop.eup %2645 }
 0x9f8   :  { %v2648_v1 = vpop.eup %2647  ;;  %v2150_v10 = vrot.slane %v2646_v48, %v4157_v63 }
 0x9f9   :  { %v2154_v37 = vrot.slane %v2648_v1, %v4157_v63 }
 0x9fa   :  { %v2155_v53 = vmul.f32 %v2150_v10, %v2118_v62  ;;  %v2157_v15 = vmul.f32 %v2150_v10, %v2122_v59  ;;  %v2159_v57 = vmul.f32 %v2150_v10, %v2128_v39  ;;  %v2161_v33 = vmul.f32 %v2150_v10, %v2132_v13  ;;  %v2673_v62 = vld [vmem:[%s3959_s0 + $0x60] sm:$0xff]  ;;  %v2674_v39 = vld [vmem:[%s3959_s0 + $0x68] sm:$0xff] }
 0x9fb   :  { %v2156_v4 = vmul.f32 %v2154_v37, %v2120_v3  ;;  %v2158_v54 = vmul.f32 %v2154_v37, %v2124_v24  ;;  %v2160_v51 = vmul.f32 %v2154_v37, %v2130_v45  ;;  %v2162_v21 = vmul.f32 %v2154_v37, %v2134_v19 }
 0x9fc   :  { %v2355_v5 = vpack.c.bf16 %v2157_v15, %v2155_v53  ;;  %v2359_v43 = vpack.c.bf16 %v2161_v33, %v2159_v57 }
 0x9fd   :  { %v2353_v25 = vpack.c.bf16 %v2158_v54, %v2156_v4  ;;  %v2357_v38 = vpack.c.bf16 %v2162_v21, %v2160_v51 }
 0x9ff   :  { %2354 = vmatprep.subr.bf16.mxu0 %v2353_v25 }
 0xa00   :  { %2356 = vmatpush1.bf16.msra.mxu0 %v2355_v5 }
 0xa01   :  { %2358 = vmatprep.subr.bf16.mxu0 %v2357_v38 }
 0xa04   :  { %2360 = vmatpush1.bf16.msra.mxu0 %v2359_v43 }
 0xa07   :  { %2341 = vmatmul.mubr.msk.f32.vlgmr.msra.gmra.mrb[100].mxu0 %vm428_vm0, %v2665_v12 }
 0xa08   :  { %2233 = vmatprep.mubr.f32.mxu0 %v4158_v46 }
 0xa0b   :  { %2342 = vmatmul.mubr.msk.f32.gmra.mrb[102].mxu0 %vm428_vm0, %v2666_v2 }
 0xa0c   :  { %2239 = vmatprep.mubr.f32.mxu0 %v4158_v46 }
 0xa0f   :  { %2343 = vmatmul.mubr.msk.f32.gmra.mrb[104].mxu0 %vm428_vm0, %v2667_v42 }
 0xa10   :  { %2245 = vmatprep.mubr.f32.mxu0 %v4158_v46 }
 0xa13   :  { %2344 = vmatmul.mubr.msk.f32.gmra.mrb[106].mxu0 %vm428_vm0, %v2668_v8 }
 0xada   :  { %v2229_v58 = vpop.f32.mrb[100].mxu0 }
 0xadb   :  { %v2230_v30 = vadd.f32 %v2229_v58, %v3825_v34  ;;  %v2231_v27 = vpop.f32.mrb[101].mxu0 }
 0xadc   :  { %v2232_v29 = vadd.f32 %v2231_v27, %v3825_v34 }
 0xadd   :  { %v2252_v49 = vadd.f32 %v2230_v30, %v3817_v36 }
 0xade   :  { %v2253_v17 = vadd.f32 %v2232_v29, %v3817_v36  ;;  %v2235_v60 = vpop.f32.mrb[102].mxu0 }
 0xadf   :  { %v2260_v40 = vadd.f32 %v2669_v22, %v2252_v49  ;;  %v2236_v50 = vadd.f32 %v2235_v60, %v3819_v14  ;;  %v2237_v61 = vpop.f32.mrb[103].mxu0 }
 0xae0   :  { %v2261_v7 = vadd.f32 %v2670_v0, %v2253_v17  ;;  %v2238_v34 = vadd.f32 %v2237_v61, %v3819_v14 }
 0xae1   :  { %2269 = vst [vmem:[#allocation3 + $0x40] sm:$0xff] %v2260_v40  ;;  %v2254_v28 = vadd.f32 %v2236_v50, %v3817_v36 }
 0xae2   :  { %2270 = vst [vmem:[#allocation3 + $0x48] sm:$0xff] %v2261_v7  ;;  %v2255_v20 = vadd.f32 %v2238_v34, %v3817_v36  ;;  %v2241_v18 = vpop.f32.mrb[104].mxu0 }
 0xae3   :  { %v2262_v6 = vadd.f32 %v2671_v47, %v2254_v28  ;;  %v2242_v55 = vadd.f32 %v2241_v18, %v3833_v35  ;;  %v2243_v32 = vpop.f32.mrb[105].mxu0 }
 0xae4   :  { %v2263_v14 = vadd.f32 %v2672_v26, %v2255_v20  ;;  %v2244_v9 = vadd.f32 %v2243_v32, %v3833_v35 }
 0xae5   :  { %2271 = vst [vmem:[#allocation3 + $0x50] sm:$0xff] %v2262_v6  ;;  %v2256_v56 = vadd.f32 %v2242_v55, %v3817_v36 }
 0xae6   :  { %2272 = vst [vmem:[#allocation3 + $0x58] sm:$0xff] %v2263_v14  ;;  %v2257_v52 = vadd.f32 %v2244_v9, %v3817_v36  ;;  %v2247_v31 = vpop.f32.mrb[106].mxu0 }
 0xae7   :  { %v2264_v3 = vadd.f32 %v2673_v62, %v2256_v56  ;;  %v2248_v59 = vadd.f32 %v2247_v31, %v3847_v11  ;;  %v2249_v24 = vpop.f32.mrb[107].mxu0 }
 0xae8   :  { %v2265_v35 = vadd.f32 %v2674_v39, %v2257_v52  ;;  %v2250_v45 = vadd.f32 %v2249_v24, %v3847_v11 }
 0xae9   :  { %2273 = vst [vmem:[#allocation3 + $0x60] sm:$0xff] %v2264_v3  ;;  %v2258_v13 = vadd.f32 %v2248_v59, %v3817_v36 }
 0xaea   :  { %2274 = vst [vmem:[#allocation3 + $0x68] sm:$0xff] %v2265_v35  ;;  %v2259_v19 = vadd.f32 %v2250_v45, %v3817_v36 }
 0xaeb   :  { %v2266_v23 = vadd.f32 %v2675_v41, %v2258_v13 }
 0xaec   :  { %v2267_v16 = vadd.f32 %v2676_v44, %v2259_v19 }
 0xaed   :  { %2275 = vst [vmem:[#allocation3 + $0x70] sm:$0xff] %v2266_v23 }
 0xaee   :  { %2276 = vst [vmem:[#allocation3 + $0x78] sm:$0xff] %v2267_v16 }
 0xaef   :  { %2688 = shalt.err (!%p2685_p4)
}
 0xaf0   :  { %s2689_s4 = scalar_lea.hbm %s3967_s8, 2048 }
 0xaf1   :  { %p2690_p5 = scmp.ne.s32.totalorder %s3967_s8, %s2689_s4  ;;  %p2693_p6 = scmp.lt.u32.totalorder %s2689_s4, %s3967_s8 }
 0xaf3   :  { %p2695_p7 = pnand %p2693_p6, %p2690_p5 }
 0xaf5   :  { %2698 = shalt.err (!%p2695_p7)
}
 0xaf6   :  { %s2705_s3 = smov 256   ;;  %s2706_s11 = smov 16  }
 0xaf7   :  { %2288 = dma.vmem_to_hbm [thread:$0]  %s2283_s24, 2048, %s3967_s8, [#allocation4], %s2705_s3, %s2705_s3, %s2706_s11  }
 0xaf8   :  { %2699 = dma.done.wait [#allocation4], 2048  }
 0xaf9   :  { %2700 = vsyncadd [#allocation4], 4294965248 }
 0xafa   :  { %2292 = vsyncpa [#allocation4], 1 }

</bundles_post_ra>
